<compile_context>
chip_gen: v7x
topology: tpu7x:2x2x1
jax: 0.10.0
libtpu: 0.0.40
codegen_flags: <defaults>
</compile_context>

<pallas_src>
import functools
import math

import jax
import jax.numpy as jnp
from jax.experimental import pallas as pl
from jax.experimental.pallas import tpu as pltpu


# ------------------------------ fused kernel ------------------------------- #

def _layernorm(x, g, b, eps=1e-5):
    mu = jnp.mean(x, axis=-1, keepdims=True)
    var = jnp.mean((x - mu) ** 2, axis=-1, keepdims=True)
    return (x - mu) * jax.lax.rsqrt(var + eps) * g + b


def _gpt2_fused_kernel(ids_ref, pos_ref, wte_emb_ref,
                       ln1_g_ref, ln1_b_ref, attn_w_ref, attn_b_ref,
                       proj_w_ref, proj_b_ref, ln2_g_ref, ln2_b_ref,
                       fc_w_ref, fc_b_ref, mproj_w_ref, mproj_b_ref,
                       lnf_g_ref, lnf_b_ref, wte_t_ref,
                       logits_ref, loss_ref,
                       *, n_layer, n_head, seq, vocab, inv_num_valid):
    f32, bf16 = jnp.float32, jnp.bfloat16
    t = seq
    d = pos_ref.shape[-1]
    vpad = wte_emb_ref.shape[0]
    hd = d // n_head
    scale = 1.0 / math.sqrt(hd)
    neg = jnp.finfo(f32).min

    # ----- token + positional embedding, fully in-kernel (one-hot row gather, MXU) -----
    ids = ids_ref[...]                                            # (T, 1) int32
    lane_v = jax.lax.broadcasted_iota(jnp.int32, (t, vpad), 1)    # (T, Vpad)
    onehot = (lane_v == ids).astype(f32)                          # exact f32 gather
    h = jnp.dot(onehot, wte_emb_ref[...],
                preferred_element_type=f32) + pos_ref[...]        # (T, D) f32 residual

    # ----- causal mask, hoisted once (this program is a single batch row) -----
    row = jax.lax.broadcasted_iota(jnp.int32, (t, t), 0)
    col = jax.lax.broadcasted_iota(jnp.int32, (t, t), 1)
    causal = col <= row

    # TODO(synk): switch to lax.fori_loop over the stacked L axis if n_layer grows
    # (static unrolling does not bound vreg live ranges).
    for l in range(n_layer):
        # -------- attention block: 2D matmuls, heads merged via lane concat --------
        a = _layernorm(h, ln1_g_ref[l], ln1_b_ref[l])
        qkv = jnp.dot(a.astype(bf16), attn_w_ref[l],
                      preferred_element_type=f32) + attn_b_ref[l]          # (T, 3D)
        ctx = []
        for hh in range(n_head):
            q = qkv[:, hh * hd:(hh + 1) * hd].astype(bf16)
            k = qkv[:, d + hh * hd:d + (hh + 1) * hd].astype(bf16)
            v = qkv[:, 2 * d + hh * hd:2 * d + (hh + 1) * hd].astype(bf16)
            s = jnp.dot(q, k.T, preferred_element_type=f32) * scale        # (T, T)
            s = jnp.where(causal, s, neg)
            p = jnp.exp(s - jnp.max(s, axis=-1, keepdims=True))
            p = p * pl.reciprocal(jnp.sum(p, axis=-1, keepdims=True), approx=False)
            ctx.append(jnp.dot(p.astype(bf16), v, preferred_element_type=f32))
        ctx = jnp.concatenate(ctx, axis=-1)                                # (T, D) merge
        h = h + jnp.dot(ctx.astype(bf16), proj_w_ref[l],
                        preferred_element_type=f32) + proj_b_ref[l]

        # ------------------------------ MLP block ---------------------------------
        m2 = _layernorm(h, ln2_g_ref[l], ln2_b_ref[l])
        ff = jnp.dot(m2.astype(bf16), fc_w_ref[l],
                     preferred_element_type=f32) + fc_b_ref[l]             # (T, 4D)
        c = 0.7978845608028654                       # sqrt(2/pi), GPT2 "gelu_new"
        ff = 0.5 * ff * (1.0 + jnp.tanh(c * (ff + 0.044715 * ff * ff * ff)))
        h = h + jnp.dot(ff.astype(bf16), mproj_w_ref[l],
                        preferred_element_type=f32) + mproj_b_ref[l]

    # ----- final LN + tied lm_head: lane-padded (T,128) logits, lane-dense store -----
    h = _layernorm(h, lnf_g_ref[...], lnf_b_ref[...])
    logits = jnp.dot(h.astype(bf16), wte_t_ref[...], preferred_element_type=f32)
    logits_ref[...] = logits

    # ----- shifted causal-LM cross entropy (partial sum for this batch row) -----
    masked = jnp.where(lane_v < vocab, logits, neg)          # kill padded vocab columns
    mx = jnp.max(masked, axis=-1, keepdims=True)
    lse = jnp.log(jnp.sum(jnp.exp(masked - mx), axis=-1, keepdims=True)) + mx
    shift = (col == row + 1).astype(f32)                     # superdiagonal shift matrix
    label_onehot = jnp.dot(shift, onehot, preferred_element_type=f32)  # next-token 1-hot
    picked = jnp.sum(label_onehot * logits, axis=-1, keepdims=True)
    valid = (jax.lax.broadcasted_iota(jnp.int32, (t, 1), 0) < (t - 1)).astype(f32)
    part = jnp.sum(valid * (lse - picked), axis=0, keepdims=True) * inv_num_valid
    loss_ref[...] = part.reshape(1, 1, 1)


# --------------------------- parameters & forward --------------------------- #

def init_params(key, vocab, d, n_layer, n_pos):
    def normal(k, shape, std=0.02):
        return std * jax.random.normal(k, shape, dtype=jnp.float32)

    keys = jax.random.split(key, 2 + 4 * n_layer)
    params = {
        "wte": normal(keys[0], (vocab, d)),
        "wpe": normal(keys[1], (n_pos, d)),
        "lnf_g": jnp.ones((1, d), jnp.float32),
        "lnf_b": jnp.zeros((1, d), jnp.float32),
        "layers": [],
    }
    for l in range(n_layer):
        k0, k1, k2, k3 = keys[2 + 4 * l: 6 + 4 * l]
        params["layers"].append({
            "ln1_g": jnp.ones((1, d), jnp.float32),
            "ln1_b": jnp.zeros((1, d), jnp.float32),
            "attn_w": normal(k0, (d, 3 * d)),
            "attn_b": jnp.zeros((1, 3 * d), jnp.float32),
            "proj_w": normal(k1, (d, d)),
            "proj_b": jnp.zeros((1, d), jnp.float32),
            "ln2_g": jnp.ones((1, d), jnp.float32),
            "ln2_b": jnp.zeros((1, d), jnp.float32),
            "fc_w": normal(k2, (d, 4 * d)),
            "fc_b": jnp.zeros((1, 4 * d), jnp.float32),
            "mproj_w": normal(k3, (4 * d, d)),
            "mproj_b": jnp.zeros((1, d), jnp.float32),
        })
    return params


def prepare_kernel_params(params, seq):
    """One-time (outside the per-step jit): stack & bf16-cast layer weights,
    lane-pad / pre-transpose the tied embedding, slice the positional table."""
    f32, bf16 = jnp.float32, jnp.bfloat16
    wte = params["wte"]
    v, d = wte.shape
    vpad = max(128, ((v + 127) // 128) * 128)
    wte_pad = jnp.zeros((vpad, d), f32).at[:v, :].set(wte)

    def stack(name, dtype):
        return jnp.stack([lyr[name] for lyr in params["layers"]]).astype(dtype)

    return {
        "pos": params["wpe"][:seq].astype(f32),        # (T, D)
        "wte_emb": wte_pad,                            # (Vpad, D) f32, embedding gather
        "wte_t": wte_pad.T.astype(bf16),               # (D, Vpad) bf16, tied lm_head
        "ln1_g": stack("ln1_g", f32), "ln1_b": stack("ln1_b", f32),
        "attn_w": stack("attn_w", bf16), "attn_b": stack("attn_b", f32),
        "proj_w": stack("proj_w", bf16), "proj_b": stack("proj_b", f32),
        "ln2_g": stack("ln2_g", f32), "ln2_b": stack("ln2_b", f32),
        "fc_w": stack("fc_w", bf16), "fc_b": stack("fc_b", f32),
        "mproj_w": stack("mproj_w", bf16), "mproj_b": stack("mproj_b", f32),
        "lnf_g": params["lnf_g"].astype(f32), "lnf_b": params["lnf_b"].astype(f32),
    }


def proto_bytes_gpt2_forward(kp, x, *, n_head, vocab):
    b, t = x.shape
    tp, d = kp["pos"].shape
    assert t == tp, "prepare_kernel_params was built for a different sequence length"
    n_layer = kp["attn_w"].shape[0]
    vpad = kp["wte_emb"].shape[0]
    d3, d4 = 3 * d, 4 * d
    L = n_layer

    ids = x.reshape(b * t, 1).astype(jnp.int32)

    kernel = functools.partial(
        _gpt2_fused_kernel, n_layer=n_layer, n_head=n_head, seq=t,
        vocab=vocab, inv_num_valid=1.0 / float(b * (t - 1)))

    def full(shape):                       # whole array, same block for every program
        return pl.BlockSpec(shape, lambda bi, _s=shape: (0,) * len(_s))

    in_specs = [
        pl.BlockSpec((t, 1), lambda bi: (bi, 0)),          # ids (one batch row)
        full((t, d)),                                      # positional slab
        full((vpad, d)),                                   # wte (f32, gather)
        full((L, 1, d)), full((L, 1, d)),                  # ln1_g, ln1_b
        full((L, d, d3)), full((L, 1, d3)),                # attn_w, attn_b
        full((L, d, d)), full((L, 1, d)),                  # proj_w, proj_b
        full((L, 1, d)), full((L, 1, d)),                  # ln2_g, ln2_b
        full((L, d, d4)), full((L, 1, d4)),                # fc_w, fc_b
        full((L, d4, d)), full((L, 1, d)),                 # mproj_w, mproj_b
        full((1, d)), full((1, d)),                        # lnf_g, lnf_b
        full((d, vpad)),                                   # wte^T (bf16, lm_head)
    ]
    out_specs = (
        pl.BlockSpec((t, vpad), lambda bi: (bi, 0)),       # lane-dense padded logits
        pl.BlockSpec((1, 1, 1), lambda bi: (bi, 0, 0)),    # per-program partial loss
    )
    out_shape = (
        jax.ShapeDtypeStruct((b * t, vpad), jnp.float32),
        jax.ShapeDtypeStruct((b, 1, 1), jnp.float32),
    )

    # TODO(synk): GPT2 dropout (embd/attn/resid/mlp) omitted — identity (eval mode).
    # TODO(synk): at larger (D, V, T) re-tile: vocab-tiled online-LSE lm_head + layer-
    # streamed weights + CompilerParams(vmem_limit_bytes=...) before scale-up.
    logits_pad, loss_parts = pl.pallas_call(
        kernel,
        grid=(b,),
        in_specs=in_specs,
        out_specs=out_specs,
        out_shape=out_shape,
        compiler_params=pltpu.CompilerParams(
            dimension_semantics=("parallel",)),            # batch rows -> v7x's 2 TCs
    )(ids, kp["pos"], kp["wte_emb"],
      kp["ln1_g"], kp["ln1_b"], kp["attn_w"], kp["attn_b"],
      kp["proj_w"], kp["proj_b"], kp["ln2_g"], kp["ln2_b"],
      kp["fc_w"], kp["fc_b"], kp["mproj_w"], kp["mproj_b"],
      kp["lnf_g"], kp["lnf_b"], kp["wte_t"])

    loss = jnp.sum(loss_parts)
    logits = logits_pad[:, :vocab].reshape(b, t, vocab)
    return loss, logits


if __name__ == "__main__":
    VOCAB_SIZE = 10          # module uses vocab_size + 1 internally
    EMBED_DIM = 32
    N_LAYER = 4
    N_HEAD = 4
    N_POS = 16
    B, T = 2, 8

    key = jax.random.PRNGKey(0)
    pkey, xkey = jax.random.split(key)
    params = init_params(pkey, VOCAB_SIZE + 1, EMBED_DIM, N_LAYER, N_POS)
    x = jax.random.randint(xkey, (B, T), 0, VOCAB_SIZE + 1, dtype=jnp.int32)

    # One-time weight preparation (stack / bf16-cast / pad / transpose) outside the jit.
    kparams = prepare_kernel_params(params, T)

    fwd = jax.jit(functools.partial(proto_bytes_gpt2_forward,
                                    n_head=N_HEAD, vocab=VOCAB_SIZE + 1))
    loss, logits = fwd(kparams, x)
    jax.block_until_ready((loss, logits))

    assert logits.shape == (B, T, VOCAB_SIZE + 1)
    assert logits.dtype == jnp.float32
    assert bool(jnp.isfinite(loss))
    print("KERNEL_OK")
</pallas_src>

<mosaic_0001>
module attributes {stable_mosaic.version = 11 : i64} {
  func.func @_gpt2_fused_kernel(%arg0: i32, %arg1: memref<8x1xi32, #tpu.memory_space<vmem>>, %arg2: memref<8x32xf32, #tpu.memory_space<vmem>>, %arg3: memref<128x32xf32, #tpu.memory_space<vmem>>, %arg4: memref<4x1x32xf32, #tpu.memory_space<vmem>>, %arg5: memref<4x1x32xf32, #tpu.memory_space<vmem>>, %arg6: memref<4x32x96xbf16, #tpu.memory_space<vmem>>, %arg7: memref<4x1x96xf32, #tpu.memory_space<vmem>>, %arg8: memref<4x32x32xbf16, #tpu.memory_space<vmem>>, %arg9: memref<4x1x32xf32, #tpu.memory_space<vmem>>, %arg10: memref<4x1x32xf32, #tpu.memory_space<vmem>>, %arg11: memref<4x1x32xf32, #tpu.memory_space<vmem>>, %arg12: memref<4x32x128xbf16, #tpu.memory_space<vmem>>, %arg13: memref<4x1x128xf32, #tpu.memory_space<vmem>>, %arg14: memref<4x128x32xbf16, #tpu.memory_space<vmem>>, %arg15: memref<4x1x32xf32, #tpu.memory_space<vmem>>, %arg16: memref<1x32xf32, #tpu.memory_space<vmem>>, %arg17: memref<1x32xf32, #tpu.memory_space<vmem>>, %arg18: memref<32x128xbf16, #tpu.memory_space<vmem>>, %arg19: memref<8x128xf32, #tpu.memory_space<vmem>>, %arg20: memref<1x1x1xf32, #tpu.memory_space<vmem>>) attributes {dimension_semantics = [#tpu.dimension_semantics<parallel>], iteration_bounds = array<i64: 2>, scalar_prefetch = 0 : i64, scratch_operands = 0 : i64, tpu.core_type = #tpu.core_type<tc>, window_params = [{transform_indices = @transform_0, window_bounds = array<i64: 8, 1>}, {pipeline_mode = #tpu.pipeline_mode<synchronous>, transform_indices = @transform_1, window_bounds = array<i64: 8, 32>}, {pipeline_mode = #tpu.pipeline_mode<synchronous>, transform_indices = @transform_2, window_bounds = array<i64: 128, 32>}, {pipeline_mode = #tpu.pipeline_mode<synchronous>, transform_indices = @transform_3, window_bounds = array<i64: 4, 1, 32>}, {pipeline_mode = #tpu.pipeline_mode<synchronous>, transform_indices = @transform_4, window_bounds = array<i64: 4, 1, 32>}, {pipeline_mode = #tpu.pipeline_mode<synchronous>, transform_indices = @transform_5, window_bounds = array<i64: 4, 32, 96>}, {pipeline_mode = #tpu.pipeline_mode<synchronous>, transform_indices = @transform_6, window_bounds = array<i64: 4, 1, 96>}, {pipeline_mode = #tpu.pipeline_mode<synchronous>, transform_indices = @transform_7, window_bounds = array<i64: 4, 32, 32>}, {pipeline_mode = #tpu.pipeline_mode<synchronous>, transform_indices = @transform_8, window_bounds = array<i64: 4, 1, 32>}, {pipeline_mode = #tpu.pipeline_mode<synchronous>, transform_indices = @transform_9, window_bounds = array<i64: 4, 1, 32>}, {pipeline_mode = #tpu.pipeline_mode<synchronous>, transform_indices = @transform_10, window_bounds = array<i64: 4, 1, 32>}, {pipeline_mode = #tpu.pipeline_mode<synchronous>, transform_indices = @transform_11, window_bounds = array<i64: 4, 32, 128>}, {pipeline_mode = #tpu.pipeline_mode<synchronous>, transform_indices = @transform_12, window_bounds = array<i64: 4, 1, 128>}, {pipeline_mode = #tpu.pipeline_mode<synchronous>, transform_indices = @transform_13, window_bounds = array<i64: 4, 128, 32>}, {pipeline_mode = #tpu.pipeline_mode<synchronous>, transform_indices = @transform_14, window_bounds = array<i64: 4, 1, 32>}, {pipeline_mode = #tpu.pipeline_mode<synchronous>, transform_indices = @transform_15, window_bounds = array<i64: 1, 32>}, {pipeline_mode = #tpu.pipeline_mode<synchronous>, transform_indices = @transform_16, window_bounds = array<i64: 1, 32>}, {pipeline_mode = #tpu.pipeline_mode<synchronous>, transform_indices = @transform_17, window_bounds = array<i64: 32, 128>}, {transform_indices = @transform_18, window_bounds = array<i64: 8, 128>}, {transform_indices = @transform_19, window_bounds = array<i64: 1, 1, 1>}]} {
    %c0 = arith.constant 0 : index
    %c0_0 = arith.constant 0 : index
    %0 = vector.load %arg1[%c0, %c0_0] : memref<8x1xi32, #tpu.memory_space<vmem>>, vector<8x1xi32>
    %1 = tpu.iota {dimensions = array<i32: 1>} : vector<8x128xi32>
    %2 = vector.broadcast %0 : vector<8x1xi32> to vector<8x128xi32>
    %3 = arith.cmpi eq, %1, %2 : vector<8x128xi32>
    %4 = arith.extui %3 : vector<8x128xi1> to vector<8x128xi32>
    %5 = arith.sitofp %4 : vector<8x128xi32> to vector<8x128xf32>
    %c0_1 = arith.constant 0 : index
    %c0_2 = arith.constant 0 : index
    %6 = vector.load %arg3[%c0_1, %c0_2] : memref<128x32xf32, #tpu.memory_space<vmem>>, vector<128x32xf32>
    %cst = arith.constant dense<0.000000e+00> : vector<8x32xf32>
    %7 = tpu.matmul %5, %6, %cst {dimension_numbers = #tpu.dot_dimension_numbers<[1], [0], [0], [1], [0, 0, 1, 1], [], []>} : vector<8x128xf32>, vector<128x32xf32>, vector<8x32xf32> -> vector<8x32xf32>
    %c0_3 = arith.constant 0 : index
    %c0_4 = arith.constant 0 : index
    %8 = vector.load %arg2[%c0_3, %c0_4] : memref<8x32xf32, #tpu.memory_space<vmem>>, vector<8x32xf32>
    %9 = arith.addf %7, %8 : vector<8x32xf32>
    %10 = tpu.iota {dimensions = array<i32: 0>} : vector<8x8xi32>
    %11 = tpu.iota {dimensions = array<i32: 1>} : vector<8x8xi32>
    %12 = arith.cmpi sle, %11, %10 : vector<8x8xi32>
    %c0_5 = arith.constant 0 : index
    %c0_6 = arith.constant 0 : index
    %c0_7 = arith.constant 0 : index
    %13 = vector.load %arg4[%c0_5, %c0_6, %c0_7] : memref<4x1x32xf32, #tpu.memory_space<vmem>>, vector<1x1x32xf32>
    %14 = vector.shape_cast %13 : vector<1x1x32xf32> to vector<1x32xf32>
    %c0_8 = arith.constant 0 : index
    %c0_9 = arith.constant 0 : index
    %c0_10 = arith.constant 0 : index
    %15 = vector.load %arg5[%c0_8, %c0_9, %c0_10] : memref<4x1x32xf32, #tpu.memory_space<vmem>>, vector<1x1x32xf32>
    %16 = vector.shape_cast %15 : vector<1x1x32xf32> to vector<1x32xf32>
    %cst_11 = arith.constant dense<0.000000e+00> : vector<8xf32>
    %17 = vector.multi_reduction <add>, %9, %cst_11 [1] : vector<8x32xf32> to vector<8xf32>
    %18 = vector.shape_cast %17 : vector<8xf32> to vector<8x1xf32>
    %cst_12 = arith.constant 3.200000e+01 : f32
    %19 = vector.broadcast %cst_12 : f32 to vector<8x1xf32>
    %20 = arith.divf %18, %19 : vector<8x1xf32>
    %21 = vector.broadcast %20 : vector<8x1xf32> to vector<8x32xf32>
    %22 = arith.subf %9, %21 : vector<8x32xf32>
    %23 = arith.mulf %22, %22 : vector<8x32xf32>
    %cst_13 = arith.constant dense<0.000000e+00> : vector<8xf32>
    %24 = vector.multi_reduction <add>, %23, %cst_13 [1] : vector<8x32xf32> to vector<8xf32>
    %25 = vector.shape_cast %24 : vector<8xf32> to vector<8x1xf32>
    %cst_14 = arith.constant 3.200000e+01 : f32
    %26 = vector.broadcast %cst_14 : f32 to vector<8x1xf32>
    %27 = arith.divf %25, %26 : vector<8x1xf32>
    %28 = vector.broadcast %20 : vector<8x1xf32> to vector<8x32xf32>
    %29 = arith.subf %9, %28 : vector<8x32xf32>
    %cst_15 = arith.constant 9.99999974E-6 : f32
    %30 = vector.broadcast %cst_15 : f32 to vector<8x1xf32>
    %31 = arith.addf %27, %30 : vector<8x1xf32>
    %32 = math.rsqrt %31 : vector<8x1xf32>
    %33 = vector.broadcast %32 : vector<8x1xf32> to vector<8x32xf32>
    %34 = arith.mulf %29, %33 : vector<8x32xf32>
    %35 = vector.broadcast %14 : vector<1x32xf32> to vector<8x32xf32>
    %36 = arith.mulf %34, %35 : vector<8x32xf32>
    %37 = vector.broadcast %16 : vector<1x32xf32> to vector<8x32xf32>
    %38 = arith.addf %36, %37 : vector<8x32xf32>
    %39 = arith.truncf %38 : vector<8x32xf32> to vector<8x32xbf16>
    %c0_16 = arith.constant 0 : index
    %c0_17 = arith.constant 0 : index
    %c0_18 = arith.constant 0 : index
    %40 = vector.load %arg6[%c0_16, %c0_17, %c0_18] : memref<4x32x96xbf16, #tpu.memory_space<vmem>>, vector<1x32x96xbf16>
    %41 = vector.shape_cast %40 : vector<1x32x96xbf16> to vector<32x96xbf16>
    %cst_19 = arith.constant dense<0.000000e+00> : vector<8x96xf32>
    %42 = tpu.matmul %39, %41, %cst_19 {dimension_numbers = #tpu.dot_dimension_numbers<[1], [0], [0], [1], [0, 0, 1, 1], [], []>} : vector<8x32xbf16>, vector<32x96xbf16>, vector<8x96xf32> -> vector<8x96xf32>
    %c0_20 = arith.constant 0 : index
    %c0_21 = arith.constant 0 : index
    %c0_22 = arith.constant 0 : index
    %43 = vector.load %arg7[%c0_20, %c0_21, %c0_22] : memref<4x1x96xf32, #tpu.memory_space<vmem>>, vector<1x1x96xf32>
    %44 = vector.shape_cast %43 : vector<1x1x96xf32> to vector<1x96xf32>
    %45 = vector.broadcast %44 : vector<1x96xf32> to vector<8x96xf32>
    %46 = arith.addf %42, %45 : vector<8x96xf32>
    %47 = vector.extract_strided_slice %46 {offsets = [0, 0], sizes = [8, 8], strides = [1, 1]} : vector<8x96xf32> to vector<8x8xf32>
    %48 = arith.truncf %47 : vector<8x8xf32> to vector<8x8xbf16>
    %49 = vector.extract_strided_slice %46 {offsets = [0, 32], sizes = [8, 8], strides = [1, 1]} : vector<8x96xf32> to vector<8x8xf32>
    %50 = arith.truncf %49 : vector<8x8xf32> to vector<8x8xbf16>
    %51 = vector.extract_strided_slice %46 {offsets = [0, 64], sizes = [8, 8], strides = [1, 1]} : vector<8x96xf32> to vector<8x8xf32>
    %52 = arith.truncf %51 : vector<8x8xf32> to vector<8x8xbf16>
    %53 = tpu.transpose %50, [1, 0] : vector<8x8xbf16> -> vector<8x8xbf16>
    %cst_23 = arith.constant dense<0.000000e+00> : vector<8x8xf32>
    %54 = tpu.matmul %48, %53, %cst_23 {dimension_numbers = #tpu.dot_dimension_numbers<[1], [0], [0], [1], [0, 0, 1, 1], [], []>} : vector<8x8xbf16>, vector<8x8xbf16>, vector<8x8xf32> -> vector<8x8xf32>
    %cst_24 = arith.constant 0.353553385 : f32
    %55 = vector.broadcast %cst_24 : f32 to vector<8x8xf32>
    %56 = arith.mulf %54, %55 : vector<8x8xf32>
    %cst_25 = arith.constant -3.40282347E+38 : f32
    %57 = vector.broadcast %cst_25 : f32 to vector<8x8xf32>
    %58 = arith.select %12, %56, %57 : vector<8x8xi1>, vector<8x8xf32>
    %cst_26 = arith.constant dense<0xFF800000> : vector<8xf32>
    %59 = vector.multi_reduction <maximumf>, %58, %cst_26 [1] : vector<8x8xf32> to vector<8xf32>
    %60 = vector.shape_cast %59 : vector<8xf32> to vector<8x1xf32>
    %61 = vector.broadcast %60 : vector<8x1xf32> to vector<8x8xf32>
    %62 = arith.subf %58, %61 : vector<8x8xf32>
    %63 = math.exp %62 : vector<8x8xf32>
    %cst_27 = arith.constant dense<0.000000e+00> : vector<8xf32>
    %64 = vector.multi_reduction <add>, %63, %cst_27 [1] : vector<8x8xf32> to vector<8xf32>
    %65 = vector.shape_cast %64 : vector<8xf32> to vector<8x1xf32>
    %66 = tpu.reciprocal %65 : vector<8x1xf32> -> vector<8x1xf32>
    %67 = vector.broadcast %66 : vector<8x1xf32> to vector<8x8xf32>
    %68 = arith.mulf %63, %67 : vector<8x8xf32>
    %69 = arith.truncf %68 : vector<8x8xf32> to vector<8x8xbf16>
    %cst_28 = arith.constant dense<0.000000e+00> : vector<8x8xf32>
    %70 = tpu.matmul %69, %52, %cst_28 {dimension_numbers = #tpu.dot_dimension_numbers<[1], [0], [0], [1], [0, 0, 1, 1], [], []>} : vector<8x8xbf16>, vector<8x8xbf16>, vector<8x8xf32> -> vector<8x8xf32>
    %71 = vector.extract_strided_slice %46 {offsets = [0, 8], sizes = [8, 8], strides = [1, 1]} : vector<8x96xf32> to vector<8x8xf32>
    %72 = arith.truncf %71 : vector<8x8xf32> to vector<8x8xbf16>
    %73 = vector.extract_strided_slice %46 {offsets = [0, 40], sizes = [8, 8], strides = [1, 1]} : vector<8x96xf32> to vector<8x8xf32>
    %74 = arith.truncf %73 : vector<8x8xf32> to vector<8x8xbf16>
    %75 = vector.extract_strided_slice %46 {offsets = [0, 72], sizes = [8, 8], strides = [1, 1]} : vector<8x96xf32> to vector<8x8xf32>
    %76 = arith.truncf %75 : vector<8x8xf32> to vector<8x8xbf16>
    %77 = tpu.transpose %74, [1, 0] : vector<8x8xbf16> -> vector<8x8xbf16>
    %cst_29 = arith.constant dense<0.000000e+00> : vector<8x8xf32>
    %78 = tpu.matmul %72, %77, %cst_29 {dimension_numbers = #tpu.dot_dimension_numbers<[1], [0], [0], [1], [0, 0, 1, 1], [], []>} : vector<8x8xbf16>, vector<8x8xbf16>, vector<8x8xf32> -> vector<8x8xf32>
    %cst_30 = arith.constant 0.353553385 : f32
    %79 = vector.broadcast %cst_30 : f32 to vector<8x8xf32>
    %80 = arith.mulf %78, %79 : vector<8x8xf32>
    %cst_31 = arith.constant -3.40282347E+38 : f32
    %81 = vector.broadcast %cst_31 : f32 to vector<8x8xf32>
    %82 = arith.select %12, %80, %81 : vector<8x8xi1>, vector<8x8xf32>
    %cst_32 = arith.constant dense<0xFF800000> : vector<8xf32>
    %83 = vector.multi_reduction <maximumf>, %82, %cst_32 [1] : vector<8x8xf32> to vector<8xf32>
    %84 = vector.shape_cast %83 : vector<8xf32> to vector<8x1xf32>
    %85 = vector.broadcast %84 : vector<8x1xf32> to vector<8x8xf32>
    %86 = arith.subf %82, %85 : vector<8x8xf32>
    %87 = math.exp %86 : vector<8x8xf32>
    %cst_33 = arith.constant dense<0.000000e+00> : vector<8xf32>
    %88 = vector.multi_reduction <add>, %87, %cst_33 [1] : vector<8x8xf32> to vector<8xf32>
    %89 = vector.shape_cast %88 : vector<8xf32> to vector<8x1xf32>
    %90 = tpu.reciprocal %89 : vector<8x1xf32> -> vector<8x1xf32>
    %91 = vector.broadcast %90 : vector<8x1xf32> to vector<8x8xf32>
    %92 = arith.mulf %87, %91 : vector<8x8xf32>
    %93 = arith.truncf %92 : vector<8x8xf32> to vector<8x8xbf16>
    %cst_34 = arith.constant dense<0.000000e+00> : vector<8x8xf32>
    %94 = tpu.matmul %93, %76, %cst_34 {dimension_numbers = #tpu.dot_dimension_numbers<[1], [0], [0], [1], [0, 0, 1, 1], [], []>} : vector<8x8xbf16>, vector<8x8xbf16>, vector<8x8xf32> -> vector<8x8xf32>
    %95 = vector.extract_strided_slice %46 {offsets = [0, 16], sizes = [8, 8], strides = [1, 1]} : vector<8x96xf32> to vector<8x8xf32>
    %96 = arith.truncf %95 : vector<8x8xf32> to vector<8x8xbf16>
    %97 = vector.extract_strided_slice %46 {offsets = [0, 48], sizes = [8, 8], strides = [1, 1]} : vector<8x96xf32> to vector<8x8xf32>
    %98 = arith.truncf %97 : vector<8x8xf32> to vector<8x8xbf16>
    %99 = vector.extract_strided_slice %46 {offsets = [0, 80], sizes = [8, 8], strides = [1, 1]} : vector<8x96xf32> to vector<8x8xf32>
    %100 = arith.truncf %99 : vector<8x8xf32> to vector<8x8xbf16>
    %101 = tpu.transpose %98, [1, 0] : vector<8x8xbf16> -> vector<8x8xbf16>
    %cst_35 = arith.constant dense<0.000000e+00> : vector<8x8xf32>
    %102 = tpu.matmul %96, %101, %cst_35 {dimension_numbers = #tpu.dot_dimension_numbers<[1], [0], [0], [1], [0, 0, 1, 1], [], []>} : vector<8x8xbf16>, vector<8x8xbf16>, vector<8x8xf32> -> vector<8x8xf32>
    %cst_36 = arith.constant 0.353553385 : f32
    %103 = vector.broadcast %cst_36 : f32 to vector<8x8xf32>
    %104 = arith.mulf %102, %103 : vector<8x8xf32>
    %cst_37 = arith.constant -3.40282347E+38 : f32
    %105 = vector.broadcast %cst_37 : f32 to vector<8x8xf32>
    %106 = arith.select %12, %104, %105 : vector<8x8xi1>, vector<8x8xf32>
    %cst_38 = arith.constant dense<0xFF800000> : vector<8xf32>
    %107 = vector.multi_reduction <maximumf>, %106, %cst_38 [1] : vector<8x8xf32> to vector<8xf32>
    %108 = vector.shape_cast %107 : vector<8xf32> to vector<8x1xf32>
    %109 = vector.broadcast %108 : vector<8x1xf32> to vector<8x8xf32>
    %110 = arith.subf %106, %109 : vector<8x8xf32>
    %111 = math.exp %110 : vector<8x8xf32>
    %cst_39 = arith.constant dense<0.000000e+00> : vector<8xf32>
    %112 = vector.multi_reduction <add>, %111, %cst_39 [1] : vector<8x8xf32> to vector<8xf32>
    %113 = vector.shape_cast %112 : vector<8xf32> to vector<8x1xf32>
    %114 = tpu.reciprocal %113 : vector<8x1xf32> -> vector<8x1xf32>
    %115 = vector.broadcast %114 : vector<8x1xf32> to vector<8x8xf32>
    %116 = arith.mulf %111, %115 : vector<8x8xf32>
    %117 = arith.truncf %116 : vector<8x8xf32> to vector<8x8xbf16>
    %cst_40 = arith.constant dense<0.000000e+00> : vector<8x8xf32>
    %118 = tpu.matmul %117, %100, %cst_40 {dimension_numbers = #tpu.dot_dimension_numbers<[1], [0], [0], [1], [0, 0, 1, 1], [], []>} : vector<8x8xbf16>, vector<8x8xbf16>, vector<8x8xf32> -> vector<8x8xf32>
    %119 = vector.extract_strided_slice %46 {offsets = [0, 24], sizes = [8, 8], strides = [1, 1]} : vector<8x96xf32> to vector<8x8xf32>
    %120 = arith.truncf %119 : vector<8x8xf32> to vector<8x8xbf16>
    %121 = vector.extract_strided_slice %46 {offsets = [0, 56], sizes = [8, 8], strides = [1, 1]} : vector<8x96xf32> to vector<8x8xf32>
    %122 = arith.truncf %121 : vector<8x8xf32> to vector<8x8xbf16>
    %123 = vector.extract_strided_slice %46 {offsets = [0, 88], sizes = [8, 8], strides = [1, 1]} : vector<8x96xf32> to vector<8x8xf32>
    %124 = arith.truncf %123 : vector<8x8xf32> to vector<8x8xbf16>
    %125 = tpu.transpose %122, [1, 0] : vector<8x8xbf16> -> vector<8x8xbf16>
    %cst_41 = arith.constant dense<0.000000e+00> : vector<8x8xf32>
    %126 = tpu.matmul %120, %125, %cst_41 {dimension_numbers = #tpu.dot_dimension_numbers<[1], [0], [0], [1], [0, 0, 1, 1], [], []>} : vector<8x8xbf16>, vector<8x8xbf16>, vector<8x8xf32> -> vector<8x8xf32>
    %cst_42 = arith.constant 0.353553385 : f32
    %127 = vector.broadcast %cst_42 : f32 to vector<8x8xf32>
    %128 = arith.mulf %126, %127 : vector<8x8xf32>
    %cst_43 = arith.constant -3.40282347E+38 : f32
    %129 = vector.broadcast %cst_43 : f32 to vector<8x8xf32>
    %130 = arith.select %12, %128, %129 : vector<8x8xi1>, vector<8x8xf32>
    %cst_44 = arith.constant dense<0xFF800000> : vector<8xf32>
    %131 = vector.multi_reduction <maximumf>, %130, %cst_44 [1] : vector<8x8xf32> to vector<8xf32>
    %132 = vector.shape_cast %131 : vector<8xf32> to vector<8x1xf32>
    %133 = vector.broadcast %132 : vector<8x1xf32> to vector<8x8xf32>
    %134 = arith.subf %130, %133 : vector<8x8xf32>
    %135 = math.exp %134 : vector<8x8xf32>
    %cst_45 = arith.constant dense<0.000000e+00> : vector<8xf32>
    %136 = vector.multi_reduction <add>, %135, %cst_45 [1] : vector<8x8xf32> to vector<8xf32>
    %137 = vector.shape_cast %136 : vector<8xf32> to vector<8x1xf32>
    %138 = tpu.reciprocal %137 : vector<8x1xf32> -> vector<8x1xf32>
    %139 = vector.broadcast %138 : vector<8x1xf32> to vector<8x8xf32>
    %140 = arith.mulf %135, %139 : vector<8x8xf32>
    %141 = arith.truncf %140 : vector<8x8xf32> to vector<8x8xbf16>
    %cst_46 = arith.constant dense<0.000000e+00> : vector<8x8xf32>
    %142 = tpu.matmul %141, %124, %cst_46 {dimension_numbers = #tpu.dot_dimension_numbers<[1], [0], [0], [1], [0, 0, 1, 1], [], []>} : vector<8x8xbf16>, vector<8x8xbf16>, vector<8x8xf32> -> vector<8x8xf32>
    %143 = tpu.concatenate %70, %94, %118, %142 in 1 : vector<8x8xf32>, vector<8x8xf32>, vector<8x8xf32>, vector<8x8xf32> -> vector<8x32xf32>
    %144 = arith.truncf %143 : vector<8x32xf32> to vector<8x32xbf16>
    %c0_47 = arith.constant 0 : index
    %c0_48 = arith.constant 0 : index
    %c0_49 = arith.constant 0 : index
    %145 = vector.load %arg8[%c0_47, %c0_48, %c0_49] : memref<4x32x32xbf16, #tpu.memory_space<vmem>>, vector<1x32x32xbf16>
    %146 = vector.shape_cast %145 : vector<1x32x32xbf16> to vector<32x32xbf16>
    %cst_50 = arith.constant dense<0.000000e+00> : vector<8x32xf32>
    %147 = tpu.matmul %144, %146, %cst_50 {dimension_numbers = #tpu.dot_dimension_numbers<[1], [0], [0], [1], [0, 0, 1, 1], [], []>} : vector<8x32xbf16>, vector<32x32xbf16>, vector<8x32xf32> -> vector<8x32xf32>
    %148 = arith.addf %9, %147 : vector<8x32xf32>
    %c0_51 = arith.constant 0 : index
    %c0_52 = arith.constant 0 : index
    %c0_53 = arith.constant 0 : index
    %149 = vector.load %arg9[%c0_51, %c0_52, %c0_53] : memref<4x1x32xf32, #tpu.memory_space<vmem>>, vector<1x1x32xf32>
    %150 = vector.shape_cast %149 : vector<1x1x32xf32> to vector<1x32xf32>
    %151 = vector.broadcast %150 : vector<1x32xf32> to vector<8x32xf32>
    %152 = arith.addf %148, %151 : vector<8x32xf32>
    %c0_54 = arith.constant 0 : index
    %c0_55 = arith.constant 0 : index
    %c0_56 = arith.constant 0 : index
    %153 = vector.load %arg10[%c0_54, %c0_55, %c0_56] : memref<4x1x32xf32, #tpu.memory_space<vmem>>, vector<1x1x32xf32>
    %154 = vector.shape_cast %153 : vector<1x1x32xf32> to vector<1x32xf32>
    %c0_57 = arith.constant 0 : index
    %c0_58 = arith.constant 0 : index
    %c0_59 = arith.constant 0 : index
    %155 = vector.load %arg11[%c0_57, %c0_58, %c0_59] : memref<4x1x32xf32, #tpu.memory_space<vmem>>, vector<1x1x32xf32>
    %156 = vector.shape_cast %155 : vector<1x1x32xf32> to vector<1x32xf32>
    %cst_60 = arith.constant dense<0.000000e+00> : vector<8xf32>
    %157 = vector.multi_reduction <add>, %152, %cst_60 [1] : vector<8x32xf32> to vector<8xf32>
    %158 = vector.shape_cast %157 : vector<8xf32> to vector<8x1xf32>
    %cst_61 = arith.constant 3.200000e+01 : f32
    %159 = vector.broadcast %cst_61 : f32 to vector<8x1xf32>
    %160 = arith.divf %158, %159 : vector<8x1xf32>
    %161 = vector.broadcast %160 : vector<8x1xf32> to vector<8x32xf32>
    %162 = arith.subf %152, %161 : vector<8x32xf32>
    %163 = arith.mulf %162, %162 : vector<8x32xf32>
    %cst_62 = arith.constant dense<0.000000e+00> : vector<8xf32>
    %164 = vector.multi_reduction <add>, %163, %cst_62 [1] : vector<8x32xf32> to vector<8xf32>
    %165 = vector.shape_cast %164 : vector<8xf32> to vector<8x1xf32>
    %cst_63 = arith.constant 3.200000e+01 : f32
    %166 = vector.broadcast %cst_63 : f32 to vector<8x1xf32>
    %167 = arith.divf %165, %166 : vector<8x1xf32>
    %168 = vector.broadcast %160 : vector<8x1xf32> to vector<8x32xf32>
    %169 = arith.subf %152, %168 : vector<8x32xf32>
    %cst_64 = arith.constant 9.99999974E-6 : f32
    %170 = vector.broadcast %cst_64 : f32 to vector<8x1xf32>
    %171 = arith.addf %167, %170 : vector<8x1xf32>
    %172 = math.rsqrt %171 : vector<8x1xf32>
    %173 = vector.broadcast %172 : vector<8x1xf32> to vector<8x32xf32>
    %174 = arith.mulf %169, %173 : vector<8x32xf32>
    %175 = vector.broadcast %154 : vector<1x32xf32> to vector<8x32xf32>
    %176 = arith.mulf %174, %175 : vector<8x32xf32>
    %177 = vector.broadcast %156 : vector<1x32xf32> to vector<8x32xf32>
    %178 = arith.addf %176, %177 : vector<8x32xf32>
    %179 = arith.truncf %178 : vector<8x32xf32> to vector<8x32xbf16>
    %c0_65 = arith.constant 0 : index
    %c0_66 = arith.constant 0 : index
    %c0_67 = arith.constant 0 : index
    %180 = vector.load %arg12[%c0_65, %c0_66, %c0_67] : memref<4x32x128xbf16, #tpu.memory_space<vmem>>, vector<1x32x128xbf16>
    %181 = vector.shape_cast %180 : vector<1x32x128xbf16> to vector<32x128xbf16>
    %cst_68 = arith.constant dense<0.000000e+00> : vector<8x128xf32>
    %182 = tpu.matmul %179, %181, %cst_68 {dimension_numbers = #tpu.dot_dimension_numbers<[1], [0], [0], [1], [0, 0, 1, 1], [], []>} : vector<8x32xbf16>, vector<32x128xbf16>, vector<8x128xf32> -> vector<8x128xf32>
    %c0_69 = arith.constant 0 : index
    %c0_70 = arith.constant 0 : index
    %c0_71 = arith.constant 0 : index
    %183 = vector.load %arg13[%c0_69, %c0_70, %c0_71] : memref<4x1x128xf32, #tpu.memory_space<vmem>>, vector<1x1x128xf32>
    %184 = vector.shape_cast %183 : vector<1x1x128xf32> to vector<1x128xf32>
    %185 = vector.broadcast %184 : vector<1x128xf32> to vector<8x128xf32>
    %186 = arith.addf %182, %185 : vector<8x128xf32>
    %cst_72 = arith.constant 5.000000e-01 : f32
    %187 = vector.broadcast %cst_72 : f32 to vector<8x128xf32>
    %188 = arith.mulf %187, %186 : vector<8x128xf32>
    %cst_73 = arith.constant 4.471500e-02 : f32
    %189 = vector.broadcast %cst_73 : f32 to vector<8x128xf32>
    %190 = arith.mulf %189, %186 : vector<8x128xf32>
    %191 = arith.mulf %190, %186 : vector<8x128xf32>
    %192 = arith.mulf %191, %186 : vector<8x128xf32>
    %193 = arith.addf %186, %192 : vector<8x128xf32>
    %cst_74 = arith.constant 0.797884583 : f32
    %194 = vector.broadcast %cst_74 : f32 to vector<8x128xf32>
    %195 = arith.mulf %194, %193 : vector<8x128xf32>
    %196 = math.tanh %195 : vector<8x128xf32>
    %cst_75 = arith.constant 1.000000e+00 : f32
    %197 = vector.broadcast %cst_75 : f32 to vector<8x128xf32>
    %198 = arith.addf %197, %196 : vector<8x128xf32>
    %199 = arith.mulf %188, %198 : vector<8x128xf32>
    %200 = arith.truncf %199 : vector<8x128xf32> to vector<8x128xbf16>
    %c0_76 = arith.constant 0 : index
    %c0_77 = arith.constant 0 : index
    %c0_78 = arith.constant 0 : index
    %201 = vector.load %arg14[%c0_76, %c0_77, %c0_78] : memref<4x128x32xbf16, #tpu.memory_space<vmem>>, vector<1x128x32xbf16>
    %202 = vector.shape_cast %201 : vector<1x128x32xbf16> to vector<128x32xbf16>
    %cst_79 = arith.constant dense<0.000000e+00> : vector<8x32xf32>
    %203 = tpu.matmul %200, %202, %cst_79 {dimension_numbers = #tpu.dot_dimension_numbers<[1], [0], [0], [1], [0, 0, 1, 1], [], []>} : vector<8x128xbf16>, vector<128x32xbf16>, vector<8x32xf32> -> vector<8x32xf32>
    %204 = arith.addf %152, %203 : vector<8x32xf32>
    %c0_80 = arith.constant 0 : index
    %c0_81 = arith.constant 0 : index
    %c0_82 = arith.constant 0 : index
    %205 = vector.load %arg15[%c0_80, %c0_81, %c0_82] : memref<4x1x32xf32, #tpu.memory_space<vmem>>, vector<1x1x32xf32>
    %206 = vector.shape_cast %205 : vector<1x1x32xf32> to vector<1x32xf32>
    %207 = vector.broadcast %206 : vector<1x32xf32> to vector<8x32xf32>
    %208 = arith.addf %204, %207 : vector<8x32xf32>
    %c1 = arith.constant 1 : index
    %c0_83 = arith.constant 0 : index
    %c0_84 = arith.constant 0 : index
    %209 = vector.load %arg4[%c1, %c0_83, %c0_84] : memref<4x1x32xf32, #tpu.memory_space<vmem>>, vector<1x1x32xf32>
    %210 = vector.shape_cast %209 : vector<1x1x32xf32> to vector<1x32xf32>
    %c1_85 = arith.constant 1 : index
    %c0_86 = arith.constant 0 : index
    %c0_87 = arith.constant 0 : index
    %211 = vector.load %arg5[%c1_85, %c0_86, %c0_87] : memref<4x1x32xf32, #tpu.memory_space<vmem>>, vector<1x1x32xf32>
    %212 = vector.shape_cast %211 : vector<1x1x32xf32> to vector<1x32xf32>
    %cst_88 = arith.constant dense<0.000000e+00> : vector<8xf32>
    %213 = vector.multi_reduction <add>, %208, %cst_88 [1] : vector<8x32xf32> to vector<8xf32>
    %214 = vector.shape_cast %213 : vector<8xf32> to vector<8x1xf32>
    %cst_89 = arith.constant 3.200000e+01 : f32
    %215 = vector.broadcast %cst_89 : f32 to vector<8x1xf32>
    %216 = arith.divf %214, %215 : vector<8x1xf32>
    %217 = vector.broadcast %216 : vector<8x1xf32> to vector<8x32xf32>
    %218 = arith.subf %208, %217 : vector<8x32xf32>
    %219 = arith.mulf %218, %218 : vector<8x32xf32>
    %cst_90 = arith.constant dense<0.000000e+00> : vector<8xf32>
    %220 = vector.multi_reduction <add>, %219, %cst_90 [1] : vector<8x32xf32> to vector<8xf32>
    %221 = vector.shape_cast %220 : vector<8xf32> to vector<8x1xf32>
    %cst_91 = arith.constant 3.200000e+01 : f32
    %222 = vector.broadcast %cst_91 : f32 to vector<8x1xf32>
    %223 = arith.divf %221, %222 : vector<8x1xf32>
    %224 = vector.broadcast %216 : vector<8x1xf32> to vector<8x32xf32>
    %225 = arith.subf %208, %224 : vector<8x32xf32>
    %cst_92 = arith.constant 9.99999974E-6 : f32
    %226 = vector.broadcast %cst_92 : f32 to vector<8x1xf32>
    %227 = arith.addf %223, %226 : vector<8x1xf32>
    %228 = math.rsqrt %227 : vector<8x1xf32>
    %229 = vector.broadcast %228 : vector<8x1xf32> to vector<8x32xf32>
    %230 = arith.mulf %225, %229 : vector<8x32xf32>
    %231 = vector.broadcast %210 : vector<1x32xf32> to vector<8x32xf32>
    %232 = arith.mulf %230, %231 : vector<8x32xf32>
    %233 = vector.broadcast %212 : vector<1x32xf32> to vector<8x32xf32>
    %234 = arith.addf %232, %233 : vector<8x32xf32>
    %235 = arith.truncf %234 : vector<8x32xf32> to vector<8x32xbf16>
    %c1_93 = arith.constant 1 : index
    %c0_94 = arith.constant 0 : index
    %c0_95 = arith.constant 0 : index
    %236 = vector.load %arg6[%c1_93, %c0_94, %c0_95] : memref<4x32x96xbf16, #tpu.memory_space<vmem>>, vector<1x32x96xbf16>
    %237 = vector.shape_cast %236 : vector<1x32x96xbf16> to vector<32x96xbf16>
    %cst_96 = arith.constant dense<0.000000e+00> : vector<8x96xf32>
    %238 = tpu.matmul %235, %237, %cst_96 {dimension_numbers = #tpu.dot_dimension_numbers<[1], [0], [0], [1], [0, 0, 1, 1], [], []>} : vector<8x32xbf16>, vector<32x96xbf16>, vector<8x96xf32> -> vector<8x96xf32>
    %c1_97 = arith.constant 1 : index
    %c0_98 = arith.constant 0 : index
    %c0_99 = arith.constant 0 : index
    %239 = vector.load %arg7[%c1_97, %c0_98, %c0_99] : memref<4x1x96xf32, #tpu.memory_space<vmem>>, vector<1x1x96xf32>
    %240 = vector.shape_cast %239 : vector<1x1x96xf32> to vector<1x96xf32>
    %241 = vector.broadcast %240 : vector<1x96xf32> to vector<8x96xf32>
    %242 = arith.addf %238, %241 : vector<8x96xf32>
    %243 = vector.extract_strided_slice %242 {offsets = [0, 0], sizes = [8, 8], strides = [1, 1]} : vector<8x96xf32> to vector<8x8xf32>
    %244 = arith.truncf %243 : vector<8x8xf32> to vector<8x8xbf16>
    %245 = vector.extract_strided_slice %242 {offsets = [0, 32], sizes = [8, 8], strides = [1, 1]} : vector<8x96xf32> to vector<8x8xf32>
    %246 = arith.truncf %245 : vector<8x8xf32> to vector<8x8xbf16>
    %247 = vector.extract_strided_slice %242 {offsets = [0, 64], sizes = [8, 8], strides = [1, 1]} : vector<8x96xf32> to vector<8x8xf32>
    %248 = arith.truncf %247 : vector<8x8xf32> to vector<8x8xbf16>
    %249 = tpu.transpose %246, [1, 0] : vector<8x8xbf16> -> vector<8x8xbf16>
    %cst_100 = arith.constant dense<0.000000e+00> : vector<8x8xf32>
    %250 = tpu.matmul %244, %249, %cst_100 {dimension_numbers = #tpu.dot_dimension_numbers<[1], [0], [0], [1], [0, 0, 1, 1], [], []>} : vector<8x8xbf16>, vector<8x8xbf16>, vector<8x8xf32> -> vector<8x8xf32>
    %cst_101 = arith.constant 0.353553385 : f32
    %251 = vector.broadcast %cst_101 : f32 to vector<8x8xf32>
    %252 = arith.mulf %250, %251 : vector<8x8xf32>
    %cst_102 = arith.constant -3.40282347E+38 : f32
    %253 = vector.broadcast %cst_102 : f32 to vector<8x8xf32>
    %254 = arith.select %12, %252, %253 : vector<8x8xi1>, vector<8x8xf32>
    %cst_103 = arith.constant dense<0xFF800000> : vector<8xf32>
    %255 = vector.multi_reduction <maximumf>, %254, %cst_103 [1] : vector<8x8xf32> to vector<8xf32>
    %256 = vector.shape_cast %255 : vector<8xf32> to vector<8x1xf32>
    %257 = vector.broadcast %256 : vector<8x1xf32> to vector<8x8xf32>
    %258 = arith.subf %254, %257 : vector<8x8xf32>
    %259 = math.exp %258 : vector<8x8xf32>
    %cst_104 = arith.constant dense<0.000000e+00> : vector<8xf32>
    %260 = vector.multi_reduction <add>, %259, %cst_104 [1] : vector<8x8xf32> to vector<8xf32>
    %261 = vector.shape_cast %260 : vector<8xf32> to vector<8x1xf32>
    %262 = tpu.reciprocal %261 : vector<8x1xf32> -> vector<8x1xf32>
    %263 = vector.broadcast %262 : vector<8x1xf32> to vector<8x8xf32>
    %264 = arith.mulf %259, %263 : vector<8x8xf32>
    %265 = arith.truncf %264 : vector<8x8xf32> to vector<8x8xbf16>
    %cst_105 = arith.constant dense<0.000000e+00> : vector<8x8xf32>
    %266 = tpu.matmul %265, %248, %cst_105 {dimension_numbers = #tpu.dot_dimension_numbers<[1], [0], [0], [1], [0, 0, 1, 1], [], []>} : vector<8x8xbf16>, vector<8x8xbf16>, vector<8x8xf32> -> vector<8x8xf32>
    %267 = vector.extract_strided_slice %242 {offsets = [0, 8], sizes = [8, 8], strides = [1, 1]} : vector<8x96xf32> to vector<8x8xf32>
    %268 = arith.truncf %267 : vector<8x8xf32> to vector<8x8xbf16>
    %269 = vector.extract_strided_slice %242 {offsets = [0, 40], sizes = [8, 8], strides = [1, 1]} : vector<8x96xf32> to vector<8x8xf32>
    %270 = arith.truncf %269 : vector<8x8xf32> to vector<8x8xbf16>
    %271 = vector.extract_strided_slice %242 {offsets = [0, 72], sizes = [8, 8], strides = [1, 1]} : vector<8x96xf32> to vector<8x8xf32>
    %272 = arith.truncf %271 : vector<8x8xf32> to vector<8x8xbf16>
    %273 = tpu.transpose %270, [1, 0] : vector<8x8xbf16> -> vector<8x8xbf16>
    %cst_106 = arith.constant dense<0.000000e+00> : vector<8x8xf32>
    %274 = tpu.matmul %268, %273, %cst_106 {dimension_numbers = #tpu.dot_dimension_numbers<[1], [0], [0], [1], [0, 0, 1, 1], [], []>} : vector<8x8xbf16>, vector<8x8xbf16>, vector<8x8xf32> -> vector<8x8xf32>
    %cst_107 = arith.constant 0.353553385 : f32
    %275 = vector.broadcast %cst_107 : f32 to vector<8x8xf32>
    %276 = arith.mulf %274, %275 : vector<8x8xf32>
    %cst_108 = arith.constant -3.40282347E+38 : f32
    %277 = vector.broadcast %cst_108 : f32 to vector<8x8xf32>
    %278 = arith.select %12, %276, %277 : vector<8x8xi1>, vector<8x8xf32>
    %cst_109 = arith.constant dense<0xFF800000> : vector<8xf32>
    %279 = vector.multi_reduction <maximumf>, %278, %cst_109 [1] : vector<8x8xf32> to vector<8xf32>
    %280 = vector.shape_cast %279 : vector<8xf32> to vector<8x1xf32>
    %281 = vector.broadcast %280 : vector<8x1xf32> to vector<8x8xf32>
    %282 = arith.subf %278, %281 : vector<8x8xf32>
    %283 = math.exp %282 : vector<8x8xf32>
    %cst_110 = arith.constant dense<0.000000e+00> : vector<8xf32>
    %284 = vector.multi_reduction <add>, %283, %cst_110 [1] : vector<8x8xf32> to vector<8xf32>
    %285 = vector.shape_cast %284 : vector<8xf32> to vector<8x1xf32>
    %286 = tpu.reciprocal %285 : vector<8x1xf32> -> vector<8x1xf32>
    %287 = vector.broadcast %286 : vector<8x1xf32> to vector<8x8xf32>
    %288 = arith.mulf %283, %287 : vector<8x8xf32>
    %289 = arith.truncf %288 : vector<8x8xf32> to vector<8x8xbf16>
    %cst_111 = arith.constant dense<0.000000e+00> : vector<8x8xf32>
    %290 = tpu.matmul %289, %272, %cst_111 {dimension_numbers = #tpu.dot_dimension_numbers<[1], [0], [0], [1], [0, 0, 1, 1], [], []>} : vector<8x8xbf16>, vector<8x8xbf16>, vector<8x8xf32> -> vector<8x8xf32>
    %291 = vector.extract_strided_slice %242 {offsets = [0, 16], sizes = [8, 8], strides = [1, 1]} : vector<8x96xf32> to vector<8x8xf32>
    %292 = arith.truncf %291 : vector<8x8xf32> to vector<8x8xbf16>
    %293 = vector.extract_strided_slice %242 {offsets = [0, 48], sizes = [8, 8], strides = [1, 1]} : vector<8x96xf32> to vector<8x8xf32>
    %294 = arith.truncf %293 : vector<8x8xf32> to vector<8x8xbf16>
    %295 = vector.extract_strided_slice %242 {offsets = [0, 80], sizes = [8, 8], strides = [1, 1]} : vector<8x96xf32> to vector<8x8xf32>
    %296 = arith.truncf %295 : vector<8x8xf32> to vector<8x8xbf16>
    %297 = tpu.transpose %294, [1, 0] : vector<8x8xbf16> -> vector<8x8xbf16>
    %cst_112 = arith.constant dense<0.000000e+00> : vector<8x8xf32>
    %298 = tpu.matmul %292, %297, %cst_112 {dimension_numbers = #tpu.dot_dimension_numbers<[1], [0], [0], [1], [0, 0, 1, 1], [], []>} : vector<8x8xbf16>, vector<8x8xbf16>, vector<8x8xf32> -> vector<8x8xf32>
    %cst_113 = arith.constant 0.353553385 : f32
    %299 = vector.broadcast %cst_113 : f32 to vector<8x8xf32>
    %300 = arith.mulf %298, %299 : vector<8x8xf32>
    %cst_114 = arith.constant -3.40282347E+38 : f32
    %301 = vector.broadcast %cst_114 : f32 to vector<8x8xf32>
    %302 = arith.select %12, %300, %301 : vector<8x8xi1>, vector<8x8xf32>
    %cst_115 = arith.constant dense<0xFF800000> : vector<8xf32>
    %303 = vector.multi_reduction <maximumf>, %302, %cst_115 [1] : vector<8x8xf32> to vector<8xf32>
    %304 = vector.shape_cast %303 : vector<8xf32> to vector<8x1xf32>
    %305 = vector.broadcast %304 : vector<8x1xf32> to vector<8x8xf32>
    %306 = arith.subf %302, %305 : vector<8x8xf32>
    %307 = math.exp %306 : vector<8x8xf32>
    %cst_116 = arith.constant dense<0.000000e+00> : vector<8xf32>
    %308 = vector.multi_reduction <add>, %307, %cst_116 [1] : vector<8x8xf32> to vector<8xf32>
    %309 = vector.shape_cast %308 : vector<8xf32> to vector<8x1xf32>
    %310 = tpu.reciprocal %309 : vector<8x1xf32> -> vector<8x1xf32>
    %311 = vector.broadcast %310 : vector<8x1xf32> to vector<8x8xf32>
    %312 = arith.mulf %307, %311 : vector<8x8xf32>
    %313 = arith.truncf %312 : vector<8x8xf32> to vector<8x8xbf16>
    %cst_117 = arith.constant dense<0.000000e+00> : vector<8x8xf32>
    %314 = tpu.matmul %313, %296, %cst_117 {dimension_numbers = #tpu.dot_dimension_numbers<[1], [0], [0], [1], [0, 0, 1, 1], [], []>} : vector<8x8xbf16>, vector<8x8xbf16>, vector<8x8xf32> -> vector<8x8xf32>
    %315 = vector.extract_strided_slice %242 {offsets = [0, 24], sizes = [8, 8], strides = [1, 1]} : vector<8x96xf32> to vector<8x8xf32>
    %316 = arith.truncf %315 : vector<8x8xf32> to vector<8x8xbf16>
    %317 = vector.extract_strided_slice %242 {offsets = [0, 56], sizes = [8, 8], strides = [1, 1]} : vector<8x96xf32> to vector<8x8xf32>
    %318 = arith.truncf %317 : vector<8x8xf32> to vector<8x8xbf16>
    %319 = vector.extract_strided_slice %242 {offsets = [0, 88], sizes = [8, 8], strides = [1, 1]} : vector<8x96xf32> to vector<8x8xf32>
    %320 = arith.truncf %319 : vector<8x8xf32> to vector<8x8xbf16>
    %321 = tpu.transpose %318, [1, 0] : vector<8x8xbf16> -> vector<8x8xbf16>
    %cst_118 = arith.constant dense<0.000000e+00> : vector<8x8xf32>
    %322 = tpu.matmul %316, %321, %cst_118 {dimension_numbers = #tpu.dot_dimension_numbers<[1], [0], [0], [1], [0, 0, 1, 1], [], []>} : vector<8x8xbf16>, vector<8x8xbf16>, vector<8x8xf32> -> vector<8x8xf32>
    %cst_119 = arith.constant 0.353553385 : f32
    %323 = vector.broadcast %cst_119 : f32 to vector<8x8xf32>
    %324 = arith.mulf %322, %323 : vector<8x8xf32>
    %cst_120 = arith.constant -3.40282347E+38 : f32
    %325 = vector.broadcast %cst_120 : f32 to vector<8x8xf32>
    %326 = arith.select %12, %324, %325 : vector<8x8xi1>, vector<8x8xf32>
    %cst_121 = arith.constant dense<0xFF800000> : vector<8xf32>
    %327 = vector.multi_reduction <maximumf>, %326, %cst_121 [1] : vector<8x8xf32> to vector<8xf32>
    %328 = vector.shape_cast %327 : vector<8xf32> to vector<8x1xf32>
    %329 = vector.broadcast %328 : vector<8x1xf32> to vector<8x8xf32>
    %330 = arith.subf %326, %329 : vector<8x8xf32>
    %331 = math.exp %330 : vector<8x8xf32>
    %cst_122 = arith.constant dense<0.000000e+00> : vector<8xf32>
    %332 = vector.multi_reduction <add>, %331, %cst_122 [1] : vector<8x8xf32> to vector<8xf32>
    %333 = vector.shape_cast %332 : vector<8xf32> to vector<8x1xf32>
    %334 = tpu.reciprocal %333 : vector<8x1xf32> -> vector<8x1xf32>
    %335 = vector.broadcast %334 : vector<8x1xf32> to vector<8x8xf32>
    %336 = arith.mulf %331, %335 : vector<8x8xf32>
    %337 = arith.truncf %336 : vector<8x8xf32> to vector<8x8xbf16>
    %cst_123 = arith.constant dense<0.000000e+00> : vector<8x8xf32>
    %338 = tpu.matmul %337, %320, %cst_123 {dimension_numbers = #tpu.dot_dimension_numbers<[1], [0], [0], [1], [0, 0, 1, 1], [], []>} : vector<8x8xbf16>, vector<8x8xbf16>, vector<8x8xf32> -> vector<8x8xf32>
    %339 = tpu.concatenate %266, %290, %314, %338 in 1 : vector<8x8xf32>, vector<8x8xf32>, vector<8x8xf32>, vector<8x8xf32> -> vector<8x32xf32>
    %340 = arith.truncf %339 : vector<8x32xf32> to vector<8x32xbf16>
    %c1_124 = arith.constant 1 : index
    %c0_125 = arith.constant 0 : index
    %c0_126 = arith.constant 0 : index
    %341 = vector.load %arg8[%c1_124, %c0_125, %c0_126] : memref<4x32x32xbf16, #tpu.memory_space<vmem>>, vector<1x32x32xbf16>
    %342 = vector.shape_cast %341 : vector<1x32x32xbf16> to vector<32x32xbf16>
    %cst_127 = arith.constant dense<0.000000e+00> : vector<8x32xf32>
    %343 = tpu.matmul %340, %342, %cst_127 {dimension_numbers = #tpu.dot_dimension_numbers<[1], [0], [0], [1], [0, 0, 1, 1], [], []>} : vector<8x32xbf16>, vector<32x32xbf16>, vector<8x32xf32> -> vector<8x32xf32>
    %344 = arith.addf %208, %343 : vector<8x32xf32>
    %c1_128 = arith.constant 1 : index
    %c0_129 = arith.constant 0 : index
    %c0_130 = arith.constant 0 : index
    %345 = vector.load %arg9[%c1_128, %c0_129, %c0_130] : memref<4x1x32xf32, #tpu.memory_space<vmem>>, vector<1x1x32xf32>
    %346 = vector.shape_cast %345 : vector<1x1x32xf32> to vector<1x32xf32>
    %347 = vector.broadcast %346 : vector<1x32xf32> to vector<8x32xf32>
    %348 = arith.addf %344, %347 : vector<8x32xf32>
    %c1_131 = arith.constant 1 : index
    %c0_132 = arith.constant 0 : index
    %c0_133 = arith.constant 0 : index
    %349 = vector.load %arg10[%c1_131, %c0_132, %c0_133] : memref<4x1x32xf32, #tpu.memory_space<vmem>>, vector<1x1x32xf32>
    %350 = vector.shape_cast %349 : vector<1x1x32xf32> to vector<1x32xf32>
    %c1_134 = arith.constant 1 : index
    %c0_135 = arith.constant 0 : index
    %c0_136 = arith.constant 0 : index
    %351 = vector.load %arg11[%c1_134, %c0_135, %c0_136] : memref<4x1x32xf32, #tpu.memory_space<vmem>>, vector<1x1x32xf32>
    %352 = vector.shape_cast %351 : vector<1x1x32xf32> to vector<1x32xf32>
    %cst_137 = arith.constant dense<0.000000e+00> : vector<8xf32>
    %353 = vector.multi_reduction <add>, %348, %cst_137 [1] : vector<8x32xf32> to vector<8xf32>
    %354 = vector.shape_cast %353 : vector<8xf32> to vector<8x1xf32>
    %cst_138 = arith.constant 3.200000e+01 : f32
    %355 = vector.broadcast %cst_138 : f32 to vector<8x1xf32>
    %356 = arith.divf %354, %355 : vector<8x1xf32>
    %357 = vector.broadcast %356 : vector<8x1xf32> to vector<8x32xf32>
    %358 = arith.subf %348, %357 : vector<8x32xf32>
    %359 = arith.mulf %358, %358 : vector<8x32xf32>
    %cst_139 = arith.constant dense<0.000000e+00> : vector<8xf32>
    %360 = vector.multi_reduction <add>, %359, %cst_139 [1] : vector<8x32xf32> to vector<8xf32>
    %361 = vector.shape_cast %360 : vector<8xf32> to vector<8x1xf32>
    %cst_140 = arith.constant 3.200000e+01 : f32
    %362 = vector.broadcast %cst_140 : f32 to vector<8x1xf32>
    %363 = arith.divf %361, %362 : vector<8x1xf32>
    %364 = vector.broadcast %356 : vector<8x1xf32> to vector<8x32xf32>
    %365 = arith.subf %348, %364 : vector<8x32xf32>
    %cst_141 = arith.constant 9.99999974E-6 : f32
    %366 = vector.broadcast %cst_141 : f32 to vector<8x1xf32>
    %367 = arith.addf %363, %366 : vector<8x1xf32>
    %368 = math.rsqrt %367 : vector<8x1xf32>
    %369 = vector.broadcast %368 : vector<8x1xf32> to vector<8x32xf32>
    %370 = arith.mulf %365, %369 : vector<8x32xf32>
    %371 = vector.broadcast %350 : vector<1x32xf32> to vector<8x32xf32>
    %372 = arith.mulf %370, %371 : vector<8x32xf32>
    %373 = vector.broadcast %352 : vector<1x32xf32> to vector<8x32xf32>
    %374 = arith.addf %372, %373 : vector<8x32xf32>
    %375 = arith.truncf %374 : vector<8x32xf32> to vector<8x32xbf16>
    %c1_142 = arith.constant 1 : index
    %c0_143 = arith.constant 0 : index
    %c0_144 = arith.constant 0 : index
    %376 = vector.load %arg12[%c1_142, %c0_143, %c0_144] : memref<4x32x128xbf16, #tpu.memory_space<vmem>>, vector<1x32x128xbf16>
    %377 = vector.shape_cast %376 : vector<1x32x128xbf16> to vector<32x128xbf16>
    %cst_145 = arith.constant dense<0.000000e+00> : vector<8x128xf32>
    %378 = tpu.matmul %375, %377, %cst_145 {dimension_numbers = #tpu.dot_dimension_numbers<[1], [0], [0], [1], [0, 0, 1, 1], [], []>} : vector<8x32xbf16>, vector<32x128xbf16>, vector<8x128xf32> -> vector<8x128xf32>
    %c1_146 = arith.constant 1 : index
    %c0_147 = arith.constant 0 : index
    %c0_148 = arith.constant 0 : index
    %379 = vector.load %arg13[%c1_146, %c0_147, %c0_148] : memref<4x1x128xf32, #tpu.memory_space<vmem>>, vector<1x1x128xf32>
    %380 = vector.shape_cast %379 : vector<1x1x128xf32> to vector<1x128xf32>
    %381 = vector.broadcast %380 : vector<1x128xf32> to vector<8x128xf32>
    %382 = arith.addf %378, %381 : vector<8x128xf32>
    %cst_149 = arith.constant 5.000000e-01 : f32
    %383 = vector.broadcast %cst_149 : f32 to vector<8x128xf32>
    %384 = arith.mulf %383, %382 : vector<8x128xf32>
    %cst_150 = arith.constant 4.471500e-02 : f32
    %385 = vector.broadcast %cst_150 : f32 to vector<8x128xf32>
    %386 = arith.mulf %385, %382 : vector<8x128xf32>
    %387 = arith.mulf %386, %382 : vector<8x128xf32>
    %388 = arith.mulf %387, %382 : vector<8x128xf32>
    %389 = arith.addf %382, %388 : vector<8x128xf32>
    %cst_151 = arith.constant 0.797884583 : f32
    %390 = vector.broadcast %cst_151 : f32 to vector<8x128xf32>
    %391 = arith.mulf %390, %389 : vector<8x128xf32>
    %392 = math.tanh %391 : vector<8x128xf32>
    %cst_152 = arith.constant 1.000000e+00 : f32
    %393 = vector.broadcast %cst_152 : f32 to vector<8x128xf32>
    %394 = arith.addf %393, %392 : vector<8x128xf32>
    %395 = arith.mulf %384, %394 : vector<8x128xf32>
    %396 = arith.truncf %395 : vector<8x128xf32> to vector<8x128xbf16>
    %c1_153 = arith.constant 1 : index
    %c0_154 = arith.constant 0 : index
    %c0_155 = arith.constant 0 : index
    %397 = vector.load %arg14[%c1_153, %c0_154, %c0_155] : memref<4x128x32xbf16, #tpu.memory_space<vmem>>, vector<1x128x32xbf16>
    %398 = vector.shape_cast %397 : vector<1x128x32xbf16> to vector<128x32xbf16>
    %cst_156 = arith.constant dense<0.000000e+00> : vector<8x32xf32>
    %399 = tpu.matmul %396, %398, %cst_156 {dimension_numbers = #tpu.dot_dimension_numbers<[1], [0], [0], [1], [0, 0, 1, 1], [], []>} : vector<8x128xbf16>, vector<128x32xbf16>, vector<8x32xf32> -> vector<8x32xf32>
    %400 = arith.addf %348, %399 : vector<8x32xf32>
    %c1_157 = arith.constant 1 : index
    %c0_158 = arith.constant 0 : index
    %c0_159 = arith.constant 0 : index
    %401 = vector.load %arg15[%c1_157, %c0_158, %c0_159] : memref<4x1x32xf32, #tpu.memory_space<vmem>>, vector<1x1x32xf32>
    %402 = vector.shape_cast %401 : vector<1x1x32xf32> to vector<1x32xf32>
    %403 = vector.broadcast %402 : vector<1x32xf32> to vector<8x32xf32>
    %404 = arith.addf %400, %403 : vector<8x32xf32>
    %c2 = arith.constant 2 : index
    %c0_160 = arith.constant 0 : index
    %c0_161 = arith.constant 0 : index
    %405 = vector.load %arg4[%c2, %c0_160, %c0_161] : memref<4x1x32xf32, #tpu.memory_space<vmem>>, vector<1x1x32xf32>
    %406 = vector.shape_cast %405 : vector<1x1x32xf32> to vector<1x32xf32>
    %c2_162 = arith.constant 2 : index
    %c0_163 = arith.constant 0 : index
    %c0_164 = arith.constant 0 : index
    %407 = vector.load %arg5[%c2_162, %c0_163, %c0_164] : memref<4x1x32xf32, #tpu.memory_space<vmem>>, vector<1x1x32xf32>
    %408 = vector.shape_cast %407 : vector<1x1x32xf32> to vector<1x32xf32>
    %cst_165 = arith.constant dense<0.000000e+00> : vector<8xf32>
    %409 = vector.multi_reduction <add>, %404, %cst_165 [1] : vector<8x32xf32> to vector<8xf32>
    %410 = vector.shape_cast %409 : vector<8xf32> to vector<8x1xf32>
    %cst_166 = arith.constant 3.200000e+01 : f32
    %411 = vector.broadcast %cst_166 : f32 to vector<8x1xf32>
    %412 = arith.divf %410, %411 : vector<8x1xf32>
    %413 = vector.broadcast %412 : vector<8x1xf32> to vector<8x32xf32>
    %414 = arith.subf %404, %413 : vector<8x32xf32>
    %415 = arith.mulf %414, %414 : vector<8x32xf32>
    %cst_167 = arith.constant dense<0.000000e+00> : vector<8xf32>
    %416 = vector.multi_reduction <add>, %415, %cst_167 [1] : vector<8x32xf32> to vector<8xf32>
    %417 = vector.shape_cast %416 : vector<8xf32> to vector<8x1xf32>
    %cst_168 = arith.constant 3.200000e+01 : f32
    %418 = vector.broadcast %cst_168 : f32 to vector<8x1xf32>
    %419 = arith.divf %417, %418 : vector<8x1xf32>
    %420 = vector.broadcast %412 : vector<8x1xf32> to vector<8x32xf32>
    %421 = arith.subf %404, %420 : vector<8x32xf32>
    %cst_169 = arith.constant 9.99999974E-6 : f32
    %422 = vector.broadcast %cst_169 : f32 to vector<8x1xf32>
    %423 = arith.addf %419, %422 : vector<8x1xf32>
    %424 = math.rsqrt %423 : vector<8x1xf32>
    %425 = vector.broadcast %424 : vector<8x1xf32> to vector<8x32xf32>
    %426 = arith.mulf %421, %425 : vector<8x32xf32>
    %427 = vector.broadcast %406 : vector<1x32xf32> to vector<8x32xf32>
    %428 = arith.mulf %426, %427 : vector<8x32xf32>
    %429 = vector.broadcast %408 : vector<1x32xf32> to vector<8x32xf32>
    %430 = arith.addf %428, %429 : vector<8x32xf32>
    %431 = arith.truncf %430 : vector<8x32xf32> to vector<8x32xbf16>
    %c2_170 = arith.constant 2 : index
    %c0_171 = arith.constant 0 : index
    %c0_172 = arith.constant 0 : index
    %432 = vector.load %arg6[%c2_170, %c0_171, %c0_172] : memref<4x32x96xbf16, #tpu.memory_space<vmem>>, vector<1x32x96xbf16>
    %433 = vector.shape_cast %432 : vector<1x32x96xbf16> to vector<32x96xbf16>
    %cst_173 = arith.constant dense<0.000000e+00> : vector<8x96xf32>
    %434 = tpu.matmul %431, %433, %cst_173 {dimension_numbers = #tpu.dot_dimension_numbers<[1], [0], [0], [1], [0, 0, 1, 1], [], []>} : vector<8x32xbf16>, vector<32x96xbf16>, vector<8x96xf32> -> vector<8x96xf32>
    %c2_174 = arith.constant 2 : index
    %c0_175 = arith.constant 0 : index
    %c0_176 = arith.constant 0 : index
    %435 = vector.load %arg7[%c2_174, %c0_175, %c0_176] : memref<4x1x96xf32, #tpu.memory_space<vmem>>, vector<1x1x96xf32>
    %436 = vector.shape_cast %435 : vector<1x1x96xf32> to vector<1x96xf32>
    %437 = vector.broadcast %436 : vector<1x96xf32> to vector<8x96xf32>
    %438 = arith.addf %434, %437 : vector<8x96xf32>
    %439 = vector.extract_strided_slice %438 {offsets = [0, 0], sizes = [8, 8], strides = [1, 1]} : vector<8x96xf32> to vector<8x8xf32>
    %440 = arith.truncf %439 : vector<8x8xf32> to vector<8x8xbf16>
    %441 = vector.extract_strided_slice %438 {offsets = [0, 32], sizes = [8, 8], strides = [1, 1]} : vector<8x96xf32> to vector<8x8xf32>
    %442 = arith.truncf %441 : vector<8x8xf32> to vector<8x8xbf16>
    %443 = vector.extract_strided_slice %438 {offsets = [0, 64], sizes = [8, 8], strides = [1, 1]} : vector<8x96xf32> to vector<8x8xf32>
    %444 = arith.truncf %443 : vector<8x8xf32> to vector<8x8xbf16>
    %445 = tpu.transpose %442, [1, 0] : vector<8x8xbf16> -> vector<8x8xbf16>
    %cst_177 = arith.constant dense<0.000000e+00> : vector<8x8xf32>
    %446 = tpu.matmul %440, %445, %cst_177 {dimension_numbers = #tpu.dot_dimension_numbers<[1], [0], [0], [1], [0, 0, 1, 1], [], []>} : vector<8x8xbf16>, vector<8x8xbf16>, vector<8x8xf32> -> vector<8x8xf32>
    %cst_178 = arith.constant 0.353553385 : f32
    %447 = vector.broadcast %cst_178 : f32 to vector<8x8xf32>
    %448 = arith.mulf %446, %447 : vector<8x8xf32>
    %cst_179 = arith.constant -3.40282347E+38 : f32
    %449 = vector.broadcast %cst_179 : f32 to vector<8x8xf32>
    %450 = arith.select %12, %448, %449 : vector<8x8xi1>, vector<8x8xf32>
    %cst_180 = arith.constant dense<0xFF800000> : vector<8xf32>
    %451 = vector.multi_reduction <maximumf>, %450, %cst_180 [1] : vector<8x8xf32> to vector<8xf32>
    %452 = vector.shape_cast %451 : vector<8xf32> to vector<8x1xf32>
    %453 = vector.broadcast %452 : vector<8x1xf32> to vector<8x8xf32>
    %454 = arith.subf %450, %453 : vector<8x8xf32>
    %455 = math.exp %454 : vector<8x8xf32>
    %cst_181 = arith.constant dense<0.000000e+00> : vector<8xf32>
    %456 = vector.multi_reduction <add>, %455, %cst_181 [1] : vector<8x8xf32> to vector<8xf32>
    %457 = vector.shape_cast %456 : vector<8xf32> to vector<8x1xf32>
    %458 = tpu.reciprocal %457 : vector<8x1xf32> -> vector<8x1xf32>
    %459 = vector.broadcast %458 : vector<8x1xf32> to vector<8x8xf32>
    %460 = arith.mulf %455, %459 : vector<8x8xf32>
    %461 = arith.truncf %460 : vector<8x8xf32> to vector<8x8xbf16>
    %cst_182 = arith.constant dense<0.000000e+00> : vector<8x8xf32>
    %462 = tpu.matmul %461, %444, %cst_182 {dimension_numbers = #tpu.dot_dimension_numbers<[1], [0], [0], [1], [0, 0, 1, 1], [], []>} : vector<8x8xbf16>, vector<8x8xbf16>, vector<8x8xf32> -> vector<8x8xf32>
    %463 = vector.extract_strided_slice %438 {offsets = [0, 8], sizes = [8, 8], strides = [1, 1]} : vector<8x96xf32> to vector<8x8xf32>
    %464 = arith.truncf %463 : vector<8x8xf32> to vector<8x8xbf16>
    %465 = vector.extract_strided_slice %438 {offsets = [0, 40], sizes = [8, 8], strides = [1, 1]} : vector<8x96xf32> to vector<8x8xf32>
    %466 = arith.truncf %465 : vector<8x8xf32> to vector<8x8xbf16>
    %467 = vector.extract_strided_slice %438 {offsets = [0, 72], sizes = [8, 8], strides = [1, 1]} : vector<8x96xf32> to vector<8x8xf32>
    %468 = arith.truncf %467 : vector<8x8xf32> to vector<8x8xbf16>
    %469 = tpu.transpose %466, [1, 0] : vector<8x8xbf16> -> vector<8x8xbf16>
    %cst_183 = arith.constant dense<0.000000e+00> : vector<8x8xf32>
    %470 = tpu.matmul %464, %469, %cst_183 {dimension_numbers = #tpu.dot_dimension_numbers<[1], [0], [0], [1], [0, 0, 1, 1], [], []>} : vector<8x8xbf16>, vector<8x8xbf16>, vector<8x8xf32> -> vector<8x8xf32>
    %cst_184 = arith.constant 0.353553385 : f32
    %471 = vector.broadcast %cst_184 : f32 to vector<8x8xf32>
    %472 = arith.mulf %470, %471 : vector<8x8xf32>
    %cst_185 = arith.constant -3.40282347E+38 : f32
    %473 = vector.broadcast %cst_185 : f32 to vector<8x8xf32>
    %474 = arith.select %12, %472, %473 : vector<8x8xi1>, vector<8x8xf32>
    %cst_186 = arith.constant dense<0xFF800000> : vector<8xf32>
    %475 = vector.multi_reduction <maximumf>, %474, %cst_186 [1] : vector<8x8xf32> to vector<8xf32>
    %476 = vector.shape_cast %475 : vector<8xf32> to vector<8x1xf32>
    %477 = vector.broadcast %476 : vector<8x1xf32> to vector<8x8xf32>
    %478 = arith.subf %474, %477 : vector<8x8xf32>
    %479 = math.exp %478 : vector<8x8xf32>
    %cst_187 = arith.constant dense<0.000000e+00> : vector<8xf32>
    %480 = vector.multi_reduction <add>, %479, %cst_187 [1] : vector<8x8xf32> to vector<8xf32>
    %481 = vector.shape_cast %480 : vector<8xf32> to vector<8x1xf32>
    %482 = tpu.reciprocal %481 : vector<8x1xf32> -> vector<8x1xf32>
    %483 = vector.broadcast %482 : vector<8x1xf32> to vector<8x8xf32>
    %484 = arith.mulf %479, %483 : vector<8x8xf32>
    %485 = arith.truncf %484 : vector<8x8xf32> to vector<8x8xbf16>
    %cst_188 = arith.constant dense<0.000000e+00> : vector<8x8xf32>
    %486 = tpu.matmul %485, %468, %cst_188 {dimension_numbers = #tpu.dot_dimension_numbers<[1], [0], [0], [1], [0, 0, 1, 1], [], []>} : vector<8x8xbf16>, vector<8x8xbf16>, vector<8x8xf32> -> vector<8x8xf32>
    %487 = vector.extract_strided_slice %438 {offsets = [0, 16], sizes = [8, 8], strides = [1, 1]} : vector<8x96xf32> to vector<8x8xf32>
    %488 = arith.truncf %487 : vector<8x8xf32> to vector<8x8xbf16>
    %489 = vector.extract_strided_slice %438 {offsets = [0, 48], sizes = [8, 8], strides = [1, 1]} : vector<8x96xf32> to vector<8x8xf32>
    %490 = arith.truncf %489 : vector<8x8xf32> to vector<8x8xbf16>
    %491 = vector.extract_strided_slice %438 {offsets = [0, 80], sizes = [8, 8], strides = [1, 1]} : vector<8x96xf32> to vector<8x8xf32>
    %492 = arith.truncf %491 : vector<8x8xf32> to vector<8x8xbf16>
    %493 = tpu.transpose %490, [1, 0] : vector<8x8xbf16> -> vector<8x8xbf16>
    %cst_189 = arith.constant dense<0.000000e+00> : vector<8x8xf32>
    %494 = tpu.matmul %488, %493, %cst_189 {dimension_numbers = #tpu.dot_dimension_numbers<[1], [0], [0], [1], [0, 0, 1, 1], [], []>} : vector<8x8xbf16>, vector<8x8xbf16>, vector<8x8xf32> -> vector<8x8xf32>
    %cst_190 = arith.constant 0.353553385 : f32
    %495 = vector.broadcast %cst_190 : f32 to vector<8x8xf32>
    %496 = arith.mulf %494, %495 : vector<8x8xf32>
    %cst_191 = arith.constant -3.40282347E+38 : f32
    %497 = vector.broadcast %cst_191 : f32 to vector<8x8xf32>
    %498 = arith.select %12, %496, %497 : vector<8x8xi1>, vector<8x8xf32>
    %cst_192 = arith.constant dense<0xFF800000> : vector<8xf32>
    %499 = vector.multi_reduction <maximumf>, %498, %cst_192 [1] : vector<8x8xf32> to vector<8xf32>
    %500 = vector.shape_cast %499 : vector<8xf32> to vector<8x1xf32>
    %501 = vector.broadcast %500 : vector<8x1xf32> to vector<8x8xf32>
    %502 = arith.subf %498, %501 : vector<8x8xf32>
    %503 = math.exp %502 : vector<8x8xf32>
    %cst_193 = arith.constant dense<0.000000e+00> : vector<8xf32>
    %504 = vector.multi_reduction <add>, %503, %cst_193 [1] : vector<8x8xf32> to vector<8xf32>
    %505 = vector.shape_cast %504 : vector<8xf32> to vector<8x1xf32>
    %506 = tpu.reciprocal %505 : vector<8x1xf32> -> vector<8x1xf32>
    %507 = vector.broadcast %506 : vector<8x1xf32> to vector<8x8xf32>
    %508 = arith.mulf %503, %507 : vector<8x8xf32>
    %509 = arith.truncf %508 : vector<8x8xf32> to vector<8x8xbf16>
    %cst_194 = arith.constant dense<0.000000e+00> : vector<8x8xf32>
    %510 = tpu.matmul %509, %492, %cst_194 {dimension_numbers = #tpu.dot_dimension_numbers<[1], [0], [0], [1], [0, 0, 1, 1], [], []>} : vector<8x8xbf16>, vector<8x8xbf16>, vector<8x8xf32> -> vector<8x8xf32>
    %511 = vector.extract_strided_slice %438 {offsets = [0, 24], sizes = [8, 8], strides = [1, 1]} : vector<8x96xf32> to vector<8x8xf32>
    %512 = arith.truncf %511 : vector<8x8xf32> to vector<8x8xbf16>
    %513 = vector.extract_strided_slice %438 {offsets = [0, 56], sizes = [8, 8], strides = [1, 1]} : vector<8x96xf32> to vector<8x8xf32>
    %514 = arith.truncf %513 : vector<8x8xf32> to vector<8x8xbf16>
    %515 = vector.extract_strided_slice %438 {offsets = [0, 88], sizes = [8, 8], strides = [1, 1]} : vector<8x96xf32> to vector<8x8xf32>
    %516 = arith.truncf %515 : vector<8x8xf32> to vector<8x8xbf16>
    %517 = tpu.transpose %514, [1, 0] : vector<8x8xbf16> -> vector<8x8xbf16>
    %cst_195 = arith.constant dense<0.000000e+00> : vector<8x8xf32>
    %518 = tpu.matmul %512, %517, %cst_195 {dimension_numbers = #tpu.dot_dimension_numbers<[1], [0], [0], [1], [0, 0, 1, 1], [], []>} : vector<8x8xbf16>, vector<8x8xbf16>, vector<8x8xf32> -> vector<8x8xf32>
    %cst_196 = arith.constant 0.353553385 : f32
    %519 = vector.broadcast %cst_196 : f32 to vector<8x8xf32>
    %520 = arith.mulf %518, %519 : vector<8x8xf32>
    %cst_197 = arith.constant -3.40282347E+38 : f32
    %521 = vector.broadcast %cst_197 : f32 to vector<8x8xf32>
    %522 = arith.select %12, %520, %521 : vector<8x8xi1>, vector<8x8xf32>
    %cst_198 = arith.constant dense<0xFF800000> : vector<8xf32>
    %523 = vector.multi_reduction <maximumf>, %522, %cst_198 [1] : vector<8x8xf32> to vector<8xf32>
    %524 = vector.shape_cast %523 : vector<8xf32> to vector<8x1xf32>
    %525 = vector.broadcast %524 : vector<8x1xf32> to vector<8x8xf32>
    %526 = arith.subf %522, %525 : vector<8x8xf32>
    %527 = math.exp %526 : vector<8x8xf32>
    %cst_199 = arith.constant dense<0.000000e+00> : vector<8xf32>
    %528 = vector.multi_reduction <add>, %527, %cst_199 [1] : vector<8x8xf32> to vector<8xf32>
    %529 = vector.shape_cast %528 : vector<8xf32> to vector<8x1xf32>
    %530 = tpu.reciprocal %529 : vector<8x1xf32> -> vector<8x1xf32>
    %531 = vector.broadcast %530 : vector<8x1xf32> to vector<8x8xf32>
    %532 = arith.mulf %527, %531 : vector<8x8xf32>
    %533 = arith.truncf %532 : vector<8x8xf32> to vector<8x8xbf16>
    %cst_200 = arith.constant dense<0.000000e+00> : vector<8x8xf32>
    %534 = tpu.matmul %533, %516, %cst_200 {dimension_numbers = #tpu.dot_dimension_numbers<[1], [0], [0], [1], [0, 0, 1, 1], [], []>} : vector<8x8xbf16>, vector<8x8xbf16>, vector<8x8xf32> -> vector<8x8xf32>
    %535 = tpu.concatenate %462, %486, %510, %534 in 1 : vector<8x8xf32>, vector<8x8xf32>, vector<8x8xf32>, vector<8x8xf32> -> vector<8x32xf32>
    %536 = arith.truncf %535 : vector<8x32xf32> to vector<8x32xbf16>
    %c2_201 = arith.constant 2 : index
    %c0_202 = arith.constant 0 : index
    %c0_203 = arith.constant 0 : index
    %537 = vector.load %arg8[%c2_201, %c0_202, %c0_203] : memref<4x32x32xbf16, #tpu.memory_space<vmem>>, vector<1x32x32xbf16>
    %538 = vector.shape_cast %537 : vector<1x32x32xbf16> to vector<32x32xbf16>
    %cst_204 = arith.constant dense<0.000000e+00> : vector<8x32xf32>
    %539 = tpu.matmul %536, %538, %cst_204 {dimension_numbers = #tpu.dot_dimension_numbers<[1], [0], [0], [1], [0, 0, 1, 1], [], []>} : vector<8x32xbf16>, vector<32x32xbf16>, vector<8x32xf32> -> vector<8x32xf32>
    %540 = arith.addf %404, %539 : vector<8x32xf32>
    %c2_205 = arith.constant 2 : index
    %c0_206 = arith.constant 0 : index
    %c0_207 = arith.constant 0 : index
    %541 = vector.load %arg9[%c2_205, %c0_206, %c0_207] : memref<4x1x32xf32, #tpu.memory_space<vmem>>, vector<1x1x32xf32>
    %542 = vector.shape_cast %541 : vector<1x1x32xf32> to vector<1x32xf32>
    %543 = vector.broadcast %542 : vector<1x32xf32> to vector<8x32xf32>
    %544 = arith.addf %540, %543 : vector<8x32xf32>
    %c2_208 = arith.constant 2 : index
    %c0_209 = arith.constant 0 : index
    %c0_210 = arith.constant 0 : index
    %545 = vector.load %arg10[%c2_208, %c0_209, %c0_210] : memref<4x1x32xf32, #tpu.memory_space<vmem>>, vector<1x1x32xf32>
    %546 = vector.shape_cast %545 : vector<1x1x32xf32> to vector<1x32xf32>
    %c2_211 = arith.constant 2 : index
    %c0_212 = arith.constant 0 : index
    %c0_213 = arith.constant 0 : index
    %547 = vector.load %arg11[%c2_211, %c0_212, %c0_213] : memref<4x1x32xf32, #tpu.memory_space<vmem>>, vector<1x1x32xf32>
    %548 = vector.shape_cast %547 : vector<1x1x32xf32> to vector<1x32xf32>
    %cst_214 = arith.constant dense<0.000000e+00> : vector<8xf32>
    %549 = vector.multi_reduction <add>, %544, %cst_214 [1] : vector<8x32xf32> to vector<8xf32>
    %550 = vector.shape_cast %549 : vector<8xf32> to vector<8x1xf32>
    %cst_215 = arith.constant 3.200000e+01 : f32
    %551 = vector.broadcast %cst_215 : f32 to vector<8x1xf32>
    %552 = arith.divf %550, %551 : vector<8x1xf32>
    %553 = vector.broadcast %552 : vector<8x1xf32> to vector<8x32xf32>
    %554 = arith.subf %544, %553 : vector<8x32xf32>
    %555 = arith.mulf %554, %554 : vector<8x32xf32>
    %cst_216 = arith.constant dense<0.000000e+00> : vector<8xf32>
    %556 = vector.multi_reduction <add>, %555, %cst_216 [1] : vector<8x32xf32> to vector<8xf32>
    %557 = vector.shape_cast %556 : vector<8xf32> to vector<8x1xf32>
    %cst_217 = arith.constant 3.200000e+01 : f32
    %558 = vector.broadcast %cst_217 : f32 to vector<8x1xf32>
    %559 = arith.divf %557, %558 : vector<8x1xf32>
    %560 = vector.broadcast %552 : vector<8x1xf32> to vector<8x32xf32>
    %561 = arith.subf %544, %560 : vector<8x32xf32>
    %cst_218 = arith.constant 9.99999974E-6 : f32
    %562 = vector.broadcast %cst_218 : f32 to vector<8x1xf32>
    %563 = arith.addf %559, %562 : vector<8x1xf32>
    %564 = math.rsqrt %563 : vector<8x1xf32>
    %565 = vector.broadcast %564 : vector<8x1xf32> to vector<8x32xf32>
    %566 = arith.mulf %561, %565 : vector<8x32xf32>
    %567 = vector.broadcast %546 : vector<1x32xf32> to vector<8x32xf32>
    %568 = arith.mulf %566, %567 : vector<8x32xf32>
    %569 = vector.broadcast %548 : vector<1x32xf32> to vector<8x32xf32>
    %570 = arith.addf %568, %569 : vector<8x32xf32>
    %571 = arith.truncf %570 : vector<8x32xf32> to vector<8x32xbf16>
    %c2_219 = arith.constant 2 : index
    %c0_220 = arith.constant 0 : index
    %c0_221 = arith.constant 0 : index
    %572 = vector.load %arg12[%c2_219, %c0_220, %c0_221] : memref<4x32x128xbf16, #tpu.memory_space<vmem>>, vector<1x32x128xbf16>
    %573 = vector.shape_cast %572 : vector<1x32x128xbf16> to vector<32x128xbf16>
    %cst_222 = arith.constant dense<0.000000e+00> : vector<8x128xf32>
    %574 = tpu.matmul %571, %573, %cst_222 {dimension_numbers = #tpu.dot_dimension_numbers<[1], [0], [0], [1], [0, 0, 1, 1], [], []>} : vector<8x32xbf16>, vector<32x128xbf16>, vector<8x128xf32> -> vector<8x128xf32>
    %c2_223 = arith.constant 2 : index
    %c0_224 = arith.constant 0 : index
    %c0_225 = arith.constant 0 : index
    %575 = vector.load %arg13[%c2_223, %c0_224, %c0_225] : memref<4x1x128xf32, #tpu.memory_space<vmem>>, vector<1x1x128xf32>
    %576 = vector.shape_cast %575 : vector<1x1x128xf32> to vector<1x128xf32>
    %577 = vector.broadcast %576 : vector<1x128xf32> to vector<8x128xf32>
    %578 = arith.addf %574, %577 : vector<8x128xf32>
    %cst_226 = arith.constant 5.000000e-01 : f32
    %579 = vector.broadcast %cst_226 : f32 to vector<8x128xf32>
    %580 = arith.mulf %579, %578 : vector<8x128xf32>
    %cst_227 = arith.constant 4.471500e-02 : f32
    %581 = vector.broadcast %cst_227 : f32 to vector<8x128xf32>
    %582 = arith.mulf %581, %578 : vector<8x128xf32>
    %583 = arith.mulf %582, %578 : vector<8x128xf32>
    %584 = arith.mulf %583, %578 : vector<8x128xf32>
    %585 = arith.addf %578, %584 : vector<8x128xf32>
    %cst_228 = arith.constant 0.797884583 : f32
    %586 = vector.broadcast %cst_228 : f32 to vector<8x128xf32>
    %587 = arith.mulf %586, %585 : vector<8x128xf32>
    %588 = math.tanh %587 : vector<8x128xf32>
    %cst_229 = arith.constant 1.000000e+00 : f32
    %589 = vector.broadcast %cst_229 : f32 to vector<8x128xf32>
    %590 = arith.addf %589, %588 : vector<8x128xf32>
    %591 = arith.mulf %580, %590 : vector<8x128xf32>
    %592 = arith.truncf %591 : vector<8x128xf32> to vector<8x128xbf16>
    %c2_230 = arith.constant 2 : index
    %c0_231 = arith.constant 0 : index
    %c0_232 = arith.constant 0 : index
    %593 = vector.load %arg14[%c2_230, %c0_231, %c0_232] : memref<4x128x32xbf16, #tpu.memory_space<vmem>>, vector<1x128x32xbf16>
    %594 = vector.shape_cast %593 : vector<1x128x32xbf16> to vector<128x32xbf16>
    %cst_233 = arith.constant dense<0.000000e+00> : vector<8x32xf32>
    %595 = tpu.matmul %592, %594, %cst_233 {dimension_numbers = #tpu.dot_dimension_numbers<[1], [0], [0], [1], [0, 0, 1, 1], [], []>} : vector<8x128xbf16>, vector<128x32xbf16>, vector<8x32xf32> -> vector<8x32xf32>
    %596 = arith.addf %544, %595 : vector<8x32xf32>
    %c2_234 = arith.constant 2 : index
    %c0_235 = arith.constant 0 : index
    %c0_236 = arith.constant 0 : index
    %597 = vector.load %arg15[%c2_234, %c0_235, %c0_236] : memref<4x1x32xf32, #tpu.memory_space<vmem>>, vector<1x1x32xf32>
    %598 = vector.shape_cast %597 : vector<1x1x32xf32> to vector<1x32xf32>
    %599 = vector.broadcast %598 : vector<1x32xf32> to vector<8x32xf32>
    %600 = arith.addf %596, %599 : vector<8x32xf32>
    %c3 = arith.constant 3 : index
    %c0_237 = arith.constant 0 : index
    %c0_238 = arith.constant 0 : index
    %601 = vector.load %arg4[%c3, %c0_237, %c0_238] : memref<4x1x32xf32, #tpu.memory_space<vmem>>, vector<1x1x32xf32>
    %602 = vector.shape_cast %601 : vector<1x1x32xf32> to vector<1x32xf32>
    %c3_239 = arith.constant 3 : index
    %c0_240 = arith.constant 0 : index
    %c0_241 = arith.constant 0 : index
    %603 = vector.load %arg5[%c3_239, %c0_240, %c0_241] : memref<4x1x32xf32, #tpu.memory_space<vmem>>, vector<1x1x32xf32>
    %604 = vector.shape_cast %603 : vector<1x1x32xf32> to vector<1x32xf32>
    %cst_242 = arith.constant dense<0.000000e+00> : vector<8xf32>
    %605 = vector.multi_reduction <add>, %600, %cst_242 [1] : vector<8x32xf32> to vector<8xf32>
    %606 = vector.shape_cast %605 : vector<8xf32> to vector<8x1xf32>
    %cst_243 = arith.constant 3.200000e+01 : f32
    %607 = vector.broadcast %cst_243 : f32 to vector<8x1xf32>
    %608 = arith.divf %606, %607 : vector<8x1xf32>
    %609 = vector.broadcast %608 : vector<8x1xf32> to vector<8x32xf32>
    %610 = arith.subf %600, %609 : vector<8x32xf32>
    %611 = arith.mulf %610, %610 : vector<8x32xf32>
    %cst_244 = arith.constant dense<0.000000e+00> : vector<8xf32>
    %612 = vector.multi_reduction <add>, %611, %cst_244 [1] : vector<8x32xf32> to vector<8xf32>
    %613 = vector.shape_cast %612 : vector<8xf32> to vector<8x1xf32>
    %cst_245 = arith.constant 3.200000e+01 : f32
    %614 = vector.broadcast %cst_245 : f32 to vector<8x1xf32>
    %615 = arith.divf %613, %614 : vector<8x1xf32>
    %616 = vector.broadcast %608 : vector<8x1xf32> to vector<8x32xf32>
    %617 = arith.subf %600, %616 : vector<8x32xf32>
    %cst_246 = arith.constant 9.99999974E-6 : f32
    %618 = vector.broadcast %cst_246 : f32 to vector<8x1xf32>
    %619 = arith.addf %615, %618 : vector<8x1xf32>
    %620 = math.rsqrt %619 : vector<8x1xf32>
    %621 = vector.broadcast %620 : vector<8x1xf32> to vector<8x32xf32>
    %622 = arith.mulf %617, %621 : vector<8x32xf32>
    %623 = vector.broadcast %602 : vector<1x32xf32> to vector<8x32xf32>
    %624 = arith.mulf %622, %623 : vector<8x32xf32>
    %625 = vector.broadcast %604 : vector<1x32xf32> to vector<8x32xf32>
    %626 = arith.addf %624, %625 : vector<8x32xf32>
    %627 = arith.truncf %626 : vector<8x32xf32> to vector<8x32xbf16>
    %c3_247 = arith.constant 3 : index
    %c0_248 = arith.constant 0 : index
    %c0_249 = arith.constant 0 : index
    %628 = vector.load %arg6[%c3_247, %c0_248, %c0_249] : memref<4x32x96xbf16, #tpu.memory_space<vmem>>, vector<1x32x96xbf16>
    %629 = vector.shape_cast %628 : vector<1x32x96xbf16> to vector<32x96xbf16>
    %cst_250 = arith.constant dense<0.000000e+00> : vector<8x96xf32>
    %630 = tpu.matmul %627, %629, %cst_250 {dimension_numbers = #tpu.dot_dimension_numbers<[1], [0], [0], [1], [0, 0, 1, 1], [], []>} : vector<8x32xbf16>, vector<32x96xbf16>, vector<8x96xf32> -> vector<8x96xf32>
    %c3_251 = arith.constant 3 : index
    %c0_252 = arith.constant 0 : index
    %c0_253 = arith.constant 0 : index
    %631 = vector.load %arg7[%c3_251, %c0_252, %c0_253] : memref<4x1x96xf32, #tpu.memory_space<vmem>>, vector<1x1x96xf32>
    %632 = vector.shape_cast %631 : vector<1x1x96xf32> to vector<1x96xf32>
    %633 = vector.broadcast %632 : vector<1x96xf32> to vector<8x96xf32>
    %634 = arith.addf %630, %633 : vector<8x96xf32>
    %635 = vector.extract_strided_slice %634 {offsets = [0, 0], sizes = [8, 8], strides = [1, 1]} : vector<8x96xf32> to vector<8x8xf32>
    %636 = arith.truncf %635 : vector<8x8xf32> to vector<8x8xbf16>
    %637 = vector.extract_strided_slice %634 {offsets = [0, 32], sizes = [8, 8], strides = [1, 1]} : vector<8x96xf32> to vector<8x8xf32>
    %638 = arith.truncf %637 : vector<8x8xf32> to vector<8x8xbf16>
    %639 = vector.extract_strided_slice %634 {offsets = [0, 64], sizes = [8, 8], strides = [1, 1]} : vector<8x96xf32> to vector<8x8xf32>
    %640 = arith.truncf %639 : vector<8x8xf32> to vector<8x8xbf16>
    %641 = tpu.transpose %638, [1, 0] : vector<8x8xbf16> -> vector<8x8xbf16>
    %cst_254 = arith.constant dense<0.000000e+00> : vector<8x8xf32>
    %642 = tpu.matmul %636, %641, %cst_254 {dimension_numbers = #tpu.dot_dimension_numbers<[1], [0], [0], [1], [0, 0, 1, 1], [], []>} : vector<8x8xbf16>, vector<8x8xbf16>, vector<8x8xf32> -> vector<8x8xf32>
    %cst_255 = arith.constant 0.353553385 : f32
    %643 = vector.broadcast %cst_255 : f32 to vector<8x8xf32>
    %644 = arith.mulf %642, %643 : vector<8x8xf32>
    %cst_256 = arith.constant -3.40282347E+38 : f32
    %645 = vector.broadcast %cst_256 : f32 to vector<8x8xf32>
    %646 = arith.select %12, %644, %645 : vector<8x8xi1>, vector<8x8xf32>
    %cst_257 = arith.constant dense<0xFF800000> : vector<8xf32>
    %647 = vector.multi_reduction <maximumf>, %646, %cst_257 [1] : vector<8x8xf32> to vector<8xf32>
    %648 = vector.shape_cast %647 : vector<8xf32> to vector<8x1xf32>
    %649 = vector.broadcast %648 : vector<8x1xf32> to vector<8x8xf32>
    %650 = arith.subf %646, %649 : vector<8x8xf32>
    %651 = math.exp %650 : vector<8x8xf32>
    %cst_258 = arith.constant dense<0.000000e+00> : vector<8xf32>
    %652 = vector.multi_reduction <add>, %651, %cst_258 [1] : vector<8x8xf32> to vector<8xf32>
    %653 = vector.shape_cast %652 : vector<8xf32> to vector<8x1xf32>
    %654 = tpu.reciprocal %653 : vector<8x1xf32> -> vector<8x1xf32>
    %655 = vector.broadcast %654 : vector<8x1xf32> to vector<8x8xf32>
    %656 = arith.mulf %651, %655 : vector<8x8xf32>
    %657 = arith.truncf %656 : vector<8x8xf32> to vector<8x8xbf16>
    %cst_259 = arith.constant dense<0.000000e+00> : vector<8x8xf32>
    %658 = tpu.matmul %657, %640, %cst_259 {dimension_numbers = #tpu.dot_dimension_numbers<[1], [0], [0], [1], [0, 0, 1, 1], [], []>} : vector<8x8xbf16>, vector<8x8xbf16>, vector<8x8xf32> -> vector<8x8xf32>
    %659 = vector.extract_strided_slice %634 {offsets = [0, 8], sizes = [8, 8], strides = [1, 1]} : vector<8x96xf32> to vector<8x8xf32>
    %660 = arith.truncf %659 : vector<8x8xf32> to vector<8x8xbf16>
    %661 = vector.extract_strided_slice %634 {offsets = [0, 40], sizes = [8, 8], strides = [1, 1]} : vector<8x96xf32> to vector<8x8xf32>
    %662 = arith.truncf %661 : vector<8x8xf32> to vector<8x8xbf16>
    %663 = vector.extract_strided_slice %634 {offsets = [0, 72], sizes = [8, 8], strides = [1, 1]} : vector<8x96xf32> to vector<8x8xf32>
    %664 = arith.truncf %663 : vector<8x8xf32> to vector<8x8xbf16>
    %665 = tpu.transpose %662, [1, 0] : vector<8x8xbf16> -> vector<8x8xbf16>
    %cst_260 = arith.constant dense<0.000000e+00> : vector<8x8xf32>
    %666 = tpu.matmul %660, %665, %cst_260 {dimension_numbers = #tpu.dot_dimension_numbers<[1], [0], [0], [1], [0, 0, 1, 1], [], []>} : vector<8x8xbf16>, vector<8x8xbf16>, vector<8x8xf32> -> vector<8x8xf32>
    %cst_261 = arith.constant 0.353553385 : f32
    %667 = vector.broadcast %cst_261 : f32 to vector<8x8xf32>
    %668 = arith.mulf %666, %667 : vector<8x8xf32>
    %cst_262 = arith.constant -3.40282347E+38 : f32
    %669 = vector.broadcast %cst_262 : f32 to vector<8x8xf32>
    %670 = arith.select %12, %668, %669 : vector<8x8xi1>, vector<8x8xf32>
    %cst_263 = arith.constant dense<0xFF800000> : vector<8xf32>
    %671 = vector.multi_reduction <maximumf>, %670, %cst_263 [1] : vector<8x8xf32> to vector<8xf32>
    %672 = vector.shape_cast %671 : vector<8xf32> to vector<8x1xf32>
    %673 = vector.broadcast %672 : vector<8x1xf32> to vector<8x8xf32>
    %674 = arith.subf %670, %673 : vector<8x8xf32>
    %675 = math.exp %674 : vector<8x8xf32>
    %cst_264 = arith.constant dense<0.000000e+00> : vector<8xf32>
    %676 = vector.multi_reduction <add>, %675, %cst_264 [1] : vector<8x8xf32> to vector<8xf32>
    %677 = vector.shape_cast %676 : vector<8xf32> to vector<8x1xf32>
    %678 = tpu.reciprocal %677 : vector<8x1xf32> -> vector<8x1xf32>
    %679 = vector.broadcast %678 : vector<8x1xf32> to vector<8x8xf32>
    %680 = arith.mulf %675, %679 : vector<8x8xf32>
    %681 = arith.truncf %680 : vector<8x8xf32> to vector<8x8xbf16>
    %cst_265 = arith.constant dense<0.000000e+00> : vector<8x8xf32>
    %682 = tpu.matmul %681, %664, %cst_265 {dimension_numbers = #tpu.dot_dimension_numbers<[1], [0], [0], [1], [0, 0, 1, 1], [], []>} : vector<8x8xbf16>, vector<8x8xbf16>, vector<8x8xf32> -> vector<8x8xf32>
    %683 = vector.extract_strided_slice %634 {offsets = [0, 16], sizes = [8, 8], strides = [1, 1]} : vector<8x96xf32> to vector<8x8xf32>
    %684 = arith.truncf %683 : vector<8x8xf32> to vector<8x8xbf16>
    %685 = vector.extract_strided_slice %634 {offsets = [0, 48], sizes = [8, 8], strides = [1, 1]} : vector<8x96xf32> to vector<8x8xf32>
    %686 = arith.truncf %685 : vector<8x8xf32> to vector<8x8xbf16>
    %687 = vector.extract_strided_slice %634 {offsets = [0, 80], sizes = [8, 8], strides = [1, 1]} : vector<8x96xf32> to vector<8x8xf32>
    %688 = arith.truncf %687 : vector<8x8xf32> to vector<8x8xbf16>
    %689 = tpu.transpose %686, [1, 0] : vector<8x8xbf16> -> vector<8x8xbf16>
    %cst_266 = arith.constant dense<0.000000e+00> : vector<8x8xf32>
    %690 = tpu.matmul %684, %689, %cst_266 {dimension_numbers = #tpu.dot_dimension_numbers<[1], [0], [0], [1], [0, 0, 1, 1], [], []>} : vector<8x8xbf16>, vector<8x8xbf16>, vector<8x8xf32> -> vector<8x8xf32>
    %cst_267 = arith.constant 0.353553385 : f32
    %691 = vector.broadcast %cst_267 : f32 to vector<8x8xf32>
    %692 = arith.mulf %690, %691 : vector<8x8xf32>
    %cst_268 = arith.constant -3.40282347E+38 : f32
    %693 = vector.broadcast %cst_268 : f32 to vector<8x8xf32>
    %694 = arith.select %12, %692, %693 : vector<8x8xi1>, vector<8x8xf32>
    %cst_269 = arith.constant dense<0xFF800000> : vector<8xf32>
    %695 = vector.multi_reduction <maximumf>, %694, %cst_269 [1] : vector<8x8xf32> to vector<8xf32>
    %696 = vector.shape_cast %695 : vector<8xf32> to vector<8x1xf32>
    %697 = vector.broadcast %696 : vector<8x1xf32> to vector<8x8xf32>
    %698 = arith.subf %694, %697 : vector<8x8xf32>
    %699 = math.exp %698 : vector<8x8xf32>
    %cst_270 = arith.constant dense<0.000000e+00> : vector<8xf32>
    %700 = vector.multi_reduction <add>, %699, %cst_270 [1] : vector<8x8xf32> to vector<8xf32>
    %701 = vector.shape_cast %700 : vector<8xf32> to vector<8x1xf32>
    %702 = tpu.reciprocal %701 : vector<8x1xf32> -> vector<8x1xf32>
    %703 = vector.broadcast %702 : vector<8x1xf32> to vector<8x8xf32>
    %704 = arith.mulf %699, %703 : vector<8x8xf32>
    %705 = arith.truncf %704 : vector<8x8xf32> to vector<8x8xbf16>
    %cst_271 = arith.constant dense<0.000000e+00> : vector<8x8xf32>
    %706 = tpu.matmul %705, %688, %cst_271 {dimension_numbers = #tpu.dot_dimension_numbers<[1], [0], [0], [1], [0, 0, 1, 1], [], []>} : vector<8x8xbf16>, vector<8x8xbf16>, vector<8x8xf32> -> vector<8x8xf32>
    %707 = vector.extract_strided_slice %634 {offsets = [0, 24], sizes = [8, 8], strides = [1, 1]} : vector<8x96xf32> to vector<8x8xf32>
    %708 = arith.truncf %707 : vector<8x8xf32> to vector<8x8xbf16>
    %709 = vector.extract_strided_slice %634 {offsets = [0, 56], sizes = [8, 8], strides = [1, 1]} : vector<8x96xf32> to vector<8x8xf32>
    %710 = arith.truncf %709 : vector<8x8xf32> to vector<8x8xbf16>
    %711 = vector.extract_strided_slice %634 {offsets = [0, 88], sizes = [8, 8], strides = [1, 1]} : vector<8x96xf32> to vector<8x8xf32>
    %712 = arith.truncf %711 : vector<8x8xf32> to vector<8x8xbf16>
    %713 = tpu.transpose %710, [1, 0] : vector<8x8xbf16> -> vector<8x8xbf16>
    %cst_272 = arith.constant dense<0.000000e+00> : vector<8x8xf32>
    %714 = tpu.matmul %708, %713, %cst_272 {dimension_numbers = #tpu.dot_dimension_numbers<[1], [0], [0], [1], [0, 0, 1, 1], [], []>} : vector<8x8xbf16>, vector<8x8xbf16>, vector<8x8xf32> -> vector<8x8xf32>
    %cst_273 = arith.constant 0.353553385 : f32
    %715 = vector.broadcast %cst_273 : f32 to vector<8x8xf32>
    %716 = arith.mulf %714, %715 : vector<8x8xf32>
    %cst_274 = arith.constant -3.40282347E+38 : f32
    %717 = vector.broadcast %cst_274 : f32 to vector<8x8xf32>
    %718 = arith.select %12, %716, %717 : vector<8x8xi1>, vector<8x8xf32>
    %cst_275 = arith.constant dense<0xFF800000> : vector<8xf32>
    %719 = vector.multi_reduction <maximumf>, %718, %cst_275 [1] : vector<8x8xf32> to vector<8xf32>
    %720 = vector.shape_cast %719 : vector<8xf32> to vector<8x1xf32>
    %721 = vector.broadcast %720 : vector<8x1xf32> to vector<8x8xf32>
    %722 = arith.subf %718, %721 : vector<8x8xf32>
    %723 = math.exp %722 : vector<8x8xf32>
    %cst_276 = arith.constant dense<0.000000e+00> : vector<8xf32>
    %724 = vector.multi_reduction <add>, %723, %cst_276 [1] : vector<8x8xf32> to vector<8xf32>
    %725 = vector.shape_cast %724 : vector<8xf32> to vector<8x1xf32>
    %726 = tpu.reciprocal %725 : vector<8x1xf32> -> vector<8x1xf32>
    %727 = vector.broadcast %726 : vector<8x1xf32> to vector<8x8xf32>
    %728 = arith.mulf %723, %727 : vector<8x8xf32>
    %729 = arith.truncf %728 : vector<8x8xf32> to vector<8x8xbf16>
    %cst_277 = arith.constant dense<0.000000e+00> : vector<8x8xf32>
    %730 = tpu.matmul %729, %712, %cst_277 {dimension_numbers = #tpu.dot_dimension_numbers<[1], [0], [0], [1], [0, 0, 1, 1], [], []>} : vector<8x8xbf16>, vector<8x8xbf16>, vector<8x8xf32> -> vector<8x8xf32>
    %731 = tpu.concatenate %658, %682, %706, %730 in 1 : vector<8x8xf32>, vector<8x8xf32>, vector<8x8xf32>, vector<8x8xf32> -> vector<8x32xf32>
    %732 = arith.truncf %731 : vector<8x32xf32> to vector<8x32xbf16>
    %c3_278 = arith.constant 3 : index
    %c0_279 = arith.constant 0 : index
    %c0_280 = arith.constant 0 : index
    %733 = vector.load %arg8[%c3_278, %c0_279, %c0_280] : memref<4x32x32xbf16, #tpu.memory_space<vmem>>, vector<1x32x32xbf16>
    %734 = vector.shape_cast %733 : vector<1x32x32xbf16> to vector<32x32xbf16>
    %cst_281 = arith.constant dense<0.000000e+00> : vector<8x32xf32>
    %735 = tpu.matmul %732, %734, %cst_281 {dimension_numbers = #tpu.dot_dimension_numbers<[1], [0], [0], [1], [0, 0, 1, 1], [], []>} : vector<8x32xbf16>, vector<32x32xbf16>, vector<8x32xf32> -> vector<8x32xf32>
    %736 = arith.addf %600, %735 : vector<8x32xf32>
    %c3_282 = arith.constant 3 : index
    %c0_283 = arith.constant 0 : index
    %c0_284 = arith.constant 0 : index
    %737 = vector.load %arg9[%c3_282, %c0_283, %c0_284] : memref<4x1x32xf32, #tpu.memory_space<vmem>>, vector<1x1x32xf32>
    %738 = vector.shape_cast %737 : vector<1x1x32xf32> to vector<1x32xf32>
    %739 = vector.broadcast %738 : vector<1x32xf32> to vector<8x32xf32>
    %740 = arith.addf %736, %739 : vector<8x32xf32>
    %c3_285 = arith.constant 3 : index
    %c0_286 = arith.constant 0 : index
    %c0_287 = arith.constant 0 : index
    %741 = vector.load %arg10[%c3_285, %c0_286, %c0_287] : memref<4x1x32xf32, #tpu.memory_space<vmem>>, vector<1x1x32xf32>
    %742 = vector.shape_cast %741 : vector<1x1x32xf32> to vector<1x32xf32>
    %c3_288 = arith.constant 3 : index
    %c0_289 = arith.constant 0 : index
    %c0_290 = arith.constant 0 : index
    %743 = vector.load %arg11[%c3_288, %c0_289, %c0_290] : memref<4x1x32xf32, #tpu.memory_space<vmem>>, vector<1x1x32xf32>
    %744 = vector.shape_cast %743 : vector<1x1x32xf32> to vector<1x32xf32>
    %cst_291 = arith.constant dense<0.000000e+00> : vector<8xf32>
    %745 = vector.multi_reduction <add>, %740, %cst_291 [1] : vector<8x32xf32> to vector<8xf32>
    %746 = vector.shape_cast %745 : vector<8xf32> to vector<8x1xf32>
    %cst_292 = arith.constant 3.200000e+01 : f32
    %747 = vector.broadcast %cst_292 : f32 to vector<8x1xf32>
    %748 = arith.divf %746, %747 : vector<8x1xf32>
    %749 = vector.broadcast %748 : vector<8x1xf32> to vector<8x32xf32>
    %750 = arith.subf %740, %749 : vector<8x32xf32>
    %751 = arith.mulf %750, %750 : vector<8x32xf32>
    %cst_293 = arith.constant dense<0.000000e+00> : vector<8xf32>
    %752 = vector.multi_reduction <add>, %751, %cst_293 [1] : vector<8x32xf32> to vector<8xf32>
    %753 = vector.shape_cast %752 : vector<8xf32> to vector<8x1xf32>
    %cst_294 = arith.constant 3.200000e+01 : f32
    %754 = vector.broadcast %cst_294 : f32 to vector<8x1xf32>
    %755 = arith.divf %753, %754 : vector<8x1xf32>
    %756 = vector.broadcast %748 : vector<8x1xf32> to vector<8x32xf32>
    %757 = arith.subf %740, %756 : vector<8x32xf32>
    %cst_295 = arith.constant 9.99999974E-6 : f32
    %758 = vector.broadcast %cst_295 : f32 to vector<8x1xf32>
    %759 = arith.addf %755, %758 : vector<8x1xf32>
    %760 = math.rsqrt %759 : vector<8x1xf32>
    %761 = vector.broadcast %760 : vector<8x1xf32> to vector<8x32xf32>
    %762 = arith.mulf %757, %761 : vector<8x32xf32>
    %763 = vector.broadcast %742 : vector<1x32xf32> to vector<8x32xf32>
    %764 = arith.mulf %762, %763 : vector<8x32xf32>
    %765 = vector.broadcast %744 : vector<1x32xf32> to vector<8x32xf32>
    %766 = arith.addf %764, %765 : vector<8x32xf32>
    %767 = arith.truncf %766 : vector<8x32xf32> to vector<8x32xbf16>
    %c3_296 = arith.constant 3 : index
    %c0_297 = arith.constant 0 : index
    %c0_298 = arith.constant 0 : index
    %768 = vector.load %arg12[%c3_296, %c0_297, %c0_298] : memref<4x32x128xbf16, #tpu.memory_space<vmem>>, vector<1x32x128xbf16>
    %769 = vector.shape_cast %768 : vector<1x32x128xbf16> to vector<32x128xbf16>
    %cst_299 = arith.constant dense<0.000000e+00> : vector<8x128xf32>
    %770 = tpu.matmul %767, %769, %cst_299 {dimension_numbers = #tpu.dot_dimension_numbers<[1], [0], [0], [1], [0, 0, 1, 1], [], []>} : vector<8x32xbf16>, vector<32x128xbf16>, vector<8x128xf32> -> vector<8x128xf32>
    %c3_300 = arith.constant 3 : index
    %c0_301 = arith.constant 0 : index
    %c0_302 = arith.constant 0 : index
    %771 = vector.load %arg13[%c3_300, %c0_301, %c0_302] : memref<4x1x128xf32, #tpu.memory_space<vmem>>, vector<1x1x128xf32>
    %772 = vector.shape_cast %771 : vector<1x1x128xf32> to vector<1x128xf32>
    %773 = vector.broadcast %772 : vector<1x128xf32> to vector<8x128xf32>
    %774 = arith.addf %770, %773 : vector<8x128xf32>
    %cst_303 = arith.constant 5.000000e-01 : f32
    %775 = vector.broadcast %cst_303 : f32 to vector<8x128xf32>
    %776 = arith.mulf %775, %774 : vector<8x128xf32>
    %cst_304 = arith.constant 4.471500e-02 : f32
    %777 = vector.broadcast %cst_304 : f32 to vector<8x128xf32>
    %778 = arith.mulf %777, %774 : vector<8x128xf32>
    %779 = arith.mulf %778, %774 : vector<8x128xf32>
    %780 = arith.mulf %779, %774 : vector<8x128xf32>
    %781 = arith.addf %774, %780 : vector<8x128xf32>
    %cst_305 = arith.constant 0.797884583 : f32
    %782 = vector.broadcast %cst_305 : f32 to vector<8x128xf32>
    %783 = arith.mulf %782, %781 : vector<8x128xf32>
    %784 = math.tanh %783 : vector<8x128xf32>
    %cst_306 = arith.constant 1.000000e+00 : f32
    %785 = vector.broadcast %cst_306 : f32 to vector<8x128xf32>
    %786 = arith.addf %785, %784 : vector<8x128xf32>
    %787 = arith.mulf %776, %786 : vector<8x128xf32>
    %788 = arith.truncf %787 : vector<8x128xf32> to vector<8x128xbf16>
    %c3_307 = arith.constant 3 : index
    %c0_308 = arith.constant 0 : index
    %c0_309 = arith.constant 0 : index
    %789 = vector.load %arg14[%c3_307, %c0_308, %c0_309] : memref<4x128x32xbf16, #tpu.memory_space<vmem>>, vector<1x128x32xbf16>
    %790 = vector.shape_cast %789 : vector<1x128x32xbf16> to vector<128x32xbf16>
    %cst_310 = arith.constant dense<0.000000e+00> : vector<8x32xf32>
    %791 = tpu.matmul %788, %790, %cst_310 {dimension_numbers = #tpu.dot_dimension_numbers<[1], [0], [0], [1], [0, 0, 1, 1], [], []>} : vector<8x128xbf16>, vector<128x32xbf16>, vector<8x32xf32> -> vector<8x32xf32>
    %792 = arith.addf %740, %791 : vector<8x32xf32>
    %c3_311 = arith.constant 3 : index
    %c0_312 = arith.constant 0 : index
    %c0_313 = arith.constant 0 : index
    %793 = vector.load %arg15[%c3_311, %c0_312, %c0_313] : memref<4x1x32xf32, #tpu.memory_space<vmem>>, vector<1x1x32xf32>
    %794 = vector.shape_cast %793 : vector<1x1x32xf32> to vector<1x32xf32>
    %795 = vector.broadcast %794 : vector<1x32xf32> to vector<8x32xf32>
    %796 = arith.addf %792, %795 : vector<8x32xf32>
    %c0_314 = arith.constant 0 : index
    %c0_315 = arith.constant 0 : index
    %797 = vector.load %arg16[%c0_314, %c0_315] : memref<1x32xf32, #tpu.memory_space<vmem>>, vector<1x32xf32>
    %c0_316 = arith.constant 0 : index
    %c0_317 = arith.constant 0 : index
    %798 = vector.load %arg17[%c0_316, %c0_317] : memref<1x32xf32, #tpu.memory_space<vmem>>, vector<1x32xf32>
    %cst_318 = arith.constant dense<0.000000e+00> : vector<8xf32>
    %799 = vector.multi_reduction <add>, %796, %cst_318 [1] : vector<8x32xf32> to vector<8xf32>
    %800 = vector.shape_cast %799 : vector<8xf32> to vector<8x1xf32>
    %cst_319 = arith.constant 3.200000e+01 : f32
    %801 = vector.broadcast %cst_319 : f32 to vector<8x1xf32>
    %802 = arith.divf %800, %801 : vector<8x1xf32>
    %803 = vector.broadcast %802 : vector<8x1xf32> to vector<8x32xf32>
    %804 = arith.subf %796, %803 : vector<8x32xf32>
    %805 = arith.mulf %804, %804 : vector<8x32xf32>
    %cst_320 = arith.constant dense<0.000000e+00> : vector<8xf32>
    %806 = vector.multi_reduction <add>, %805, %cst_320 [1] : vector<8x32xf32> to vector<8xf32>
    %807 = vector.shape_cast %806 : vector<8xf32> to vector<8x1xf32>
    %cst_321 = arith.constant 3.200000e+01 : f32
    %808 = vector.broadcast %cst_321 : f32 to vector<8x1xf32>
    %809 = arith.divf %807, %808 : vector<8x1xf32>
    %810 = vector.broadcast %802 : vector<8x1xf32> to vector<8x32xf32>
    %811 = arith.subf %796, %810 : vector<8x32xf32>
    %cst_322 = arith.constant 9.99999974E-6 : f32
    %812 = vector.broadcast %cst_322 : f32 to vector<8x1xf32>
    %813 = arith.addf %809, %812 : vector<8x1xf32>
    %814 = math.rsqrt %813 : vector<8x1xf32>
    %815 = vector.broadcast %814 : vector<8x1xf32> to vector<8x32xf32>
    %816 = arith.mulf %811, %815 : vector<8x32xf32>
    %817 = vector.broadcast %797 : vector<1x32xf32> to vector<8x32xf32>
    %818 = arith.mulf %816, %817 : vector<8x32xf32>
    %819 = vector.broadcast %798 : vector<1x32xf32> to vector<8x32xf32>
    %820 = arith.addf %818, %819 : vector<8x32xf32>
    %821 = arith.truncf %820 : vector<8x32xf32> to vector<8x32xbf16>
    %c0_323 = arith.constant 0 : index
    %c0_324 = arith.constant 0 : index
    %822 = vector.load %arg18[%c0_323, %c0_324] : memref<32x128xbf16, #tpu.memory_space<vmem>>, vector<32x128xbf16>
    %cst_325 = arith.constant dense<0.000000e+00> : vector<8x128xf32>
    %823 = tpu.matmul %821, %822, %cst_325 {dimension_numbers = #tpu.dot_dimension_numbers<[1], [0], [0], [1], [0, 0, 1, 1], [], []>} : vector<8x32xbf16>, vector<32x128xbf16>, vector<8x128xf32> -> vector<8x128xf32>
    %c0_326 = arith.constant 0 : index
    %c0_327 = arith.constant 0 : index
    %824 = vector.load %arg19[%c0_326, %c0_327] : memref<8x128xf32, #tpu.memory_space<vmem>>, vector<8x128xf32>
    tpu.vector_store %arg19[%c0_326, %c0_327], %823 {strides = array<i32>} : memref<8x128xf32, #tpu.memory_space<vmem>>, vector<8x128xf32>,
    %c11_i32 = arith.constant 11 : i32
    %825 = vector.broadcast %c11_i32 : i32 to vector<8x128xi32>
    %826 = arith.cmpi slt, %1, %825 : vector<8x128xi32>
    %cst_328 = arith.constant -3.40282347E+38 : f32
    %827 = vector.broadcast %cst_328 : f32 to vector<8x128xf32>
    %828 = arith.select %826, %823, %827 : vector<8x128xi1>, vector<8x128xf32>
    %cst_329 = arith.constant dense<0xFF800000> : vector<8xf32>
    %829 = vector.multi_reduction <maximumf>, %828, %cst_329 [1] : vector<8x128xf32> to vector<8xf32>
    %830 = vector.shape_cast %829 : vector<8xf32> to vector<8x1xf32>
    %831 = vector.broadcast %830 : vector<8x1xf32> to vector<8x128xf32>
    %832 = arith.subf %828, %831 : vector<8x128xf32>
    %833 = math.exp %832 : vector<8x128xf32>
    %cst_330 = arith.constant dense<0.000000e+00> : vector<8xf32>
    %834 = vector.multi_reduction <add>, %833, %cst_330 [1] : vector<8x128xf32> to vector<8xf32>
    %835 = vector.shape_cast %834 : vector<8xf32> to vector<8x1xf32>
    %836 = math.log %835 : vector<8x1xf32>
    %837 = arith.addf %836, %830 : vector<8x1xf32>
    %c1_i32 = arith.constant 1 : i32
    %838 = vector.broadcast %c1_i32 : i32 to vector<8x8xi32>
    %839 = arith.addi %10, %838 : vector<8x8xi32>
    %840 = arith.cmpi eq, %11, %839 : vector<8x8xi32>
    %841 = arith.extui %840 : vector<8x8xi1> to vector<8x8xi32>
    %842 = arith.sitofp %841 : vector<8x8xi32> to vector<8x8xf32>
    %cst_331 = arith.constant dense<0.000000e+00> : vector<8x128xf32>
    %843 = tpu.matmul %842, %5, %cst_331 {dimension_numbers = #tpu.dot_dimension_numbers<[1], [0], [0], [1], [0, 0, 1, 1], [], []>} : vector<8x8xf32>, vector<8x128xf32>, vector<8x128xf32> -> vector<8x128xf32>
    %844 = arith.mulf %843, %823 : vector<8x128xf32>
    %cst_332 = arith.constant dense<0.000000e+00> : vector<8xf32>
    %845 = vector.multi_reduction <add>, %844, %cst_332 [1] : vector<8x128xf32> to vector<8xf32>
    %846 = vector.shape_cast %845 : vector<8xf32> to vector<8x1xf32>
    %847 = tpu.iota {dimensions = array<i32: 0>} : vector<8x1xi32>
    %c7_i32 = arith.constant 7 : i32
    %848 = vector.broadcast %c7_i32 : i32 to vector<8x1xi32>
    %849 = arith.cmpi slt, %847, %848 : vector<8x1xi32>
    %850 = arith.extui %849 : vector<8x1xi1> to vector<8x1xi32>
    %851 = arith.sitofp %850 : vector<8x1xi32> to vector<8x1xf32>
    %852 = arith.subf %837, %846 : vector<8x1xf32>
    %853 = arith.mulf %851, %852 : vector<8x1xf32>
    %cst_333 = arith.constant dense<0.000000e+00> : vector<1xf32>
    %854 = vector.multi_reduction <add>, %853, %cst_333 [0] : vector<8x1xf32> to vector<1xf32>
    %855 = vector.shape_cast %854 : vector<1xf32> to vector<1x1xf32>
    %cst_334 = arith.constant 0.0714285746 : f32
    %856 = vector.broadcast %cst_334 : f32 to vector<1x1xf32>
    %857 = arith.mulf %855, %856 : vector<1x1xf32>
    %858 = vector.shape_cast %857 : vector<1x1xf32> to vector<1x1x1xf32>
    %c0_335 = arith.constant 0 : index
    %c0_336 = arith.constant 0 : index
    %c0_337 = arith.constant 0 : index
    %859 = vector.load %arg20[%c0_335, %c0_336, %c0_337] : memref<1x1x1xf32, #tpu.memory_space<vmem>>, vector<1x1x1xf32>
    tpu.vector_store %arg20[%c0_335, %c0_336, %c0_337], %858 {strides = array<i32>} : memref<1x1x1xf32, #tpu.memory_space<vmem>>, vector<1x1x1xf32>,
    return
  }
  func.func @transform_0(%arg0: i32) -> (i32, i32) {
    %c0_i32 = arith.constant 0 : i32
    %c0_i32_0 = arith.constant 0 : i32
    return %arg0, %c0_i32 : i32, i32
  }
  func.func @transform_1(%arg0: i32) -> (i32, i32) {
    %c0_i32 = arith.constant 0 : i32
    %c0_i32_0 = arith.constant 0 : i32
    %c0_i32_1 = arith.constant 0 : i32
    return %c0_i32, %c0_i32_0 : i32, i32
  }
  func.func @transform_2(%arg0: i32) -> (i32, i32) {
    %c0_i32 = arith.constant 0 : i32
    %c0_i32_0 = arith.constant 0 : i32
    %c0_i32_1 = arith.constant 0 : i32
    return %c0_i32, %c0_i32_0 : i32, i32
  }
  func.func @transform_3(%arg0: i32) -> (i32, i32, i32) {
    %c0_i32 = arith.constant 0 : i32
    %c0_i32_0 = arith.constant 0 : i32
    %c0_i32_1 = arith.constant 0 : i32
    %c0_i32_2 = arith.constant 0 : i32
    return %c0_i32, %c0_i32_0, %c0_i32_1 : i32, i32, i32
  }
  func.func @transform_4(%arg0: i32) -> (i32, i32, i32) {
    %c0_i32 = arith.constant 0 : i32
    %c0_i32_0 = arith.constant 0 : i32
    %c0_i32_1 = arith.constant 0 : i32
    %c0_i32_2 = arith.constant 0 : i32
    return %c0_i32, %c0_i32_0, %c0_i32_1 : i32, i32, i32
  }
  func.func @transform_5(%arg0: i32) -> (i32, i32, i32) {
    %c0_i32 = arith.constant 0 : i32
    %c0_i32_0 = arith.constant 0 : i32
    %c0_i32_1 = arith.constant 0 : i32
    %c0_i32_2 = arith.constant 0 : i32
    return %c0_i32, %c0_i32_0, %c0_i32_1 : i32, i32, i32
  }
  func.func @transform_6(%arg0: i32) -> (i32, i32, i32) {
    %c0_i32 = arith.constant 0 : i32
    %c0_i32_0 = arith.constant 0 : i32
    %c0_i32_1 = arith.constant 0 : i32
    %c0_i32_2 = arith.constant 0 : i32
    return %c0_i32, %c0_i32_0, %c0_i32_1 : i32, i32, i32
  }
  func.func @transform_7(%arg0: i32) -> (i32, i32, i32) {
    %c0_i32 = arith.constant 0 : i32
    %c0_i32_0 = arith.constant 0 : i32
    %c0_i32_1 = arith.constant 0 : i32
    %c0_i32_2 = arith.constant 0 : i32
    return %c0_i32, %c0_i32_0, %c0_i32_1 : i32, i32, i32
  }
  func.func @transform_8(%arg0: i32) -> (i32, i32, i32) {
    %c0_i32 = arith.constant 0 : i32
    %c0_i32_0 = arith.constant 0 : i32
    %c0_i32_1 = arith.constant 0 : i32
    %c0_i32_2 = arith.constant 0 : i32
    return %c0_i32, %c0_i32_0, %c0_i32_1 : i32, i32, i32
  }
  func.func @transform_9(%arg0: i32) -> (i32, i32, i32) {
    %c0_i32 = arith.constant 0 : i32
    %c0_i32_0 = arith.constant 0 : i32
    %c0_i32_1 = arith.constant 0 : i32
    %c0_i32_2 = arith.constant 0 : i32
    return %c0_i32, %c0_i32_0, %c0_i32_1 : i32, i32, i32
  }
  func.func @transform_10(%arg0: i32) -> (i32, i32, i32) {
    %c0_i32 = arith.constant 0 : i32
    %c0_i32_0 = arith.constant 0 : i32
    %c0_i32_1 = arith.constant 0 : i32
    %c0_i32_2 = arith.constant 0 : i32
    return %c0_i32, %c0_i32_0, %c0_i32_1 : i32, i32, i32
  }
  func.func @transform_11(%arg0: i32) -> (i32, i32, i32) {
    %c0_i32 = arith.constant 0 : i32
    %c0_i32_0 = arith.constant 0 : i32
    %c0_i32_1 = arith.constant 0 : i32
    %c0_i32_2 = arith.constant 0 : i32
    return %c0_i32, %c0_i32_0, %c0_i32_1 : i32, i32, i32
  }
  func.func @transform_12(%arg0: i32) -> (i32, i32, i32) {
    %c0_i32 = arith.constant 0 : i32
    %c0_i32_0 = arith.constant 0 : i32
    %c0_i32_1 = arith.constant 0 : i32
    %c0_i32_2 = arith.constant 0 : i32
    return %c0_i32, %c0_i32_0, %c0_i32_1 : i32, i32, i32
  }
  func.func @transform_13(%arg0: i32) -> (i32, i32, i32) {
    %c0_i32 = arith.constant 0 : i32
    %c0_i32_0 = arith.constant 0 : i32
    %c0_i32_1 = arith.constant 0 : i32
    %c0_i32_2 = arith.constant 0 : i32
    return %c0_i32, %c0_i32_0, %c0_i32_1 : i32, i32, i32
  }
  func.func @transform_14(%arg0: i32) -> (i32, i32, i32) {
    %c0_i32 = arith.constant 0 : i32
    %c0_i32_0 = arith.constant 0 : i32
    %c0_i32_1 = arith.constant 0 : i32
    %c0_i32_2 = arith.constant 0 : i32
    return %c0_i32, %c0_i32_0, %c0_i32_1 : i32, i32, i32
  }
  func.func @transform_15(%arg0: i32) -> (i32, i32) {
    %c0_i32 = arith.constant 0 : i32
    %c0_i32_0 = arith.constant 0 : i32
    %c0_i32_1 = arith.constant 0 : i32
    return %c0_i32, %c0_i32_0 : i32, i32
  }
  func.func @transform_16(%arg0: i32) -> (i32, i32) {
    %c0_i32 = arith.constant 0 : i32
    %c0_i32_0 = arith.constant 0 : i32
    %c0_i32_1 = arith.constant 0 : i32
    return %c0_i32, %c0_i32_0 : i32, i32
  }
  func.func @transform_17(%arg0: i32) -> (i32, i32) {
    %c0_i32 = arith.constant 0 : i32
    %c0_i32_0 = arith.constant 0 : i32
    %c0_i32_1 = arith.constant 0 : i32
    return %c0_i32, %c0_i32_0 : i32, i32
  }
  func.func @transform_18(%arg0: i32) -> (i32, i32) {
    %c0_i32 = arith.constant 0 : i32
    %c0_i32_0 = arith.constant 0 : i32
    return %arg0, %c0_i32 : i32, i32
  }
  func.func @transform_19(%arg0: i32) -> (i32, i32, i32) {
    %c0_i32 = arith.constant 0 : i32
    %c0_i32_0 = arith.constant 0 : i32
    %c0_i32_1 = arith.constant 0 : i32
    return %arg0, %c0_i32, %c0_i32_0 : i32, i32, i32
  }
}

</mosaic_0001>

<bundles_post_ra>
// kernel: proto_bytes_gpt2_forward.1
= control target key start
LH: loop header
LB: loop body
LE: loop exit
PB: predicated region body
PF: predicated region fallthrough
CT: control target
= control target key end

     0   :  { %s6488_s0 = inlined_call_operand.vmem [shape: s32[16,1], index: 0, kind: input, shape index: {}]   ;;  %s6489_s1 = inlined_call_operand.vmem [shape: f32[8,32], index: 1, kind: input, shape index: {}]   ;;  %s6490_s2 = inlined_call_operand.vmem [shape: f32[128,32], index: 2, kind: input, shape index: {}]   ;;  %s6491_s3 = inlined_call_operand.vmem [shape: f32[4,1,32], index: 3, kind: input, shape index: {}]   ;;  %s6492_s4 = inlined_call_operand.vmem [shape: f32[4,1,32], index: 4, kind: input, shape index: {}]   ;;  %s6493_s5 = inlined_call_operand.vmem [shape: bf16[4,32,96], index: 5, kind: input, shape index: {}]   ;;  %s6494_s6 = inlined_call_operand.vmem [shape: f32[4,1,96], index: 6, kind: input, shape index: {}]   ;;  %s6495_s7 = inlined_call_operand.vmem [shape: bf16[4,32,32], index: 7, kind: input, shape index: {}]   ;;  %s6496_s8 = inlined_call_operand.vmem [shape: f32[4,1,32], index: 8, kind: input, shape index: {}]   ;;  %s6497_s9 = inlined_call_operand.vmem [shape: f32[4,1,32], index: 9, kind: input, shape index: {}]   ;;  %s6498_s10 = inlined_call_operand.vmem [shape: f32[4,1,32], index: 10, kind: input, shape index: {}]   ;;  %s6499_s11 = inlined_call_operand.vmem [shape: bf16[4,32,128], index: 11, kind: input, shape index: {}]   ;;  %s6500_s12 = inlined_call_operand.vmem [shape: f32[4,1,128], index: 12, kind: input, shape index: {}]   ;;  %s6501_s13 = inlined_call_operand.vmem [shape: bf16[4,128,32], index: 13, kind: input, shape index: {}]   ;;  %s6502_s14 = inlined_call_operand.vmem [shape: f32[4,1,32], index: 14, kind: input, shape index: {}]   ;;  %s6503_s15 = inlined_call_operand.vmem [shape: f32[1,32], index: 15, kind: input, shape index: {}]   ;;  %s6504_s16 = inlined_call_operand.vmem [shape: f32[1,32], index: 16, kind: input, shape index: {}]   ;;  %s6505_s17 = inlined_call_operand.vmem [shape: bf16[32,128], index: 17, kind: input, shape index: {}]   ;;  %s6506_s18 = inlined_call_operand.vmem [shape: f32[16,128], index: 18, kind: output, shape index: {0}]   ;;  %s6507_s19 = inlined_call_operand.vmem [shape: f32[2,1,1], index: 19, kind: output, shape index: {1}]  }
   0x1   :  { %6544 = sst [smem:[#allocation4_spill]] %s6488_s0  ;;  %s5576_s0 = smov 0  }
   0x2   :  { %6545 = sst [smem:[#allocation5_spill]] %s6489_s1 }
   0x3   :  { %6546 = sst [smem:[#allocation6_spill]] %s6490_s2 }
   0x4   :  { %6547 = sst [smem:[#allocation7_spill]] %s6491_s3 }
   0x5   :  { %6548 = sst [smem:[#allocation8_spill]] %s6496_s8 }
   0x6   :  { %6549 = sst [smem:[#allocation9_spill]] %s6497_s9 }
   0x7   :  { %6550 = sst [smem:[#allocation10_spill]] %s6498_s10 }
   0x8   :  { %6551 = sst [smem:[#allocation11_spill]] %s6503_s15 }
   0x9   :  { %6552 = sst [smem:[#allocation12_spill]] %s6504_s16 }
   0xa   :  { %6553 = sst [smem:[#allocation13_spill]] %s6505_s17 }
   0xb   :  { %6554 = sst [smem:[#allocation14_spill]] %s6506_s18 }
   0xc   :  { %6555 = sst [smem:[#allocation15_spill]] %s6507_s19 }
   0xd LB: > { %6556 = sst [smem:[#allocation2_spill]] %s5455_s0  ;;  %s4411_s30 = sadd.s32 4294967295, %s5455_s0   ;;  %s5455_s0 = sphi %s5576_s0, %s30_s0  }
   0xe   : > { %p4415_p0 = scmp.ge.s32.totalorder %s5455_s0, 1  ;;  %p539_p1 = scmp.lt.s32.totalorder %s5455_s0, 3 }
  0x10   : > { %p540_p2 = pnand %p4415_p0, %p539_p1 }
  0x12   : > { %543 = sbr.rel (%p540_p2) target bundleno = 14004 (0x36b4), region = 92 }
  0x19   : > { %p596_p3 = scmp.lt.s32.totalorder %s4411_s30, 1  ;;  %s6557_s1 = sld [smem:[#allocation6_spill]]  ;;  %v5457_v3 = vmov 0   ;;  %v5458_v4 = vmov 0.0|0.0   ;;  %vm5459_vm0 = vmmov 0   ;;  %v5460_v14 = vmov 0.0  }
  0x1a   : > { %5296 = vset.pattern.permute.xlu0 %v5457_v3  ;;  %5245 = vmatprep.subr.bf16.mxu0 %v5458_v4  ;;  %s6559_s2 = sld [smem:[#allocation4_spill]]  ;;  %v609_v28 = vlaneseq  ;;  %v5461_v31 = vmov 1.0   ;;  %s6560_s24 = sld [smem:[#allocation5_spill]]  ;;  %vm709_vm2 = vcmask 261120   ;;  %v5297_v42 = vld [vmem:[%s6493_s5] sm:$0xff]   ;;  %v5298_v43 = vld [vmem:[%s6493_s5 + $0x8] sm:$0xff]  }
  0x1b   : > { %s6593_s30 = smov (!%p596_p3, %s4411_s30), 1  ;;  %4861 = vmatprep.mubr.msk.f32.mxu0 %vm5459_vm0, %v5460_v14  ;;  %4864 = vmatprep.subr.bf16.mxu1 %v5460_v14  ;;  %s6561_s21 = sld [smem:[#allocation7_spill]]  ;;  %v4421_v50 = vld [vmem:[%s6492_s4] ss:$0 sm:$0xff]  ;;  %vm809_vm3 = vcmask 64512   ;;  %vm875_vm5 = vcmask 1043456  }
  0x1c   : > { %6558 = sst [smem:[#allocation3_spill]] %s6593_s30  ;;  %s6510_s26 = sshll.u32 %s6593_s30, 3  ;;  %4868 = vmatprep.mubr.msk.bf16.mxu1 %vm5459_vm0, %v5460_v14  ;;  %v5646_v29 = vand.u32 127, %v609_v28  ;;  %4865 = vmatpush3.bf16.msra.mxu1 %v5297_v42  ;;  %v4422_v54 = vld [vmem:[%s6494_s6] ss:$0 sm:$0xff]  ;;  %v5697_v63 = vshrl.u32 %v609_v28, 7 }
  0x1d   : > { %4866 = vmatprep.subr.bf16.mxu1 %v5460_v14  ;;  %s6537_s25 = smov 96   ;;  %s6535_s3 = smov 88   ;;  %vm1268_vm6 = vcmask 130048   ;;  %vm1270_vm7 = vcmask 195584   ;;  %vm4331_vm11 = vcmask 0  }
  0x1e   : > { %vm5701_vm4 = vcmp.le.s32.totalorder %v5646_v29, %v5697_v63  ;;  %s6521_s27 = smov 64   ;;  %s6533_s28 = smov 120   ;;  %vm4227_vm9 = vcmp.lt.s32.totalorder %v5646_v29, 11  ;;  %vm4319_vm10 = vcmp.lt.s32.totalorder %v5697_v63, 7 }
  0x1f   : > { %v617_v0 = vld [vmem:[%s6557_s1] sm:$0xff]  ;;  %v618_v1 = vld [vmem:[%s6557_s1 + $0x8] sm:$0xff]  ;;  %v619_v2 = vld [vmem:[%s6557_s1 + $0x10] sm:$0xff]  ;;  %s6511_s29 = smov 56   ;;  %s6529_s20 = smov 112  }
  0x20   : > { %v5246_v5 = vpack.c.bf16 %v618_v1, %v617_v0  ;;  %v620_v6 = vld [vmem:[%s6557_s1 + $0x18] sm:$0xff]  ;;  %v621_v8 = vld [vmem:[%s6557_s1 + $0x20] sm:$0xff]  ;;  %v622_v9 = vld [vmem:[%s6557_s1 + $0x28] sm:$0xff]  ;;  %s599_s23 = scalar_lea.vmem %s6559_s2, %s6510_s26  ;;  %4867 = vmatpush3.bf16.msra.mxu1 %v5298_v43  ;;  %s6519_s22 = smov 72  }
  0x21   : > { %v5249_v7 = vpack.c.bf16 %v620_v6, %v619_v2  ;;  %v608_v10 = vld [vmem:[%s599_s23] sm:$0xff]  ;;  %v5252_v11 = vpack.c.bf16 %v622_v9, %v621_v8  ;;  %v623_v12 = vld [vmem:[%s6557_s1 + $0x30] sm:$0xff]  ;;  %v624_v13 = vld [vmem:[%s6557_s1 + $0x38] sm:$0xff]  ;;  %4872 = vmatprep.subr.bf16.mxu1 %v5460_v14  ;;  %s6527_s2 = smov 104   ;;  %s6531_s23 = smov 80  }
  0x22   : > { %5247 = vmatpush3.bf16.msra.mxu0 %v5246_v5  ;;  %612 = vperm.xlu0 %5296, %v608_v10   ;;  %v625_v15 = vld [vmem:[%s6557_s1 + $0x40] sm:$0xff]  ;;  %v626_v16 = vld [vmem:[%s6557_s1 + $0x48] sm:$0xff]  ;;  %v5255_v17 = vpack.c.bf16 %v624_v13, %v623_v12  ;;  %v627_v18 = vld [vmem:[%s6557_s1 + $0x50] sm:$0xff]  ;;  %s6517_s26 = smov 40   ;;  %s6564_s8 = sld [smem:[#allocation8_spill]] }
  0x23   : > { %5248 = vmatprep.subr.bf16.mxu0 %v5458_v4  ;;  %v628_v19 = vld [vmem:[%s6557_s1 + $0x58] sm:$0xff]  ;;  %v5258_v20 = vpack.c.bf16 %v626_v16, %v625_v15  ;;  %v629_v21 = vld [vmem:[%s6557_s1 + $0x60] sm:$0xff]  ;;  %v630_v22 = vld [vmem:[%s6557_s1 + $0x68] sm:$0xff]  ;;  %s6565_s9 = sld [smem:[#allocation9_spill]]  ;;  %s6566_s10 = sld [smem:[#allocation10_spill]] }
  0x24   : > { %v5261_v23 = vpack.c.bf16 %v628_v19, %v627_v18  ;;  %v631_v24 = vld [vmem:[%s6557_s1 + $0x70] sm:$0xff]  ;;  %v632_v25 = vld [vmem:[%s6557_s1 + $0x78] sm:$0xff]  ;;  %v5264_v26 = vpack.c.bf16 %v630_v22, %v629_v21  ;;  %v633_v32 = vld [vmem:[%s6560_s24] sm:$0xff]  ;;  %s6515_s24 = smov 48   ;;  %s6576_s19 = smov 16  }
  0x25   : > { %v5267_v27 = vpack.c.bf16 %v632_v25, %v631_v24  ;;  %v4420_v48 = vld [vmem:[%s6561_s21] ss:$0 sm:$0xff]  ;;  %s6578_s0 = smov 96   ;;  %s6579_s17 = smov 88  }
  0x26   : > { %5250 = vmatpush3.bf16.msra.mxu0 %v5249_v7  ;;  %s6580_s30 = smov 120   ;;  %s6584_s18 = sld [smem:[#allocation13_spill]] }
  0x27   : > { %5251 = vmatprep.subr.bf16.mxu0 %v5458_v4  ;;  %s6585_s15 = sld [smem:[#allocation3_spill]] }
  0x2a   : > { %5253 = vmatpush3.bf16.msra.mxu0 %v5252_v11 }
  0x2b   : > { %5254 = vmatprep.subr.bf16.mxu0 %v5458_v4 }
  0x2e   : > { %5256 = vmatpush3.bf16.msra.mxu0 %v5255_v17 }
  0x2f   : > { %5257 = vmatprep.subr.bf16.mxu0 %v5458_v4 }
  0x32   : > { %5259 = vmatpush3.bf16.msra.mxu0 %v5258_v20 }
  0x33   : > { %5260 = vmatprep.subr.bf16.mxu0 %v5458_v4 }
  0x36   : > { %5262 = vmatpush3.bf16.msra.mxu0 %v5261_v23 }
  0x37   : > { %5263 = vmatprep.subr.bf16.mxu0 %v5458_v4 }
  0x3a   : > { %5265 = vmatpush3.bf16.msra.mxu0 %v5264_v26 }
  0x3b   : > { %5266 = vmatprep.subr.bf16.mxu0 %v5458_v4 }
  0x3e   : > { %5268 = vmatpush3.bf16.msra.mxu0 %v5267_v27 }
  0x3f   : > { %4902 = vmatprep.subr.bf16.mxu0 %v5460_v14 }
  0xa1   : > { %v5648_v30 = vpop.permute.xlu0 %612 }
  0xa2   : > { %vm614_vm1 = vcmp.eq.s32.totalorder %v5646_v29, %v5648_v30 }
  0xa3   : > { %4862 = vmatmul.mubr.msk.f32.vlgmr.msra.gmra.mrb[0].mxu0 %vm614_vm1, %v5461_v31 }
  0xa4   : > { %4904 = vmatprep.mubr.msk.bf16.mxu0 %vm5459_vm0, %v5460_v14 }
 0x176   : > { %v700_v33 = vpop.f32.mrb[0].mxu0 }
 0x177   : > { %v5661_v34 = vadd.f32 %v700_v33, %v633_v32  ;;  %v4863_v35 = vpop.f32.mrb[1].mxu0 }
 0x179   : > { %v710_v36 = vsel %vm709_vm2, %v5661_v34, 0.0 }
 0x17a   : > { %711 = vadd.xlane.f32.xlu0 %v710_v36 }
 0x207   : > { %v712_v37 = vpop.xlane.xlu0 %711 }
 0x208   : > { %v714_v38 = vmul.f32 0.03125, %v712_v37 }
 0x20a   : > { %v715_v39 = vsub.f32 %v5661_v34, %v714_v38 }
 0x20c   : > { %v716_v40 = vmul.f32 %v715_v39, %v715_v39 }
 0x20e   : > { %v717_v41 = vsel %vm709_vm2, %v716_v40, 0.0 }
 0x20f   : > { %718 = vadd.xlane.f32.xlu1 %v717_v41 }
 0x29c   : > { %v719_v44 = vpop.xlane.xlu1 %718 }
 0x29d   : > { %v720_v45 = vmul.f32 0.03125, %v719_v44 }
 0x29f   : > { %v721_v46 = vadd.f32 1e-05, %v720_v45 }
 0x2a1   : > { %5355 = vrsqrt.f32 %v721_v46 }
 0x2ab   : > { %v5356_v47 = vpop.eup %5355 }
 0x2ac   : > { %v723_v49 = vmul.f32 %v5356_v47, %v715_v39 }
 0x2ae   : > { %v730_v51 = vmul.f32 %v4420_v48, %v723_v49 }
 0x2b0   : > { %v737_v52 = vadd.f32 %v4421_v50, %v730_v51 }
 0x2b2   : > { %v738_v53 = vpack.c.bf16 %v737_v52, %v737_v52 }
 0x2b4   : > { %4869 = vmatmul.mubr.msk.bf16.vlgmr.msra.gmra.mrb[0].mxu1 %vm709_vm2, %v738_v53 }
 0x2b5   : > { %4874 = vmatprep.mubr.msk.bf16.mxu1 %vm5459_vm0, %v5460_v14 }
 0x387   : > { %v799_v55 = vpop.f32.mrb[0].mxu1 }
 0x388   : > { %v800_v56 = vadd.f32 %v4422_v54, %v799_v55  ;;  %v4870_v57 = vpop.f32.mrb[1].mxu1 }
 0x389   : > { %v802_v58 = vpop.f32.mrb[2].mxu1 }
 0x38a   : > { %v5687_v59 = vpack.c.bf16 %v800_v56, %v800_v56  ;;  %v4871_v60 = vpop.f32.mrb[3].mxu1 }
 0x38c   : > { %807 = vrot.lane.b32.xlu1 %v5687_v59, %s6537_s25 }
 0x3fe   : > { %v808_v61 = vpop.permute.xlu1 %807 }
 0x3ff   : > { %v814_v62 = vsel %vm809_vm3, %v808_v61, 0 }
 0x400   : > { %4873 = vmatpush3.bf16.xpose.msra.mxu1 %v814_v62 }
 0x401   : > { %4878 = vmatprep.subr.bf16.mxu1 %v5460_v14 }
 0x407   : > { %4875 = vmatmul.mubr.msk.bf16.vlgmr.msra.gmra.mrb[4].mxu1 %vm809_vm3, %v5687_v59 }
 0x408   : > { %4880 = vmatprep.mubr.msk.bf16.mxu1 %vm5459_vm0, %v5460_v14 }
 0x4da   : > { %v850_v1 = vpop.f32.mrb[4].mxu1 }
 0x4db   : > { %v856_v2 = vmul.f32 0.35355338, %v850_v1  ;;  %v4876_v3 = vpop.f32.mrb[5].mxu1 }
 0x4dc   : > { %v853_v4 = vpop.f32.mrb[6].mxu1 }
 0x4dd   : > { %v4877_v5 = vpop.f32.mrb[7].mxu1  ;;  %v857_v6 = vsel %vm5701_vm4, %v856_v2, -3.4028235e+38 }
 0x4de   : > { %v858_v7 = vsel %vm809_vm3, %v857_v6, -inf }
 0x4df   : > { %859 = vmax.xlane.f32.xlu1 %v858_v7 }
 0x4f0   : > { %921 = vrot.lane.b32.xlu1 %v5687_v59, %s6535_s3 }
 0x56c   : > { %v860_v8 = vpop.xlane.xlu1 %859 }
 0x56d   : > { %v861_v9 = vsub.f32 %v857_v6, %v860_v8 }
 0x56f   : > { %v862_v10 = vmul.f32 1.442695, %v861_v9 }
 0x570   : > { %v922_v19 = vpop.permute.xlu1 %921 }
 0x571   : > { %5357 = vpow2.f32 %v862_v10  ;;  %v927_v21 = vsel %vm809_vm3, %v922_v19, 0 }
 0x57b   : > { %v5358_v11 = vpop.eup %5357 }
 0x57c   : > { %v864_v12 = vsel %vm809_vm3, %v5358_v11, 0.0 }
 0x57d   : > { %865 = vadd.xlane.f32.xlu0 %v864_v12 }
 0x593   : > { %870 = vrot.lane.b32.xlu0 %v5687_v59, %s6521_s27  ;;  %s6525_s27 = smov 16  }
 0x597   : > { %919 = vrot.lane.b32.xlu0 %v5687_v59, %s6533_s28 }
 0x60a   : > { %v866_v13 = vpop.xlane.xlu0 %865 }
 0x60b   : > { %5359 = vrcp.f32 %v866_v13 }
 0x60e   : > { %v871_v15 = vpop.permute.xlu0 %870 }
 0x60f   : > { %v877_v16 = vsel %vm875_vm5, %v871_v15, 0 }
 0x610   : > { %4879 = vmatpush3.bf16.msra.mxu1 %v877_v16 }
 0x611   : > { %4884 = vmatprep.subr.bf16.mxu1 %v5460_v14 }
 0x612   : > { %v920_v22 = vpop.permute.xlu0 %919 }
 0x615   : > { %v5360_v17 = vpop.eup %5359 }
 0x616   : > { %v868_v18 = vmul.f32 %v5360_v17, %v5358_v11 }
 0x618   : > { %v869_v20 = vpack.c.bf16 %v868_v18, %v868_v18 }
 0x61a   : > { %4881 = vmatmul.mubr.msk.bf16.vlgmr.msra.gmra.mrb[8].mxu1 %vm809_vm3, %v869_v20 }
 0x61b   : > { %4885 = vmatpush3.bf16.xpose.msra.mxu1 %v927_v21  ;;  %4886 = vmatprep.mubr.msk.bf16.mxu1 %vm5459_vm0, %v5460_v14 }
 0x61c   : > { %4890 = vmatprep.subr.bf16.mxu1 %v5460_v14 }
 0x622   : > { %4887 = vmatmul.mubr.msk.bf16.vlgmr.msra.gmra.mrb[12].mxu1 %vm809_vm3, %v920_v22 }
 0x623   : > { %4892 = vmatprep.mubr.msk.bf16.mxu1 %vm5459_vm0, %v5460_v14 }
 0x6ed   : > { %v5725_v23 = vpop.f32.mrb[8].mxu1 }
 0x6ee   : > { %v4882_v24 = vpop.f32.mrb[9].mxu1 }
 0x6ef   : > { %v916_v25 = vpop.f32.mrb[10].mxu1 }
 0x6f0   : > { %v4883_v26 = vpop.f32.mrb[11].mxu1 }
 0x6f5   : > { %v963_v27 = vpop.f32.mrb[12].mxu1 }
 0x6f6   : > { %v969_v28 = vmul.f32 0.35355338, %v963_v27  ;;  %v4888_v32 = vpop.f32.mrb[13].mxu1 }
 0x6f7   : > { %v966_v33 = vpop.f32.mrb[14].mxu1 }
 0x6f8   : > { %v4889_v35 = vpop.f32.mrb[15].mxu1  ;;  %v970_v36 = vsel %vm5701_vm4, %v969_v28, -3.4028235e+38 }
 0x6f9   : > { %v971_v37 = vsel %vm809_vm3, %v970_v36, -inf }
 0x6fa   : > { %972 = vmax.xlane.f32.xlu0 %v971_v37 }
 0x710   : > { %983 = vrot.lane.b32.xlu0 %v5687_v59, %s6511_s29  ;;  %s6513_s29 = smov 8  }
 0x714   : > { %1031 = vrot.lane.b32.xlu0 %v5687_v59, %s6529_s20  ;;  %s6568_s20 = smov 112  }
 0x718   : > { %1145 = vrot.lane.b32.xlu0 %v5687_v59, %s6519_s22  ;;  %s6570_s22 = smov 64  }
 0x71c   : > { %1143 = vrot.lane.b32.xlu0 %v5687_v59, %s6527_s2  ;;  %s6572_s2 = smov 56  }
 0x787   : > { %v973_v38 = vpop.xlane.xlu0 %972 }
 0x788   : > { %v974_v39 = vsub.f32 %v970_v36, %v973_v38 }
 0x78a   : > { %v975_v40 = vmul.f32 1.442695, %v974_v39  ;;  %v5299_v39 = vld [vmem:[%s6495_s7] sm:$0xff]  }
 0x78b   : > { %v984_v41 = vpop.permute.xlu0 %983 }
 0x78c   : > { %5361 = vpow2.f32 %v975_v40  ;;  %v989_v42 = vsel %vm875_vm5, %v984_v41, 0  ;;  %v5300_v40 = vld [vmem:[%s6495_s7 + $0x8] sm:$0xff]  }
 0x78d   : > { %4891 = vmatpush3.bf16.msra.mxu1 %v989_v42 }
 0x78e   : > { %4896 = vmatprep.subr.bf16.mxu1 %v5460_v14 }
 0x78f   : > { %v1032_v50 = vpop.permute.xlu0 %1031 }
 0x793   : > { %v1146_v52 = vpop.permute.xlu0 %1145 }
 0x794   : > { %v1151_v53 = vsel %vm809_vm3, %v1146_v52, 0 }
 0x796   : > { %v5362_v43 = vpop.eup %5361 }
 0x797   : > { %v977_v44 = vsel %vm809_vm3, %v5362_v43, 0.0  ;;  %v1144_v54 = vpop.permute.xlu0 %1143 }
 0x798   : > { %978 = vadd.xlane.f32.xlu1 %v977_v44 }
 0x7a9   : > { %1033 = vrot.lane.b32.xlu1 %v5687_v59, %s6531_s23  ;;  %s6569_s23 = smov 104  }
 0x825   : > { %v979_v45 = vpop.xlane.xlu1 %978 }
 0x826   : > { %5363 = vrcp.f32 %v979_v45 }
 0x829   : > { %v1034_v48 = vpop.permute.xlu1 %1033 }
 0x82a   : > { %v1039_v51 = vsel %vm809_vm3, %v1034_v48, 0 }
 0x830   : > { %v5364_v46 = vpop.eup %5363 }
 0x831   : > { %v981_v47 = vmul.f32 %v5364_v46, %v5362_v43 }
 0x833   : > { %v982_v49 = vpack.c.bf16 %v981_v47, %v981_v47 }
 0x835   : > { %4893 = vmatmul.mubr.msk.bf16.vlgmr.msra.gmra.mrb[16].mxu1 %vm809_vm3, %v982_v49 }
 0x836   : > { %4897 = vmatpush3.bf16.xpose.msra.mxu1 %v1039_v51  ;;  %4898 = vmatprep.mubr.msk.bf16.mxu1 %vm5459_vm0, %v5460_v14 }
 0x837   : > { %4908 = vmatprep.subr.bf16.mxu1 %v5460_v14 }
 0x83d   : > { %4899 = vmatmul.mubr.msk.bf16.vlgmr.msra.gmra.mrb[20].mxu1 %vm809_vm3, %v1032_v50 }
 0x83e   : > { %4909 = vmatpush3.bf16.xpose.msra.mxu1 %v1151_v53  ;;  %4910 = vmatprep.mubr.msk.bf16.mxu1 %vm5459_vm0, %v5460_v14 }
 0x83f   : > { %4920 = vmatprep.subr.bf16.mxu1 %v5460_v14 }
 0x845   : > { %4911 = vmatmul.mubr.msk.bf16.vlgmr.msra.gmra.mrb[24].mxu1 %vm809_vm3, %v1144_v54 }
 0x846   : > { %4924 = vmatprep.mubr.msk.bf16.mxu1 %vm5459_vm0, %v5460_v14  ;;  %4921 = vmatpush3.bf16.msra.mxu1 %v5299_v39 }
 0x847   : > { %4922 = vmatprep.subr.bf16.mxu1 %v5460_v14 }
 0x84a   : > { %4923 = vmatpush3.bf16.msra.mxu1 %v5300_v40 }
 0x84b   : > { %4936 = vmatprep.subr.bf16.mxu1 %v5460_v14 }
 0x908   : > { %v1025_v55 = vpop.f32.mrb[16].mxu1 }
 0x909   : > { %v4894_v56 = vpop.f32.mrb[17].mxu1 }
 0x90a   : > { %v1028_v57 = vpop.f32.mrb[18].mxu1 }
 0x90b   : > { %v4895_v58 = vpop.f32.mrb[19].mxu1  ;;  %v4437_v57 = vld [vmem:[%s6564_s8] ss:$0 sm:$0xff] }
 0x910   : > { %v1075_v60 = vpop.f32.mrb[20].mxu1 }
 0x911   : > { %v1081_v61 = vmul.f32 0.35355338, %v1075_v60  ;;  %v4900_v62 = vpop.f32.mrb[21].mxu1 }
 0x912   : > { %v1078_v1 = vpop.f32.mrb[22].mxu1 }
 0x913   : > { %v4901_v2 = vpop.f32.mrb[23].mxu1  ;;  %v1082_v3 = vsel %vm5701_vm4, %v1081_v61, -3.4028235e+38 }
 0x914   : > { %v1083_v4 = vsel %vm809_vm3, %v1082_v3, -inf }
 0x915   : > { %1084 = vmax.xlane.f32.xlu1 %v1083_v4 }
 0x918   : > { %v1187_v5 = vpop.f32.mrb[24].mxu1 }
 0x919   : > { %v1193_v6 = vmul.f32 0.35355338, %v1187_v5  ;;  %v4912_v7 = vpop.f32.mrb[25].mxu1 }
 0x91a   : > { %v1190_v8 = vpop.f32.mrb[26].mxu1  ;;  %v5302_v7 = vld [vmem:[%s6499_s11 + $0x8] sm:$0xff]  }
 0x91b   : > { %v4913_v9 = vpop.f32.mrb[27].mxu1  ;;  %v1194_v10 = vsel %vm5701_vm4, %v1193_v6, -3.4028235e+38  ;;  %v5303_v8 = vld [vmem:[%s6501_s13] sm:$0xff]  }
 0x91c   : > { %v1195_v11 = vsel %vm809_vm3, %v1194_v10, -inf }
 0x91d   : > { %1196 = vmax.xlane.f32.xlu0 %v1195_v11 }
 0x9a2   : > { %v1085_v12 = vpop.xlane.xlu1 %1084 }
 0x9a3   : > { %v1086_v13 = vsub.f32 %v1082_v3, %v1085_v12 }
 0x9a5   : > { %v1087_v15 = vmul.f32 1.442695, %v1086_v13  ;;  %v4438_v13 = vld [vmem:[%s6565_s9] ss:$0 sm:$0xff] }
 0x9a7   : > { %5365 = vpow2.f32 %v1087_v15 }
 0x9aa   : > { %v1197_v16 = vpop.xlane.xlu0 %1196 }
 0x9ab   : > { %v1198_v17 = vsub.f32 %v1194_v10, %v1197_v16  ;;  %v4439_v16 = vld [vmem:[%s6566_s10] ss:$0 sm:$0xff] }
 0x9ad   : > { %v1199_v18 = vmul.f32 1.442695, %v1198_v17 }
 0x9af   : > { %5367 = vpow2.f32 %v1199_v18 }
 0x9b1   : > { %v5366_v19 = vpop.eup %5365 }
 0x9b2   : > { %v1089_v20 = vsel %vm809_vm3, %v5366_v19, 0.0 }
 0x9b3   : > { %1090 = vadd.xlane.f32.xlu0 %v1089_v20  ;;  %v5304_v20 = vld [vmem:[%s6501_s13 + $0x8] sm:$0xff]  }
 0x9b9   : > { %v5368_v21 = vpop.eup %5367 }
 0x9ba   : > { %v1201_v22 = vsel %vm809_vm3, %v5368_v21, 0.0 }
 0x9bb   : > { %1202 = vadd.xlane.f32.xlu1 %v1201_v22  ;;  %v5306_v22 = vld [vmem:[%s6501_s13 + $0x18] sm:$0xff]  }
 0x9c9   : > { %1095 = vrot.lane.b32.xlu0 %v5687_v59, %s6515_s24  ;;  %s6573_s24 = smov 40  }
 0x9cc   : > { %1207 = vrot.lane.b32.xlu1 %v5687_v59, %s6517_s26  ;;  %s6567_s26 = smov 80  }
 0x9d0   : > { %1256 = vrot.lane.b32.xlu1 %v1025_v55, %s6513_s29  ;;  %s6523_s29 = smov 24  }
 0xa40   : > { %v1091_v24 = vpop.xlane.xlu0 %1090 }
 0xa41   : > { %5369 = vrcp.f32 %v1091_v24  ;;  %v5307_v24 = vld [vmem:[%s6501_s13 + $0x20] sm:$0xff]  }
 0xa44   : > { %v1096_v25 = vpop.permute.xlu0 %1095 }
 0xa45   : > { %v1101_v26 = vsel %vm875_vm5, %v1096_v25, 0  ;;  %v5308_v25 = vld [vmem:[%s6501_s13 + $0x28] sm:$0xff]  }
 0xa46   : > { %4903 = vmatpush3.bf16.msra.mxu0 %v1101_v26  ;;  %v5309_v26 = vld [vmem:[%s6501_s13 + $0x30] sm:$0xff]  }
 0xa47   : > { %4914 = vmatprep.subr.bf16.mxu0 %v5460_v14 }
 0xa48   : > { %v1203_v27 = vpop.xlane.xlu1 %1202 }
 0xa49   : > { %5371 = vrcp.f32 %v1203_v27  ;;  %v5310_v27 = vld [vmem:[%s6501_s13 + $0x38] sm:$0xff]  }
 0xa4b   : > { %v5370_v28 = vpop.eup %5369 }
 0xa4c   : > { %v1093_v32 = vmul.f32 %v5370_v28, %v5366_v19  ;;  %v1208_v33 = vpop.permute.xlu1 %1207  ;;  %v4440_v28 = vld [vmem:[%s6500_s12] ss:$0 sm:$0xff] }
 0xa4d   : > { %v1213_v36 = vsel %vm875_vm5, %v1208_v33, 0 }
 0xa4e   : > { %v1094_v35 = vpack.c.bf16 %v1093_v32, %v1093_v32 }
 0xa50   : > { %4905 = vmatmul.mubr.msk.bf16.vlgmr.msra.gmra.mrb[4].mxu0 %vm809_vm3, %v1094_v35  ;;  %v1257_v49 = vpop.permute.xlu1 %1256 }
 0xa51   : > { %4915 = vmatpush3.bf16.msra.mxu0 %v1213_v36  ;;  %4916 = vmatprep.mubr.msk.bf16.mxu0 %vm5459_vm0, %v5460_v14  ;;  %v1267_v51 = vsel %vm809_vm3, %v5725_v23, %v1257_v49 }
 0xa52   : > { %4928 = vmatprep.subr.bf16.mxu0 %v5460_v14 }
 0xa53   : > { %v5372_v59 = vpop.eup %5371 }
 0xa54   : > { %v1205_v37 = vmul.f32 %v5372_v59, %v5368_v21  ;;  %v5305_v21 = vld [vmem:[%s6501_s13 + $0x10] sm:$0xff]  }
 0xa56   : > { %v1206_v38 = vpack.c.bf16 %v1205_v37, %v1205_v37 }
 0xa58   : > { %4917 = vmatmul.mubr.msk.bf16.vlgmr.msra.gmra.mrb[8].mxu0 %vm809_vm3, %v1206_v38 }
 0xa59   : > { %4932 = vmatprep.mubr.msk.bf16.mxu0 %vm5459_vm0, %v5460_v14 }
 0xb23   : > { %v1137_v41 = vpop.f32.mrb[4].mxu0 }
 0xb24   : > { %1260 = vrot.lane.b32.xlu0 %v1137_v41, %s6525_s27  ;;  %v4906_v42 = vpop.f32.mrb[5].mxu0  ;;  %s6571_s27 = smov 72  }
 0xb25   : > { %v1140_v43 = vpop.f32.mrb[6].mxu0 }
 0xb26   : > { %v4907_v44 = vpop.f32.mrb[7].mxu0 }
 0xb2b   : > { %v1249_v45 = vpop.f32.mrb[8].mxu0 }
 0xb2c   : > { %1264 = vrot.lane.b32.xlu1 %v1249_v45, %s6523_s29  ;;  %v4918_v46 = vpop.f32.mrb[9].mxu0  ;;  %s6574_s29 = smov 48  }
 0xb2d   : > { %v1252_v47 = vpop.f32.mrb[10].mxu0 }
 0xb2e   : > { %v4919_v48 = vpop.f32.mrb[11].mxu0 }
 0xb2f   : > { %v4452_v48 = vld [vmem:[%s6502_s14] ss:$0 sm:$0xff] }
 0xb96   : > { %v1261_v50 = vpop.permute.xlu0 %1260 }
 0xb97   : > { %v1269_v52 = vsel %vm1268_vm6, %v1267_v51, %v1261_v50 }
 0xb9e   : > { %v1265_v53 = vpop.permute.xlu1 %1264 }
 0xb9f   : > { %v1271_v54 = vsel %vm1270_vm7, %v1269_v52, %v1265_v53 }
 0xba0   : > { %v1272_v55 = vpack.c.bf16 %v1271_v54, %v1271_v54 }
 0xba2   : > { %4925 = vmatmul.mubr.msk.bf16.vlgmr.msra.gmra.mrb[28].mxu1 %vm709_vm2, %v1272_v55 }
 0xba3   : > { %4952 = vmatprep.mubr.msk.bf16.mxu1 %vm5459_vm0, %v5460_v14  ;;  %4937 = vmatpush3.bf16.msra.mxu1 %v5303_v8 }
 0xba4   : > { %4938 = vmatprep.subr.bf16.mxu1 %v5460_v14 }
 0xba7   : > { %4939 = vmatpush3.bf16.msra.mxu1 %v5304_v20 }
 0xba8   : > { %4940 = vmatprep.subr.bf16.mxu1 %v5460_v14 }
 0xbab   : > { %4941 = vmatpush3.bf16.msra.mxu1 %v5305_v21 }
 0xbac   : > { %4942 = vmatprep.subr.bf16.mxu1 %v5460_v14 }
 0xbaf   : > { %4943 = vmatpush3.bf16.msra.mxu1 %v5306_v22 }
 0xbb0   : > { %4944 = vmatprep.subr.bf16.mxu1 %v5460_v14 }
 0xbb3   : > { %4945 = vmatpush3.bf16.msra.mxu1 %v5307_v24 }
 0xbb4   : > { %4946 = vmatprep.subr.bf16.mxu1 %v5460_v14 }
 0xbb7   : > { %4947 = vmatpush3.bf16.msra.mxu1 %v5308_v25 }
 0xbb8   : > { %4948 = vmatprep.subr.bf16.mxu1 %v5460_v14 }
 0xbbb   : > { %4949 = vmatpush3.bf16.msra.mxu1 %v5309_v26 }
 0xbbc   : > { %4950 = vmatprep.subr.bf16.mxu1 %v5460_v14 }
 0xbbf   : > { %4951 = vmatpush3.bf16.msra.mxu1 %v5310_v27 }
 0xbc0   : > { %4982 = vmatprep.subr.bf16.mxu1 %v5460_v14 }
 0xc75   : > { %v1326_v56 = vpop.f32.mrb[28].mxu1 }
 0xc76   : > { %v1332_v58 = vadd.f32 %v1326_v56, %v5661_v34  ;;  %v4926_v60 = vpop.f32.mrb[29].mxu1  ;;  %v5301_v34 = vld [vmem:[%s6499_s11] sm:$0xff]  }
 0xc77   : > { %v1329_v23 = vpop.f32.mrb[30].mxu1  ;;  %4929 = vmatpush3.bf16.msra.mxu0 %v5301_v34 }
 0xc78   : > { %v5800_v61 = vadd.f32 %v4437_v57, %v1332_v58  ;;  %v4927_v62 = vpop.f32.mrb[31].mxu1  ;;  %4930 = vmatprep.subr.bf16.mxu0 %v5460_v14  ;;  %v5311_v23 = vld [vmem:[%s6493_s5 + $0x10] sm:$0xff]  }
 0xc7a   : > { %v1343_v1 = vsel %vm709_vm2, %v5800_v61, 0.0 }
 0xc7b   : > { %1344 = vadd.xlane.f32.xlu0 %v1343_v1  ;;  %4931 = vmatpush3.bf16.msra.mxu0 %v5302_v7 }
 0xc7c   : > { %4956 = vmatprep.subr.bf16.mxu0 %v5460_v14 }
 0xd08   : > { %v1345_v2 = vpop.xlane.xlu0 %1344 }
 0xd09   : > { %v1346_v3 = vmul.f32 0.03125, %v1345_v2 }
 0xd0b   : > { %v1347_v4 = vsub.f32 %v5800_v61, %v1346_v3 }
 0xd0d   : > { %v1348_v5 = vmul.f32 %v1347_v4, %v1347_v4 }
 0xd0f   : > { %v1349_v6 = vsel %vm709_vm2, %v1348_v5, 0.0 }
 0xd10   : > { %1350 = vadd.xlane.f32.xlu1 %v1349_v6  ;;  %v4456_v6 = vld [vmem:[%s6492_s4 + $0x1] ss:$0 sm:$0xff] }
 0xd9d   : > { %v1351_v9 = vpop.xlane.xlu1 %1350 }
 0xd9e   : > { %v1352_v10 = vmul.f32 0.03125, %v1351_v9  ;;  %v4462_v9 = vld [vmem:[%s6494_s6 + $0x1] ss:$0 sm:$0xff] }
 0xda0   : > { %v1353_v11 = vadd.f32 1e-05, %v1352_v10 }
 0xda2   : > { %5373 = vrsqrt.f32 %v1353_v11 }
 0xdac   : > { %v5374_v12 = vpop.eup %5373 }
 0xdad   : > { %v1355_v15 = vmul.f32 %v5374_v12, %v1347_v4  ;;  %v4455_v4 = vld [vmem:[%s6561_s21 + $0x1] ss:$0 sm:$0xff] }
 0xdaf   : > { %v1362_v17 = vmul.f32 %v4438_v13, %v1355_v15 }
 0xdb1   : > { %v1369_v18 = vadd.f32 %v4439_v16, %v1362_v17 }
 0xdb3   : > { %v1370_v19 = vpack.c.bf16 %v1369_v18, %v1369_v18 }
 0xdb5   : > { %4933 = vmatmul.mubr.msk.bf16.vlgmr.msra.gmra.mrb[12].mxu0 %vm709_vm2, %v1370_v19 }
 0xdb6   : > { %4960 = vmatprep.mubr.msk.bf16.mxu0 %vm5459_vm0, %v5460_v14  ;;  %4957 = vmatpush3.bf16.msra.mxu0 %v5311_v23 }
 0xdb7   : > { %4958 = vmatprep.subr.bf16.mxu0 %v5460_v14 }
 0xe88   : > { %v1431_v32 = vpop.f32.mrb[12].mxu0 }
 0xe89   : > { %v1432_v33 = vadd.f32 %v4440_v28, %v1431_v32  ;;  %v4934_v35 = vpop.f32.mrb[13].mxu0 }
 0xe8a   : > { %v1434_v36 = vpop.f32.mrb[14].mxu0 }
 0xe8b   : > { %v1438_v59 = vmul.f32 0.044715, %v1432_v33  ;;  %v4935_v37 = vpop.f32.mrb[15].mxu0  ;;  %v1437_v43 = vmul.f32 0.5, %v1432_v33 }
 0xe8d   : > { %v1439_v38 = vmul.f32 %v1438_v59, %v1432_v33 }
 0xe8f   : > { %v1440_v39 = vmul.f32 %v1439_v38, %v1432_v33 }
 0xe91   : > { %v1441_v40 = vadd.f32 %v1440_v39, %v1432_v33 }
 0xe93   : > { %v1442_v41 = vmul.f32 0.7978846, %v1441_v40 }
 0xe95   : > { %5375 = vtanh.f32 %v1442_v41 }
 0xe9f   : > { %v5376_v42 = vpop.eup %5375 }
 0xea0   : > { %v1444_v44 = vadd.f32 1.0, %v5376_v42 }
 0xea2   : > { %v1445_v45 = vmul.f32 %v1444_v44, %v1437_v43 }
 0xea4   : > { %v1446_v46 = vpack.c.bf16 %v1445_v45, %v1445_v45 }
 0xea6   : > { %4953 = vmatmul.mubr.bf16.vlgmr.msra.gmra.mrb[32].mxu1 %v1446_v46 }
 0xea7   : > { %4984 = vmatprep.mubr.msk.bf16.mxu1 %vm5459_vm0, %v5460_v14 }
 0xf79   : > { %v1545_v47 = vpop.f32.mrb[32].mxu1 }
 0xf7a   : > { %v1551_v49 = vadd.f32 %v1545_v47, %v5800_v61  ;;  %v4954_v50 = vpop.f32.mrb[33].mxu1  ;;  %v5312_v61 = vld [vmem:[%s6493_s5 + $0x18] sm:$0xff]  }
 0xf7b   : > { %v1548_v51 = vpop.f32.mrb[34].mxu1  ;;  %4959 = vmatpush3.bf16.msra.mxu0 %v5312_v61 }
 0xf7c   : > { %v5864_v52 = vadd.f32 %v4452_v48, %v1551_v49  ;;  %v4955_v53 = vpop.f32.mrb[35].mxu1  ;;  %4964 = vmatprep.subr.bf16.mxu0 %v5460_v14 }
 0xf7e   : > { %v1564_v54 = vsel %vm709_vm2, %v5864_v52, 0.0 }
 0xf7f   : > { %1565 = vadd.xlane.f32.xlu0 %v1564_v54 }
0x100c   : > { %v1566_v55 = vpop.xlane.xlu0 %1565 }
0x100d   : > { %v1567_v56 = vmul.f32 0.03125, %v1566_v55 }
0x100f   : > { %v1568_v57 = vsub.f32 %v5864_v52, %v1567_v56 }
0x1011   : > { %v1569_v58 = vmul.f32 %v1568_v57, %v1568_v57 }
0x1013   : > { %v1570_v60 = vsel %vm709_vm2, %v1569_v58, 0.0 }
0x1014   : > { %1571 = vadd.xlane.f32.xlu0 %v1570_v60 }
0x10a1   : > { %v1572_v62 = vpop.xlane.xlu0 %1571 }
0x10a2   : > { %v1573_v1 = vmul.f32 0.03125, %v1572_v62 }
0x10a4   : > { %v1574_v2 = vadd.f32 1e-05, %v1573_v1 }
0x10a6   : > { %5377 = vrsqrt.f32 %v1574_v2 }
0x10b0   : > { %v5378_v3 = vpop.eup %5377 }
0x10b1   : > { %v1576_v5 = vmul.f32 %v5378_v3, %v1568_v57 }
0x10b3   : > { %v1583_v34 = vmul.f32 %v4455_v4, %v1576_v5 }
0x10b5   : > { %v1590_v7 = vadd.f32 %v4456_v6, %v1583_v34 }
0x10b7   : > { %v1591_v8 = vpack.c.bf16 %v1590_v7, %v1590_v7 }
0x10b9   : > { %4961 = vmatmul.mubr.msk.bf16.vlgmr.msra.gmra.mrb[16].mxu0 %vm709_vm2, %v1591_v8 }
0x10ba   : > { %4966 = vmatprep.mubr.msk.bf16.mxu0 %vm5459_vm0, %v5460_v14 }
0x118c   : > { %v1654_v10 = vpop.f32.mrb[16].mxu0 }
0x118d   : > { %v1655_v11 = vadd.f32 %v4462_v9, %v1654_v10  ;;  %v4962_v12 = vpop.f32.mrb[17].mxu0 }
0x118e   : > { %v1657_v13 = vpop.f32.mrb[18].mxu0 }
0x118f   : > { %v5890_v15 = vpack.c.bf16 %v1655_v11, %v1655_v11  ;;  %v4963_v16 = vpop.f32.mrb[19].mxu0 }
0x1191   : > { %1662 = vrot.lane.b32.xlu1 %v5890_v15, %s6537_s25  ;;  %s6575_s25 = smov 8  }
0x1195   : > { %1774 = vrot.lane.b32.xlu1 %v5890_v15, %s6535_s3  ;;  %s6577_s3 = smov 24  }
0x1199   : > { %1772 = vrot.lane.b32.xlu1 %v5890_v15, %s6533_s28 }
0x119d   : > { %1886 = vrot.lane.b32.xlu1 %v5890_v15, %s6567_s26 }
0x11a1   : > { %1884 = vrot.lane.b32.xlu1 %v5890_v15, %s6568_s20 }
0x11a5   : > { %1996 = vrot.lane.b32.xlu1 %v5890_v15, %s6569_s23 }
0x1203   : > { %v1663_v17 = vpop.permute.xlu1 %1662 }
0x1204   : > { %v1668_v18 = vsel %vm809_vm3, %v1663_v17, 0 }
0x1205   : > { %4965 = vmatpush3.bf16.xpose.msra.mxu0 %v1668_v18 }
0x1206   : > { %4970 = vmatprep.subr.bf16.mxu0 %v5460_v14 }
0x1207   : > { %v1775_v38 = vpop.permute.xlu1 %1774 }
0x1208   : > { %v1780_v43 = vsel %vm809_vm3, %v1775_v38, 0 }
0x120b   : > { %v1773_v42 = vpop.permute.xlu1 %1772 }
0x120c   : > { %4967 = vmatmul.mubr.msk.bf16.vlgmr.msra.gmra.mrb[20].mxu0 %vm809_vm3, %v5890_v15 }
0x120d   : > { %4972 = vmatprep.mubr.msk.bf16.mxu0 %vm5459_vm0, %v5460_v14 }
0x120f   : > { %v1887_v44 = vpop.permute.xlu1 %1886 }
0x1210   : > { %v1892_v45 = vsel %vm809_vm3, %v1887_v44, 0 }
0x1213   : > { %v1885_v47 = vpop.permute.xlu1 %1884 }
0x1217   : > { %v1997_v49 = vpop.permute.xlu1 %1996 }
0x12df   : > { %v1704_v19 = vpop.f32.mrb[20].mxu0 }
0x12e0   : > { %v1710_v20 = vmul.f32 0.35355338, %v1704_v19  ;;  %v4968_v21 = vpop.f32.mrb[21].mxu0 }
0x12e1   : > { %v1707_v22 = vpop.f32.mrb[22].mxu0 }
0x12e2   : > { %v4969_v24 = vpop.f32.mrb[23].mxu0  ;;  %v1711_v25 = vsel %vm5701_vm4, %v1710_v20, -3.4028235e+38 }
0x12e3   : > { %v1712_v26 = vsel %vm809_vm3, %v1711_v25, -inf }
0x12e4   : > { %1713 = vmax.xlane.f32.xlu0 %v1712_v26 }
0x1371   : > { %v1714_v27 = vpop.xlane.xlu0 %1713 }
0x1372   : > { %v1715_v28 = vsub.f32 %v1711_v25, %v1714_v27 }
0x1374   : > { %v1716_v32 = vmul.f32 1.442695, %v1715_v28 }
0x1376   : > { %5379 = vpow2.f32 %v1716_v32 }
0x1380   : > { %v5380_v33 = vpop.eup %5379 }
0x1381   : > { %v1718_v35 = vsel %vm809_vm3, %v5380_v33, 0.0 }
0x1382   : > { %1719 = vadd.xlane.f32.xlu0 %v1718_v35 }
0x1398   : > { %1724 = vrot.lane.b32.xlu0 %v5890_v15, %s6570_s22 }
0x139c   : > { %1998 = vrot.lane.b32.xlu0 %v5890_v15, %s6571_s27 }
0x140f   : > { %v1720_v36 = vpop.xlane.xlu0 %1719 }
0x1410   : > { %5381 = vrcp.f32 %v1720_v36 }
0x1413   : > { %v1725_v59 = vpop.permute.xlu0 %1724 }
0x1414   : > { %v1730_v37 = vsel %vm875_vm5, %v1725_v59, 0 }
0x1415   : > { %4971 = vmatpush3.bf16.msra.mxu0 %v1730_v37 }
0x1416   : > { %4976 = vmatprep.subr.bf16.mxu0 %v5460_v14 }
0x1417   : > { %v1999_v46 = vpop.permute.xlu0 %1998 }
0x1418   : > { %v2004_v48 = vsel %vm809_vm3, %v1999_v46, 0 }
0x141a   : > { %v5382_v39 = vpop.eup %5381 }
0x141b   : > { %v1722_v40 = vmul.f32 %v5382_v39, %v5380_v33 }
0x141d   : > { %v1723_v41 = vpack.c.bf16 %v1722_v40, %v1722_v40 }
0x141f   : > { %4973 = vmatmul.mubr.msk.bf16.vlgmr.msra.gmra.mrb[24].mxu0 %vm809_vm3, %v1723_v41 }
0x1420   : > { %4977 = vmatpush3.bf16.xpose.msra.mxu0 %v1780_v43  ;;  %4978 = vmatprep.mubr.msk.bf16.mxu0 %vm5459_vm0, %v5460_v14 }
0x1421   : > { %4988 = vmatprep.subr.bf16.mxu0 %v5460_v14 }
0x1427   : > { %4979 = vmatmul.mubr.msk.bf16.vlgmr.msra.gmra.mrb[28].mxu0 %vm809_vm3, %v1773_v42 }
0x1428   : > { %4989 = vmatpush3.bf16.xpose.msra.mxu0 %v1892_v45  ;;  %4990 = vmatprep.mubr.msk.bf16.mxu0 %vm5459_vm0, %v5460_v14 }
0x1429   : > { %5000 = vmatprep.subr.bf16.mxu0 %v5460_v14 }
0x142f   : > { %4991 = vmatmul.mubr.msk.bf16.vlgmr.msra.gmra.mrb[32].mxu0 %vm809_vm3, %v1885_v47 }
0x1430   : > { %5001 = vmatpush3.bf16.xpose.msra.mxu0 %v2004_v48  ;;  %5002 = vmatprep.mubr.msk.bf16.mxu0 %vm5459_vm0, %v5460_v14 }
0x1431   : > { %5012 = vmatprep.subr.bf16.mxu0 %v5460_v14 }
0x1437   : > { %5003 = vmatmul.mubr.msk.bf16.vlgmr.msra.gmra.mrb[36].mxu0 %vm809_vm3, %v1997_v49 }
0x1438   : > { %5016 = vmatprep.mubr.msk.bf16.mxu0 %vm5459_vm0, %v5460_v14 }
0x14f2   : > { %v5938_v50 = vpop.f32.mrb[24].mxu0 }
0x14f3   : > { %v4974_v51 = vpop.f32.mrb[25].mxu0 }
0x14f4   : > { %v1769_v53 = vpop.f32.mrb[26].mxu0 }
0x14f5   : > { %v4975_v54 = vpop.f32.mrb[27].mxu0  ;;  %v5313_v53 = vld [vmem:[%s6495_s7 + $0x10] sm:$0xff]  }
0x14f6   : > { %5013 = vmatpush3.bf16.msra.mxu0 %v5313_v53 }
0x14f7   : > { %5014 = vmatprep.subr.bf16.mxu0 %v5460_v14 }
0x14fa   : > { %v1816_v55 = vpop.f32.mrb[28].mxu0 }
0x14fb   : > { %v1822_v56 = vmul.f32 0.35355338, %v1816_v55  ;;  %v4980_v57 = vpop.f32.mrb[29].mxu0 }
0x14fc   : > { %v1819_v58 = vpop.f32.mrb[30].mxu0 }
0x14fd   : > { %v4981_v60 = vpop.f32.mrb[31].mxu0  ;;  %v1823_v23 = vsel %vm5701_vm4, %v1822_v56, -3.4028235e+38  ;;  %v5314_v58 = vld [vmem:[%s6495_s7 + $0x18] sm:$0xff]  }
0x14fe   : > { %v1824_v61 = vsel %vm809_vm3, %v1823_v23, -inf  ;;  %5015 = vmatpush3.bf16.msra.mxu0 %v5314_v58 }
0x14ff   : > { %1825 = vmax.xlane.f32.xlu0 %v1824_v61  ;;  %5028 = vmatprep.subr.bf16.mxu0 %v5460_v14 }
0x1502   : > { %v1928_v62 = vpop.f32.mrb[32].mxu0 }
0x1503   : > { %v1934_v1 = vmul.f32 0.35355338, %v1928_v62  ;;  %v4992_v2 = vpop.f32.mrb[33].mxu0 }
0x1504   : > { %v1931_v3 = vpop.f32.mrb[34].mxu0 }
0x1505   : > { %v4993_v4 = vpop.f32.mrb[35].mxu0  ;;  %v1935_v5 = vsel %vm5701_vm4, %v1934_v1, -3.4028235e+38 }
0x1506   : > { %v1936_v6 = vsel %vm809_vm3, %v1935_v5, -inf }
0x1507   : > { %1937 = vmax.xlane.f32.xlu1 %v1936_v6 }
0x150a   : > { %v2040_v34 = vpop.f32.mrb[36].mxu0 }
0x150b   : > { %v2046_v7 = vmul.f32 0.35355338, %v2040_v34  ;;  %v5004_v8 = vpop.f32.mrb[37].mxu0 }
0x150c   : > { %v2043_v9 = vpop.f32.mrb[38].mxu0 }
0x150d   : > { %v5005_v10 = vpop.f32.mrb[39].mxu0  ;;  %v2047_v11 = vsel %vm5701_vm4, %v2046_v7, -3.4028235e+38 }
0x150e   : > { %v2048_v12 = vsel %vm809_vm3, %v2047_v11, -inf }
0x150f   : > { %2049 = vmax.xlane.f32.xlu0 %v2048_v12  ;;  %v4482_v12 = vld [vmem:[%s6564_s8 + $0x1] ss:$0 sm:$0xff] }
0x1518   : > { %1836 = vrot.lane.b32.xlu1 %v5890_v15, %s6572_s2 }
0x158c   : > { %v1826_v13 = vpop.xlane.xlu0 %1825 }
0x158d   : > { %v1827_v16 = vsub.f32 %v1823_v23, %v1826_v13 }
0x158f   : > { %v1828_v17 = vmul.f32 1.442695, %v1827_v16 }
0x1591   : > { %5383 = vpow2.f32 %v1828_v17 }
0x1594   : > { %v1938_v18 = vpop.xlane.xlu1 %1937 }
0x1595   : > { %v1939_v19 = vsub.f32 %v1935_v5, %v1938_v18 }
0x1597   : > { %v1940_v20 = vmul.f32 1.442695, %v1939_v19 }
0x1598   : > { %v1837_v21 = vpop.permute.xlu1 %1836 }
0x1599   : > { %5385 = vpow2.f32 %v1940_v20  ;;  %v1842_v22 = vsel %vm875_vm5, %v1837_v21, 0 }
0x159a   : > { %4983 = vmatpush3.bf16.msra.mxu1 %v1842_v22 }
0x159b   : > { %v5384_v24 = vpop.eup %5383  ;;  %4994 = vmatprep.subr.bf16.mxu1 %v5460_v14 }
0x159c   : > { %v2050_v25 = vpop.xlane.xlu0 %2049  ;;  %v1830_v26 = vsel %vm809_vm3, %v5384_v24, 0.0 }
0x159d   : > { %v2051_v27 = vsub.f32 %v2047_v11, %v2050_v25  ;;  %1831 = vadd.xlane.f32.xlu0 %v1830_v26  ;;  %v5316_v26 = vld [vmem:[%s6499_s11 + $0x18] sm:$0xff]  }
0x159f   : > { %v2052_v28 = vmul.f32 1.442695, %v2051_v27  ;;  %v5317_v27 = vld [vmem:[%s6501_s13 + $0x40] sm:$0xff]  }
0x15a1   : > { %5387 = vpow2.f32 %v2052_v28 }
0x15a3   : > { %v5386_v32 = vpop.eup %5385 }
0x15a4   : > { %v1942_v33 = vsel %vm809_vm3, %v5386_v32, 0.0 }
0x15a5   : > { %1943 = vadd.xlane.f32.xlu1 %v1942_v33 }
0x15ab   : > { %v5388_v35 = vpop.eup %5387 }
0x15ac   : > { %v2054_v36 = vsel %vm809_vm3, %v5388_v35, 0.0 }
0x15ad   : > { %2055 = vadd.xlane.f32.xlu0 %v2054_v36  ;;  %v4485_v36 = vld [vmem:[%s6565_s9 + $0x1] ss:$0 sm:$0xff] }
0x15b6   : > { %2060 = vrot.lane.b32.xlu1 %v5890_v15, %s6573_s24 }
0x15c3   : > { %1948 = vrot.lane.b32.xlu0 %v5890_v15, %s6574_s29 }
0x162a   : > { %v1832_v59 = vpop.xlane.xlu0 %1831 }
0x162b   : > { %5389 = vrcp.f32 %v1832_v59 }
0x1632   : > { %v1944_v37 = vpop.xlane.xlu1 %1943 }
0x1633   : > { %5391 = vrcp.f32 %v1944_v37  ;;  %v4486_v37 = vld [vmem:[%s6566_s10 + $0x1] ss:$0 sm:$0xff] }
0x1635   : > { %v5390_v38 = vpop.eup %5389 }
0x1636   : > { %v1834_v39 = vmul.f32 %v5390_v38, %v5384_v24  ;;  %v2061_v15 = vpop.permute.xlu1 %2060 }
0x1637   : > { %v2066_v47 = vsel %vm875_vm5, %v2061_v15, 0  ;;  %v5323_v15 = vld [vmem:[%s6501_s13 + $0x70] sm:$0xff]  }
0x1638   : > { %v1835_v40 = vpack.c.bf16 %v1834_v39, %v1834_v39 }
0x163a   : > { %4985 = vmatmul.mubr.msk.bf16.vlgmr.msra.gmra.mrb[36].mxu1 %vm809_vm3, %v1835_v40  ;;  %v2056_v41 = vpop.xlane.xlu0 %2055 }
0x163b   : > { %5393 = vrcp.f32 %v2056_v41  ;;  %4996 = vmatprep.mubr.msk.bf16.mxu1 %vm5459_vm0, %v5460_v14  ;;  %v5318_v41 = vld [vmem:[%s6501_s13 + $0x48] sm:$0xff]  }
0x163d   : > { %v5392_v42 = vpop.eup %5391 }
0x163e   : > { %v1946_v43 = vmul.f32 %v5392_v42, %v5386_v32  ;;  %v1949_v44 = vpop.permute.xlu0 %1948  ;;  %v5319_v42 = vld [vmem:[%s6501_s13 + $0x50] sm:$0xff]  }
0x163f   : > { %v1954_v45 = vsel %vm875_vm5, %v1949_v44, 0  ;;  %v5321_v44 = vld [vmem:[%s6501_s13 + $0x60] sm:$0xff]  }
0x1640   : > { %4995 = vmatpush3.bf16.msra.mxu1 %v1954_v45  ;;  %v1947_v46 = vpack.c.bf16 %v1946_v43, %v1946_v43  ;;  %v5320_v43 = vld [vmem:[%s6501_s13 + $0x58] sm:$0xff]   ;;  %v5322_v45 = vld [vmem:[%s6501_s13 + $0x68] sm:$0xff]  }
0x1641   : > { %5006 = vmatprep.subr.bf16.mxu1 %v5460_v14 }
0x1643   : > { %4997 = vmatmul.mubr.msk.bf16.vlgmr.msra.gmra.mrb[40].mxu1 %vm809_vm3, %v1947_v46  ;;  %v5324_v46 = vld [vmem:[%s6501_s13 + $0x78] sm:$0xff]  }
0x1644   : > { %5007 = vmatpush3.bf16.msra.mxu1 %v2066_v47  ;;  %5008 = vmatprep.mubr.msk.bf16.mxu1 %vm5459_vm0, %v5460_v14  ;;  %v4492_v47 = vld [vmem:[%s6500_s12 + $0x1] ss:$0 sm:$0xff] }
0x1645   : > { %v5394_v48 = vpop.eup %5393  ;;  %5020 = vmatprep.subr.bf16.mxu1 %v5460_v14 }
0x1646   : > { %v2058_v49 = vmul.f32 %v5394_v48, %v5388_v35 }
0x1648   : > { %v2059_v51 = vpack.c.bf16 %v2058_v49, %v2058_v49 }
0x164b   : > { %5009 = vmatmul.mubr.msk.bf16.vlgmr.msra.gmra.mrb[44].mxu1 %vm809_vm3, %v2059_v51 }
0x164c   : > { %5024 = vmatprep.mubr.msk.bf16.mxu1 %vm5459_vm0, %v5460_v14 }
0x170d   : > { %v1878_v54 = vpop.f32.mrb[36].mxu1 }
0x170e   : > { %2109 = vrot.lane.b32.xlu1 %v1878_v54, %s6575_s25  ;;  %v4986_v55 = vpop.f32.mrb[37].mxu1 }
0x170f   : > { %v1881_v56 = vpop.f32.mrb[38].mxu1 }
0x1710   : > { %v4987_v57 = vpop.f32.mrb[39].mxu1 }
0x1716   : > { %v1990_v60 = vpop.f32.mrb[40].mxu1 }
0x1717   : > { %2113 = vrot.lane.b32.xlu0 %v1990_v60, %s6576_s19  ;;  %v4998_v23 = vpop.f32.mrb[41].mxu1 }
0x1718   : > { %v1993_v61 = vpop.f32.mrb[42].mxu1 }
0x1719   : > { %v4999_v62 = vpop.f32.mrb[43].mxu1 }
0x171e   : > { %v2102_v1 = vpop.f32.mrb[44].mxu1 }
0x171f   : > { %2117 = vrot.lane.b32.xlu1 %v2102_v1, %s6577_s3  ;;  %v5010_v2 = vpop.f32.mrb[45].mxu1 }
0x1720   : > { %v2105_v3 = vpop.f32.mrb[46].mxu1 }
0x1721   : > { %v5011_v4 = vpop.f32.mrb[47].mxu1 }
0x1722   : > { %v4521_v4 = vld [vmem:[%s6502_s14 + $0x1] ss:$0 sm:$0xff] }
0x1780   : > { %v2110_v5 = vpop.permute.xlu1 %2109 }
0x1781   : > { %v2120_v34 = vsel %vm809_vm3, %v5938_v50, %v2110_v5 }
0x1789   : > { %v2114_v6 = vpop.permute.xlu0 %2113 }
0x178a   : > { %v2121_v7 = vsel %vm1268_vm6, %v2120_v34, %v2114_v6 }
0x1791   : > { %v2118_v8 = vpop.permute.xlu1 %2117 }
0x1792   : > { %v2122_v9 = vsel %vm1270_vm7, %v2121_v7, %v2118_v8 }
0x1793   : > { %v2123_v10 = vpack.c.bf16 %v2122_v9, %v2122_v9 }
0x1795   : > { %5017 = vmatmul.mubr.msk.bf16.vlgmr.msra.gmra.mrb[40].mxu0 %vm709_vm2, %v2123_v10 }
0x1796   : > { %5044 = vmatprep.mubr.msk.bf16.mxu0 %vm5459_vm0, %v5460_v14  ;;  %5029 = vmatpush3.bf16.msra.mxu0 %v5317_v27 }
0x1797   : > { %5030 = vmatprep.subr.bf16.mxu0 %v5460_v14 }
0x179a   : > { %5031 = vmatpush3.bf16.msra.mxu0 %v5318_v41 }
0x179b   : > { %5032 = vmatprep.subr.bf16.mxu0 %v5460_v14 }
0x179e   : > { %5033 = vmatpush3.bf16.msra.mxu0 %v5319_v42 }
0x179f   : > { %5034 = vmatprep.subr.bf16.mxu0 %v5460_v14 }
0x17a2   : > { %5035 = vmatpush3.bf16.msra.mxu0 %v5320_v43 }
0x17a3   : > { %5036 = vmatprep.subr.bf16.mxu0 %v5460_v14 }
0x17a6   : > { %5037 = vmatpush3.bf16.msra.mxu0 %v5321_v44 }
0x17a7   : > { %5038 = vmatprep.subr.bf16.mxu0 %v5460_v14 }
0x17aa   : > { %5039 = vmatpush3.bf16.msra.mxu0 %v5322_v45 }
0x17ab   : > { %5040 = vmatprep.subr.bf16.mxu0 %v5460_v14 }
0x17ae   : > { %5041 = vmatpush3.bf16.msra.mxu0 %v5323_v15 }
0x17af   : > { %5042 = vmatprep.subr.bf16.mxu0 %v5460_v14 }
0x17b2   : > { %5043 = vmatpush3.bf16.msra.mxu0 %v5324_v46 }
0x17b3   : > { %5074 = vmatprep.subr.bf16.mxu0 %v5460_v14 }
0x1868   : > { %v2178_v11 = vpop.f32.mrb[40].mxu0 }
0x1869   : > { %v2184_v13 = vadd.f32 %v2178_v11, %v5864_v52  ;;  %v5018_v16 = vpop.f32.mrb[41].mxu0  ;;  %v5315_v52 = vld [vmem:[%s6499_s11 + $0x10] sm:$0xff]  }
0x186a   : > { %v2181_v50 = vpop.f32.mrb[42].mxu0  ;;  %5021 = vmatpush3.bf16.msra.mxu1 %v5315_v52 }
0x186b   : > { %v5995_v17 = vadd.f32 %v4482_v12, %v2184_v13  ;;  %v5019_v18 = vpop.f32.mrb[43].mxu0  ;;  %5022 = vmatprep.subr.bf16.mxu1 %v5460_v14  ;;  %v5325_v50 = vld [vmem:[%s6493_s5 + $0x20] sm:$0xff]  }
0x186d   : > { %v2198_v19 = vsel %vm709_vm2, %v5995_v17, 0.0 }
0x186e   : > { %2199 = vadd.xlane.f32.xlu0 %v2198_v19  ;;  %5023 = vmatpush3.bf16.msra.mxu1 %v5316_v26 }
0x186f   : > { %5048 = vmatprep.subr.bf16.mxu1 %v5460_v14 }
0x18fb   : > { %v2200_v20 = vpop.xlane.xlu0 %2199 }
0x18fc   : > { %v2201_v21 = vmul.f32 0.03125, %v2200_v20 }
0x18fe   : > { %v2202_v22 = vsub.f32 %v5995_v17, %v2201_v21 }
0x1900   : > { %v2203_v24 = vmul.f32 %v2202_v22, %v2202_v22 }
0x1902   : > { %v2204_v25 = vsel %vm709_vm2, %v2203_v24, 0.0 }
0x1903   : > { %2205 = vadd.xlane.f32.xlu1 %v2204_v25  ;;  %v4525_v25 = vld [vmem:[%s6492_s4 + $0x2] ss:$0 sm:$0xff] }
0x1990   : > { %v2206_v28 = vpop.xlane.xlu1 %2205 }
0x1991   : > { %v2207_v32 = vmul.f32 0.03125, %v2206_v28  ;;  %v4531_v28 = vld [vmem:[%s6494_s6 + $0x2] ss:$0 sm:$0xff] }
0x1993   : > { %v2208_v33 = vadd.f32 1e-05, %v2207_v32 }
0x1995   : > { %5395 = vrsqrt.f32 %v2208_v33 }
0x199f   : > { %v5396_v35 = vpop.eup %5395 }
0x19a0   : > { %v2210_v59 = vmul.f32 %v5396_v35, %v2202_v22  ;;  %v4524_v22 = vld [vmem:[%s6561_s21 + $0x2] ss:$0 sm:$0xff] }
0x19a2   : > { %v2217_v38 = vmul.f32 %v4485_v36, %v2210_v59 }
0x19a4   : > { %v2224_v39 = vadd.f32 %v4486_v37, %v2217_v38 }
0x19a6   : > { %v2225_v40 = vpack.c.bf16 %v2224_v39, %v2224_v39 }
0x19a8   : > { %5025 = vmatmul.mubr.msk.bf16.vlgmr.msra.gmra.mrb[48].mxu1 %vm709_vm2, %v2225_v40 }
0x19a9   : > { %5052 = vmatprep.mubr.msk.bf16.mxu1 %vm5459_vm0, %v5460_v14  ;;  %5049 = vmatpush3.bf16.msra.mxu1 %v5325_v50 }
0x19aa   : > { %5050 = vmatprep.subr.bf16.mxu1 %v5460_v14 }
0x1a7b   : > { %v2288_v48 = vpop.f32.mrb[48].mxu1 }
0x1a7c   : > { %v2289_v49 = vadd.f32 %v4492_v47, %v2288_v48  ;;  %v5026_v51 = vpop.f32.mrb[49].mxu1 }
0x1a7d   : > { %v2291_v53 = vpop.f32.mrb[50].mxu1 }
0x1a7e   : > { %v2295_v54 = vmul.f32 0.044715, %v2289_v49  ;;  %v5027_v55 = vpop.f32.mrb[51].mxu1  ;;  %v2294_v61 = vmul.f32 0.5, %v2289_v49 }
0x1a80   : > { %v2296_v56 = vmul.f32 %v2295_v54, %v2289_v49 }
0x1a82   : > { %v2297_v57 = vmul.f32 %v2296_v56, %v2289_v49 }
0x1a84   : > { %v2298_v58 = vadd.f32 %v2297_v57, %v2289_v49 }
0x1a86   : > { %v2299_v60 = vmul.f32 0.7978846, %v2298_v58 }
0x1a88   : > { %5397 = vtanh.f32 %v2299_v60 }
0x1a92   : > { %v5398_v23 = vpop.eup %5397 }
0x1a93   : > { %v2301_v62 = vadd.f32 1.0, %v5398_v23 }
0x1a95   : > { %v2302_v1 = vmul.f32 %v2301_v62, %v2294_v61 }
0x1a97   : > { %v2303_v2 = vpack.c.bf16 %v2302_v1, %v2302_v1 }
0x1a99   : > { %5045 = vmatmul.mubr.bf16.vlgmr.msra.gmra.mrb[44].mxu0 %v2303_v2 }
0x1a9a   : > { %5076 = vmatprep.mubr.msk.bf16.mxu0 %vm5459_vm0, %v5460_v14 }
0x1b6c   : > { %v2403_v3 = vpop.f32.mrb[44].mxu0 }
0x1b6d   : > { %v2409_v5 = vadd.f32 %v2403_v3, %v5995_v17  ;;  %v5046_v6 = vpop.f32.mrb[45].mxu0  ;;  %v5326_v17 = vld [vmem:[%s6493_s5 + $0x28] sm:$0xff]  }
0x1b6e   : > { %v2406_v34 = vpop.f32.mrb[46].mxu0  ;;  %5051 = vmatpush3.bf16.msra.mxu1 %v5326_v17 }
0x1b6f   : > { %v6059_v7 = vadd.f32 %v4521_v4, %v2409_v5  ;;  %v5047_v8 = vpop.f32.mrb[47].mxu0  ;;  %5056 = vmatprep.subr.bf16.mxu1 %v5460_v14 }
0x1b71   : > { %v2423_v9 = vsel %vm709_vm2, %v6059_v7, 0.0 }
0x1b72   : > { %2424 = vadd.xlane.f32.xlu0 %v2423_v9 }
0x1bff   : > { %v2425_v10 = vpop.xlane.xlu0 %2424 }
0x1c00   : > { %v2426_v11 = vmul.f32 0.03125, %v2425_v10 }
0x1c02   : > { %v2427_v12 = vsub.f32 %v6059_v7, %v2426_v11 }
0x1c04   : > { %v2428_v13 = vmul.f32 %v2427_v12, %v2427_v12 }
0x1c06   : > { %v2429_v16 = vsel %vm709_vm2, %v2428_v13, 0.0 }
0x1c07   : > { %2430 = vadd.xlane.f32.xlu0 %v2429_v16 }
0x1c94   : > { %v2431_v18 = vpop.xlane.xlu0 %2430 }
0x1c95   : > { %v2432_v19 = vmul.f32 0.03125, %v2431_v18 }
0x1c97   : > { %v2433_v20 = vadd.f32 1e-05, %v2432_v19 }
0x1c99   : > { %5399 = vrsqrt.f32 %v2433_v20 }
0x1ca3   : > { %v5400_v21 = vpop.eup %5399 }
0x1ca4   : > { %v2435_v24 = vmul.f32 %v5400_v21, %v2427_v12 }
0x1ca6   : > { %v2442_v52 = vmul.f32 %v4524_v22, %v2435_v24 }
0x1ca8   : > { %v2449_v26 = vadd.f32 %v4525_v25, %v2442_v52 }
0x1caa   : > { %v2450_v27 = vpack.c.bf16 %v2449_v26, %v2449_v26 }
0x1cac   : > { %5053 = vmatmul.mubr.msk.bf16.vlgmr.msra.gmra.mrb[52].mxu1 %vm709_vm2, %v2450_v27 }
0x1cad   : > { %5058 = vmatprep.mubr.msk.bf16.mxu1 %vm5459_vm0, %v5460_v14 }
0x1d7f   : > { %v2513_v32 = vpop.f32.mrb[52].mxu1 }
0x1d80   : > { %v2514_v33 = vadd.f32 %v4531_v28, %v2513_v32  ;;  %v5054_v35 = vpop.f32.mrb[53].mxu1 }
0x1d81   : > { %v2516_v36 = vpop.f32.mrb[54].mxu1 }
0x1d82   : > { %v6085_v59 = vpack.c.bf16 %v2514_v33, %v2514_v33  ;;  %v5055_v37 = vpop.f32.mrb[55].mxu1 }
0x1d84   : > { %2521 = vrot.lane.b32.xlu1 %v6085_v59, %s6578_s0 }
0x1d88   : > { %2633 = vrot.lane.b32.xlu1 %v6085_v59, %s6579_s17 }
0x1d8c   : > { %2631 = vrot.lane.b32.xlu1 %v6085_v59, %s6580_s30 }
0x1d90   : > { %2745 = vrot.lane.b32.xlu1 %v6085_v59, %s6567_s26 }
0x1d94   : > { %2743 = vrot.lane.b32.xlu1 %v6085_v59, %s6568_s20 }
0x1d98   : > { %2855 = vrot.lane.b32.xlu1 %v6085_v59, %s6569_s23 }
0x1df6   : > { %v2522_v38 = vpop.permute.xlu1 %2521 }
0x1df7   : > { %v2527_v39 = vsel %vm809_vm3, %v2522_v38, 0 }
0x1df8   : > { %5057 = vmatpush3.bf16.xpose.msra.mxu1 %v2527_v39 }
0x1df9   : > { %5062 = vmatprep.subr.bf16.mxu1 %v5460_v14 }
0x1dfa   : > { %v2634_v56 = vpop.permute.xlu1 %2633 }
0x1dfb   : > { %v2639_v61 = vsel %vm809_vm3, %v2634_v56, 0 }
0x1dfe   : > { %v2632_v23 = vpop.permute.xlu1 %2631 }
0x1dff   : > { %5059 = vmatmul.mubr.msk.bf16.vlgmr.msra.gmra.mrb[56].mxu1 %vm809_vm3, %v6085_v59 }
0x1e00   : > { %5064 = vmatprep.mubr.msk.bf16.mxu1 %vm5459_vm0, %v5460_v14 }
0x1e02   : > { %v2746_v62 = vpop.permute.xlu1 %2745 }
0x1e03   : > { %v2751_v1 = vsel %vm809_vm3, %v2746_v62, 0 }
0x1e06   : > { %v2744_v3 = vpop.permute.xlu1 %2743 }
0x1e0a   : > { %v2856_v5 = vpop.permute.xlu1 %2855 }
0x1ed2   : > { %v2563_v40 = vpop.f32.mrb[56].mxu1 }
0x1ed3   : > { %v2569_v41 = vmul.f32 0.35355338, %v2563_v40  ;;  %v5060_v42 = vpop.f32.mrb[57].mxu1 }
0x1ed4   : > { %v2566_v43 = vpop.f32.mrb[58].mxu1 }
0x1ed5   : > { %v5061_v44 = vpop.f32.mrb[59].mxu1  ;;  %v2570_v45 = vsel %vm5701_vm4, %v2569_v41, -3.4028235e+38 }
0x1ed6   : > { %v2571_v15 = vsel %vm809_vm3, %v2570_v45, -inf }
0x1ed7   : > { %2572 = vmax.xlane.f32.xlu0 %v2571_v15 }
0x1f64   : > { %v2573_v46 = vpop.xlane.xlu0 %2572 }
0x1f65   : > { %v2574_v47 = vsub.f32 %v2570_v45, %v2573_v46 }
0x1f67   : > { %v2575_v48 = vmul.f32 1.442695, %v2574_v47 }
0x1f69   : > { %5401 = vpow2.f32 %v2575_v48 }
0x1f73   : > { %v5402_v49 = vpop.eup %5401 }
0x1f74   : > { %v2577_v51 = vsel %vm809_vm3, %v5402_v49, 0.0 }
0x1f75   : > { %2578 = vadd.xlane.f32.xlu0 %v2577_v51 }
0x1f8b   : > { %2583 = vrot.lane.b32.xlu0 %v6085_v59, %s6570_s22 }
0x1f8f   : > { %2857 = vrot.lane.b32.xlu0 %v6085_v59, %s6571_s27 }
0x2002   : > { %v2579_v53 = vpop.xlane.xlu0 %2578 }
0x2003   : > { %5403 = vrcp.f32 %v2579_v53 }
0x2006   : > { %v2584_v54 = vpop.permute.xlu0 %2583 }
0x2007   : > { %v2589_v55 = vsel %vm875_vm5, %v2584_v54, 0 }
0x2008   : > { %5063 = vmatpush3.bf16.msra.mxu1 %v2589_v55 }
0x2009   : > { %5068 = vmatprep.subr.bf16.mxu1 %v5460_v14 }
0x200a   : > { %v2858_v2 = vpop.permute.xlu0 %2857 }
0x200b   : > { %v2863_v4 = vsel %vm809_vm3, %v2858_v2, 0 }
0x200d   : > { %v5404_v57 = vpop.eup %5403 }
0x200e   : > { %v2581_v58 = vmul.f32 %v5404_v57, %v5402_v49 }
0x2010   : > { %v2582_v60 = vpack.c.bf16 %v2581_v58, %v2581_v58 }
0x2012   : > { %5065 = vmatmul.mubr.msk.bf16.vlgmr.msra.gmra.mrb[60].mxu1 %vm809_vm3, %v2582_v60 }
0x2013   : > { %5069 = vmatpush3.bf16.xpose.msra.mxu1 %v2639_v61  ;;  %5070 = vmatprep.mubr.msk.bf16.mxu1 %vm5459_vm0, %v5460_v14 }
0x2014   : > { %5080 = vmatprep.subr.bf16.mxu1 %v5460_v14 }
0x201a   : > { %5071 = vmatmul.mubr.msk.bf16.vlgmr.msra.gmra.mrb[64].mxu1 %vm809_vm3, %v2632_v23 }
0x201b   : > { %5081 = vmatpush3.bf16.xpose.msra.mxu1 %v2751_v1  ;;  %5082 = vmatprep.mubr.msk.bf16.mxu1 %vm5459_vm0, %v5460_v14 }
0x201c   : > { %5092 = vmatprep.subr.bf16.mxu1 %v5460_v14 }
0x2022   : > { %5083 = vmatmul.mubr.msk.bf16.vlgmr.msra.gmra.mrb[68].mxu1 %vm809_vm3, %v2744_v3 }
0x2023   : > { %5093 = vmatpush3.bf16.xpose.msra.mxu1 %v2863_v4  ;;  %5094 = vmatprep.mubr.msk.bf16.mxu1 %vm5459_vm0, %v5460_v14 }
0x2024   : > { %5104 = vmatprep.subr.bf16.mxu1 %v5460_v14 }
0x202a   : > { %5095 = vmatmul.mubr.msk.bf16.vlgmr.msra.gmra.mrb[72].mxu1 %vm809_vm3, %v2856_v5 }
0x202b   : > { %5108 = vmatprep.mubr.msk.bf16.mxu1 %vm5459_vm0, %v5460_v14 }
0x20e5   : > { %v6133_v6 = vpop.f32.mrb[60].mxu1 }
0x20e6   : > { %v5066_v34 = vpop.f32.mrb[61].mxu1 }
0x20e7   : > { %v2628_v8 = vpop.f32.mrb[62].mxu1 }
0x20e8   : > { %v5067_v9 = vpop.f32.mrb[63].mxu1  ;;  %v5327_v8 = vld [vmem:[%s6495_s7 + $0x20] sm:$0xff]  }
0x20e9   : > { %5105 = vmatpush3.bf16.msra.mxu1 %v5327_v8 }
0x20ea   : > { %5106 = vmatprep.subr.bf16.mxu1 %v5460_v14 }
0x20ed   : > { %v2675_v10 = vpop.f32.mrb[64].mxu1 }
0x20ee   : > { %v2681_v11 = vmul.f32 0.35355338, %v2675_v10  ;;  %v5072_v12 = vpop.f32.mrb[65].mxu1 }
0x20ef   : > { %v2678_v13 = vpop.f32.mrb[66].mxu1 }
0x20f0   : > { %v5073_v16 = vpop.f32.mrb[67].mxu1  ;;  %v2682_v50 = vsel %vm5701_vm4, %v2681_v11, -3.4028235e+38  ;;  %v5328_v13 = vld [vmem:[%s6495_s7 + $0x28] sm:$0xff]  }
0x20f1   : > { %v2683_v17 = vsel %vm809_vm3, %v2682_v50, -inf  ;;  %5107 = vmatpush3.bf16.msra.mxu1 %v5328_v13 }
0x20f2   : > { %2684 = vmax.xlane.f32.xlu0 %v2683_v17  ;;  %5120 = vmatprep.subr.bf16.mxu1 %v5460_v14 }
0x20f5   : > { %v2787_v18 = vpop.f32.mrb[68].mxu1 }
0x20f6   : > { %v2793_v19 = vmul.f32 0.35355338, %v2787_v18  ;;  %v5084_v20 = vpop.f32.mrb[69].mxu1 }
0x20f7   : > { %v2790_v21 = vpop.f32.mrb[70].mxu1 }
0x20f8   : > { %v5085_v22 = vpop.f32.mrb[71].mxu1  ;;  %v2794_v24 = vsel %vm5701_vm4, %v2793_v19, -3.4028235e+38 }
0x20f9   : > { %v2795_v25 = vsel %vm809_vm3, %v2794_v24, -inf }
0x20fa   : > { %2796 = vmax.xlane.f32.xlu1 %v2795_v25 }
0x20fd   : > { %v2899_v52 = vpop.f32.mrb[72].mxu1 }
0x20fe   : > { %v2905_v26 = vmul.f32 0.35355338, %v2899_v52  ;;  %v5096_v27 = vpop.f32.mrb[73].mxu1 }
0x20ff   : > { %v2902_v28 = vpop.f32.mrb[74].mxu1 }
0x2100   : > { %v5097_v32 = vpop.f32.mrb[75].mxu1  ;;  %v2906_v33 = vsel %vm5701_vm4, %v2905_v26, -3.4028235e+38 }
0x2101   : > { %v2907_v35 = vsel %vm809_vm3, %v2906_v33, -inf }
0x2102   : > { %2908 = vmax.xlane.f32.xlu0 %v2907_v35  ;;  %v4551_v35 = vld [vmem:[%s6564_s8 + $0x2] ss:$0 sm:$0xff]  ;;  %s6583_s8 = sld [smem:[#allocation10_spill]] }
0x210b   : > { %2695 = vrot.lane.b32.xlu1 %v6085_v59, %s6572_s2 }
0x217f   : > { %v2685_v36 = vpop.xlane.xlu0 %2684 }
0x2180   : > { %v2686_v37 = vsub.f32 %v2682_v50, %v2685_v36 }
0x2182   : > { %v2687_v38 = vmul.f32 1.442695, %v2686_v37 }
0x2184   : > { %5405 = vpow2.f32 %v2687_v38 }
0x2187   : > { %v2797_v39 = vpop.xlane.xlu1 %2796 }
0x2188   : > { %v2798_v40 = vsub.f32 %v2794_v24, %v2797_v39 }
0x218a   : > { %v2799_v41 = vmul.f32 1.442695, %v2798_v40 }
0x218b   : > { %v2696_v42 = vpop.permute.xlu1 %2695 }
0x218c   : > { %5407 = vpow2.f32 %v2799_v41  ;;  %v2701_v43 = vsel %vm875_vm5, %v2696_v42, 0 }
0x218d   : > { %5075 = vmatpush3.bf16.msra.mxu0 %v2701_v43 }
0x218e   : > { %v5406_v44 = vpop.eup %5405  ;;  %5086 = vmatprep.subr.bf16.mxu0 %v5460_v14 }
0x218f   : > { %v2909_v45 = vpop.xlane.xlu0 %2908  ;;  %v2689_v15 = vsel %vm809_vm3, %v5406_v44, 0.0 }
0x2190   : > { %v2910_v46 = vsub.f32 %v2906_v33, %v2909_v45  ;;  %2690 = vadd.xlane.f32.xlu0 %v2689_v15  ;;  %v5330_v15 = vld [vmem:[%s6499_s11 + $0x28] sm:$0xff]  }
0x2192   : > { %v2911_v47 = vmul.f32 1.442695, %v2910_v46  ;;  %v5331_v46 = vld [vmem:[%s6501_s13 + $0x80] sm:$0xff]  }
0x2194   : > { %5409 = vpow2.f32 %v2911_v47 }
0x2196   : > { %v5408_v48 = vpop.eup %5407 }
0x2197   : > { %v2801_v49 = vsel %vm809_vm3, %v5408_v48, 0.0 }
0x2198   : > { %2802 = vadd.xlane.f32.xlu1 %v2801_v49 }
0x219e   : > { %v5410_v51 = vpop.eup %5409 }
0x219f   : > { %v2913_v53 = vsel %vm809_vm3, %v5410_v51, 0.0 }
0x21a0   : > { %2914 = vadd.xlane.f32.xlu0 %v2913_v53  ;;  %v4554_v53 = vld [vmem:[%s6565_s9 + $0x2] ss:$0 sm:$0xff]  ;;  %s6582_s9 = sld [smem:[#allocation9_spill]] }
0x21a9   : > { %2919 = vrot.lane.b32.xlu1 %v6085_v59, %s6573_s24 }
0x21b6   : > { %2807 = vrot.lane.b32.xlu0 %v6085_v59, %s6574_s29 }
0x221d   : > { %v2691_v54 = vpop.xlane.xlu0 %2690 }
0x221e   : > { %5411 = vrcp.f32 %v2691_v54 }
0x2225   : > { %v2803_v55 = vpop.xlane.xlu1 %2802 }
0x2226   : > { %5413 = vrcp.f32 %v2803_v55  ;;  %v4555_v55 = vld [vmem:[%s6566_s10 + $0x2] ss:$0 sm:$0xff] }
0x2228   : > { %v5412_v56 = vpop.eup %5411 }
0x2229   : > { %v2693_v57 = vmul.f32 %v5412_v56, %v5406_v44  ;;  %v2920_v59 = vpop.permute.xlu1 %2919 }
0x222a   : > { %v2925_v3 = vsel %vm875_vm5, %v2920_v59, 0  ;;  %v5337_v59 = vld [vmem:[%s6501_s13 + $0xb0] sm:$0xff]  }
0x222b   : > { %v2694_v58 = vpack.c.bf16 %v2693_v57, %v2693_v57 }
0x222d   : > { %5077 = vmatmul.mubr.msk.bf16.vlgmr.msra.gmra.mrb[48].mxu0 %vm809_vm3, %v2694_v58  ;;  %v2915_v60 = vpop.xlane.xlu0 %2914 }
0x222e   : > { %5415 = vrcp.f32 %v2915_v60  ;;  %5088 = vmatprep.mubr.msk.bf16.mxu0 %vm5459_vm0, %v5460_v14  ;;  %v5332_v60 = vld [vmem:[%s6501_s13 + $0x88] sm:$0xff]  }
0x2230   : > { %v5414_v23 = vpop.eup %5413 }
0x2231   : > { %v2805_v61 = vmul.f32 %v5414_v23, %v5408_v48  ;;  %v2808_v62 = vpop.permute.xlu0 %2807  ;;  %v5333_v23 = vld [vmem:[%s6501_s13 + $0x90] sm:$0xff]  }
0x2232   : > { %v2813_v1 = vsel %vm875_vm5, %v2808_v62, 0  ;;  %v5335_v62 = vld [vmem:[%s6501_s13 + $0xa0] sm:$0xff]  }
0x2233   : > { %5087 = vmatpush3.bf16.msra.mxu0 %v2813_v1  ;;  %v2806_v2 = vpack.c.bf16 %v2805_v61, %v2805_v61  ;;  %v5334_v61 = vld [vmem:[%s6501_s13 + $0x98] sm:$0xff]   ;;  %v5336_v1 = vld [vmem:[%s6501_s13 + $0xa8] sm:$0xff]  }
0x2234   : > { %5098 = vmatprep.subr.bf16.mxu0 %v5460_v14 }
0x2236   : > { %5089 = vmatmul.mubr.msk.bf16.vlgmr.msra.gmra.mrb[52].mxu0 %vm809_vm3, %v2806_v2  ;;  %v5338_v2 = vld [vmem:[%s6501_s13 + $0xb8] sm:$0xff]  }
0x2237   : > { %5099 = vmatpush3.bf16.msra.mxu0 %v2925_v3  ;;  %5100 = vmatprep.mubr.msk.bf16.mxu0 %vm5459_vm0, %v5460_v14  ;;  %v4561_v3 = vld [vmem:[%s6500_s12 + $0x2] ss:$0 sm:$0xff] }
0x2238   : > { %v5416_v4 = vpop.eup %5415  ;;  %5112 = vmatprep.subr.bf16.mxu0 %v5460_v14 }
0x2239   : > { %v2917_v5 = vmul.f32 %v5416_v4, %v5410_v51 }
0x223b   : > { %v2918_v34 = vpack.c.bf16 %v2917_v5, %v2917_v5 }
0x223e   : > { %5101 = vmatmul.mubr.msk.bf16.vlgmr.msra.gmra.mrb[56].mxu0 %vm809_vm3, %v2918_v34 }
0x223f   : > { %5116 = vmatprep.mubr.msk.bf16.mxu0 %vm5459_vm0, %v5460_v14 }
0x2300   : > { %v2737_v9 = vpop.f32.mrb[48].mxu0 }
0x2301   : > { %2968 = vrot.lane.b32.xlu1 %v2737_v9, %s6575_s25  ;;  %v5078_v10 = vpop.f32.mrb[49].mxu0 }
0x2302   : > { %v2740_v11 = vpop.f32.mrb[50].mxu0 }
0x2303   : > { %v5079_v12 = vpop.f32.mrb[51].mxu0 }
0x2309   : > { %v2849_v16 = vpop.f32.mrb[52].mxu0 }
0x230a   : > { %2972 = vrot.lane.b32.xlu0 %v2849_v16, %s6576_s19  ;;  %v5090_v50 = vpop.f32.mrb[53].mxu0 }
0x230b   : > { %v2852_v17 = vpop.f32.mrb[54].mxu0 }
0x230c   : > { %v5091_v18 = vpop.f32.mrb[55].mxu0 }
0x2311   : > { %v2961_v19 = vpop.f32.mrb[56].mxu0 }
0x2312   : > { %2976 = vrot.lane.b32.xlu1 %v2961_v19, %s6577_s3  ;;  %v5102_v20 = vpop.f32.mrb[57].mxu0 }
0x2313   : > { %v2964_v21 = vpop.f32.mrb[58].mxu0 }
0x2314   : > { %v5103_v22 = vpop.f32.mrb[59].mxu0 }
0x2315   : > { %v4590_v22 = vld [vmem:[%s6502_s14 + $0x2] ss:$0 sm:$0xff] }
0x2373   : > { %v2969_v24 = vpop.permute.xlu1 %2968 }
0x2374   : > { %v2979_v52 = vsel %vm809_vm3, %v6133_v6, %v2969_v24 }
0x237c   : > { %v2973_v25 = vpop.permute.xlu0 %2972 }
0x237d   : > { %v2980_v26 = vsel %vm1268_vm6, %v2979_v52, %v2973_v25 }
0x2384   : > { %v2977_v27 = vpop.permute.xlu1 %2976 }
0x2385   : > { %v2981_v28 = vsel %vm1270_vm7, %v2980_v26, %v2977_v27 }
0x2386   : > { %v2982_v32 = vpack.c.bf16 %v2981_v28, %v2981_v28 }
0x2388   : > { %5109 = vmatmul.mubr.msk.bf16.vlgmr.msra.gmra.mrb[76].mxu1 %vm709_vm2, %v2982_v32 }
0x2389   : > { %5136 = vmatprep.mubr.msk.bf16.mxu1 %vm5459_vm0, %v5460_v14  ;;  %5121 = vmatpush3.bf16.msra.mxu1 %v5331_v46 }
0x238a   : > { %5122 = vmatprep.subr.bf16.mxu1 %v5460_v14 }
0x238d   : > { %5123 = vmatpush3.bf16.msra.mxu1 %v5332_v60 }
0x238e   : > { %5124 = vmatprep.subr.bf16.mxu1 %v5460_v14 }
0x2391   : > { %5125 = vmatpush3.bf16.msra.mxu1 %v5333_v23 }
0x2392   : > { %5126 = vmatprep.subr.bf16.mxu1 %v5460_v14 }
0x2395   : > { %5127 = vmatpush3.bf16.msra.mxu1 %v5334_v61 }
0x2396   : > { %5128 = vmatprep.subr.bf16.mxu1 %v5460_v14 }
0x2399   : > { %5129 = vmatpush3.bf16.msra.mxu1 %v5335_v62 }
0x239a   : > { %5130 = vmatprep.subr.bf16.mxu1 %v5460_v14 }
0x239d   : > { %5131 = vmatpush3.bf16.msra.mxu1 %v5336_v1 }
0x239e   : > { %5132 = vmatprep.subr.bf16.mxu1 %v5460_v14 }
0x23a1   : > { %5133 = vmatpush3.bf16.msra.mxu1 %v5337_v59 }
0x23a2   : > { %5134 = vmatprep.subr.bf16.mxu1 %v5460_v14 }
0x23a5   : > { %5135 = vmatpush3.bf16.msra.mxu1 %v5338_v2 }
0x23a6   : > { %5166 = vmatprep.subr.bf16.mxu1 %v5460_v14 }
0x245b   : > { %v3037_v33 = vpop.f32.mrb[76].mxu1 }
0x245c   : > { %v3043_v36 = vadd.f32 %v3037_v33, %v6059_v7  ;;  %v5110_v37 = vpop.f32.mrb[77].mxu1  ;;  %v5329_v7 = vld [vmem:[%s6499_s11 + $0x20] sm:$0xff]  }
0x245d   : > { %v3040_v6 = vpop.f32.mrb[78].mxu1  ;;  %5113 = vmatpush3.bf16.msra.mxu0 %v5329_v7 }
0x245e   : > { %v6190_v38 = vadd.f32 %v4551_v35, %v3043_v36  ;;  %v5111_v39 = vpop.f32.mrb[79].mxu1  ;;  %5114 = vmatprep.subr.bf16.mxu0 %v5460_v14  ;;  %v5339_v6 = vld [vmem:[%s6493_s5 + $0x30] sm:$0xff]  }
0x2460   : > { %v3057_v40 = vsel %vm709_vm2, %v6190_v38, 0.0 }
0x2461   : > { %3058 = vadd.xlane.f32.xlu0 %v3057_v40  ;;  %5115 = vmatpush3.bf16.msra.mxu0 %v5330_v15 }
0x2462   : > { %5140 = vmatprep.subr.bf16.mxu0 %v5460_v14 }
0x24ee   : > { %v3059_v41 = vpop.xlane.xlu0 %3058 }
0x24ef   : > { %v3060_v42 = vmul.f32 0.03125, %v3059_v41 }
0x24f1   : > { %v3061_v43 = vsub.f32 %v6190_v38, %v3060_v42 }
0x24f3   : > { %v3062_v44 = vmul.f32 %v3061_v43, %v3061_v43 }
0x24f5   : > { %v3063_v45 = vsel %vm709_vm2, %v3062_v44, 0.0 }
0x24f6   : > { %3064 = vadd.xlane.f32.xlu1 %v3063_v45  ;;  %v4594_v45 = vld [vmem:[%s6492_s4 + $0x3] ss:$0 sm:$0xff] }
0x2583   : > { %v3065_v47 = vpop.xlane.xlu1 %3064 }
0x2584   : > { %v3066_v48 = vmul.f32 0.03125, %v3065_v47  ;;  %v4600_v47 = vld [vmem:[%s6494_s6 + $0x3] ss:$0 sm:$0xff] }
0x2586   : > { %v3067_v49 = vadd.f32 1e-05, %v3066_v48 }
0x2588   : > { %5417 = vrsqrt.f32 %v3067_v49 }
0x2592   : > { %v5418_v51 = vpop.eup %5417 }
0x2593   : > { %v3069_v54 = vmul.f32 %v5418_v51, %v3061_v43  ;;  %v4593_v43 = vld [vmem:[%s6561_s21 + $0x3] ss:$0 sm:$0xff] }
0x2595   : > { %v3076_v56 = vmul.f32 %v4554_v53, %v3069_v54 }
0x2597   : > { %v3083_v57 = vadd.f32 %v4555_v55, %v3076_v56 }
0x2599   : > { %v3084_v58 = vpack.c.bf16 %v3083_v57, %v3083_v57 }
0x259b   : > { %5117 = vmatmul.mubr.msk.bf16.vlgmr.msra.gmra.mrb[60].mxu0 %vm709_vm2, %v3084_v58 }
0x259c   : > { %5144 = vmatprep.mubr.msk.bf16.mxu0 %vm5459_vm0, %v5460_v14  ;;  %5141 = vmatpush3.bf16.msra.mxu0 %v5339_v6 }
0x259d   : > { %5142 = vmatprep.subr.bf16.mxu0 %v5460_v14 }
0x266e   : > { %v3147_v4 = vpop.f32.mrb[60].mxu0 }
0x266f   : > { %v3148_v5 = vadd.f32 %v4561_v3, %v3147_v4  ;;  %v5118_v34 = vpop.f32.mrb[61].mxu0 }
0x2670   : > { %v3150_v8 = vpop.f32.mrb[62].mxu0 }
0x2671   : > { %v3154_v9 = vmul.f32 0.044715, %v3148_v5  ;;  %v5119_v10 = vpop.f32.mrb[63].mxu0  ;;  %v3153_v17 = vmul.f32 0.5, %v3148_v5 }
0x2673   : > { %v3155_v11 = vmul.f32 %v3154_v9, %v3148_v5 }
0x2675   : > { %v3156_v12 = vmul.f32 %v3155_v11, %v3148_v5 }
0x2677   : > { %v3157_v13 = vadd.f32 %v3156_v12, %v3148_v5 }
0x2679   : > { %v3158_v16 = vmul.f32 0.7978846, %v3157_v13 }
0x267b   : > { %5419 = vtanh.f32 %v3158_v16 }
0x2685   : > { %v5420_v50 = vpop.eup %5419 }
0x2686   : > { %v3160_v18 = vadd.f32 1.0, %v5420_v50 }
0x2688   : > { %v3161_v19 = vmul.f32 %v3160_v18, %v3153_v17 }
0x268a   : > { %v3162_v20 = vpack.c.bf16 %v3161_v19, %v3161_v19 }
0x268c   : > { %5137 = vmatmul.mubr.bf16.vlgmr.msra.gmra.mrb[80].mxu1 %v3162_v20 }
0x268d   : > { %5168 = vmatprep.mubr.msk.bf16.mxu1 %vm5459_vm0, %v5460_v14 }
0x275f   : > { %v3262_v21 = vpop.f32.mrb[80].mxu1 }
0x2760   : > { %v3268_v24 = vadd.f32 %v3262_v21, %v6190_v38  ;;  %v5138_v25 = vpop.f32.mrb[81].mxu1  ;;  %v5340_v38 = vld [vmem:[%s6493_s5 + $0x38] sm:$0xff]  }
0x2761   : > { %v3265_v52 = vpop.f32.mrb[82].mxu1  ;;  %5143 = vmatpush3.bf16.msra.mxu0 %v5340_v38 }
0x2762   : > { %v6254_v26 = vadd.f32 %v4590_v22, %v3268_v24  ;;  %v5139_v27 = vpop.f32.mrb[83].mxu1  ;;  %5148 = vmatprep.subr.bf16.mxu0 %v5460_v14 }
0x2764   : > { %v3282_v28 = vsel %vm709_vm2, %v6254_v26, 0.0 }
0x2765   : > { %3283 = vadd.xlane.f32.xlu0 %v3282_v28 }
0x27f2   : > { %v3284_v32 = vpop.xlane.xlu0 %3283 }
0x27f3   : > { %v3285_v33 = vmul.f32 0.03125, %v3284_v32 }
0x27f5   : > { %v3286_v35 = vsub.f32 %v6254_v26, %v3285_v33 }
0x27f7   : > { %v3287_v36 = vmul.f32 %v3286_v35, %v3286_v35 }
0x27f9   : > { %v3288_v37 = vsel %vm709_vm2, %v3287_v36, 0.0 }
0x27fa   : > { %3289 = vadd.xlane.f32.xlu0 %v3288_v37 }
0x2887   : > { %v3290_v39 = vpop.xlane.xlu0 %3289 }
0x2888   : > { %v3291_v40 = vmul.f32 0.03125, %v3290_v39 }
0x288a   : > { %v3292_v41 = vadd.f32 1e-05, %v3291_v40 }
0x288c   : > { %5421 = vrsqrt.f32 %v3292_v41 }
0x2896   : > { %v5422_v42 = vpop.eup %5421 }
0x2897   : > { %v3294_v44 = vmul.f32 %v5422_v42, %v3286_v35 }
0x2899   : > { %v3301_v7 = vmul.f32 %v4593_v43, %v3294_v44 }
0x289b   : > { %v3308_v15 = vadd.f32 %v4594_v45, %v3301_v7 }
0x289d   : > { %v3309_v46 = vpack.c.bf16 %v3308_v15, %v3308_v15 }
0x289f   : > { %5145 = vmatmul.mubr.msk.bf16.vlgmr.msra.gmra.mrb[64].mxu0 %vm709_vm2, %v3309_v46 }
0x28a0   : > { %5150 = vmatprep.mubr.msk.bf16.mxu0 %vm5459_vm0, %v5460_v14 }
0x2972   : > { %v3372_v48 = vpop.f32.mrb[64].mxu0 }
0x2973   : > { %v3373_v49 = vadd.f32 %v4600_v47, %v3372_v48  ;;  %v5146_v51 = vpop.f32.mrb[65].mxu0 }
0x2974   : > { %v3375_v53 = vpop.f32.mrb[66].mxu0 }
0x2975   : > { %v6280_v54 = vpack.c.bf16 %v3373_v49, %v3373_v49  ;;  %v5147_v55 = vpop.f32.mrb[67].mxu0 }
0x2977   : > { %3380 = vrot.lane.b32.xlu1 %v6280_v54, %s6578_s0 }
0x297b   : > { %3492 = vrot.lane.b32.xlu1 %v6280_v54, %s6579_s17  ;;  %s6590_s17 = sld [smem:[#allocation15_spill]] }
0x297f   : > { %3490 = vrot.lane.b32.xlu1 %v6280_v54, %s6580_s30 }
0x2981   : > { %s606_s30 = scalar_lea.vmem %s6590_s17, %s6585_s15 }
0x2983   : > { %3604 = vrot.lane.b32.xlu1 %v6280_v54, %s6567_s26 }
0x2987   : > { %3602 = vrot.lane.b32.xlu1 %v6280_v54, %s6568_s20  ;;  %s6586_s20 = sld [smem:[#allocation11_spill]] }
0x298b   : > { %3714 = vrot.lane.b32.xlu1 %v6280_v54, %s6569_s23 }
0x29e9   : > { %v3381_v56 = vpop.permute.xlu1 %3380 }
0x29ea   : > { %v3386_v57 = vsel %vm809_vm3, %v3381_v56, 0 }
0x29eb   : > { %5149 = vmatpush3.bf16.xpose.msra.mxu0 %v3386_v57 }
0x29ec   : > { %5154 = vmatprep.subr.bf16.mxu0 %v5460_v14 }
0x29ed   : > { %v3493_v11 = vpop.permute.xlu1 %3492 }
0x29ee   : > { %v3498_v17 = vsel %vm809_vm3, %v3493_v11, 0 }
0x29f1   : > { %v3491_v50 = vpop.permute.xlu1 %3490 }
0x29f2   : > { %5151 = vmatmul.mubr.msk.bf16.vlgmr.msra.gmra.mrb[68].mxu0 %vm809_vm3, %v6280_v54 }
0x29f3   : > { %5156 = vmatprep.mubr.msk.bf16.mxu0 %vm5459_vm0, %v5460_v14 }
0x29f5   : > { %v3605_v18 = vpop.permute.xlu1 %3604 }
0x29f6   : > { %v3610_v19 = vsel %vm809_vm3, %v3605_v18, 0 }
0x29f9   : > { %v3603_v21 = vpop.permute.xlu1 %3602 }
0x29fd   : > { %v3715_v24 = vpop.permute.xlu1 %3714 }
0x2ac5   : > { %v3422_v58 = vpop.f32.mrb[68].mxu0 }
0x2ac6   : > { %v3428_v60 = vmul.f32 0.35355338, %v3422_v58  ;;  %v5152_v23 = vpop.f32.mrb[69].mxu0 }
0x2ac7   : > { %v3425_v61 = vpop.f32.mrb[70].mxu0 }
0x2ac8   : > { %v5153_v62 = vpop.f32.mrb[71].mxu0  ;;  %v3429_v1 = vsel %vm5701_vm4, %v3428_v60, -3.4028235e+38 }
0x2ac9   : > { %v3430_v59 = vsel %vm809_vm3, %v3429_v1, -inf }
0x2aca   : > { %3431 = vmax.xlane.f32.xlu0 %v3430_v59 }
0x2b57   : > { %v3432_v2 = vpop.xlane.xlu0 %3431 }
0x2b58   : > { %v3433_v3 = vsub.f32 %v3429_v1, %v3432_v2 }
0x2b5a   : > { %v3434_v4 = vmul.f32 1.442695, %v3433_v3 }
0x2b5c   : > { %5423 = vpow2.f32 %v3434_v4 }
0x2b66   : > { %v5424_v5 = vpop.eup %5423 }
0x2b67   : > { %v3436_v34 = vsel %vm809_vm3, %v5424_v5, 0.0 }
0x2b68   : > { %3437 = vadd.xlane.f32.xlu0 %v3436_v34 }
0x2b7e   : > { %3442 = vrot.lane.b32.xlu0 %v6280_v54, %s6570_s22 }
0x2b82   : > { %3716 = vrot.lane.b32.xlu0 %v6280_v54, %s6571_s27  ;;  %s6581_s27 = sld [smem:[#allocation8_spill]] }
0x2bf5   : > { %v3438_v8 = vpop.xlane.xlu0 %3437 }
0x2bf6   : > { %5425 = vrcp.f32 %v3438_v8 }
0x2bf9   : > { %v3443_v9 = vpop.permute.xlu0 %3442 }
0x2bfa   : > { %v3448_v10 = vsel %vm875_vm5, %v3443_v9, 0 }
0x2bfb   : > { %5155 = vmatpush3.bf16.msra.mxu0 %v3448_v10 }
0x2bfc   : > { %5160 = vmatprep.subr.bf16.mxu0 %v5460_v14 }
0x2bfd   : > { %v3717_v20 = vpop.permute.xlu0 %3716 }
0x2bfe   : > { %v3722_v22 = vsel %vm809_vm3, %v3717_v20, 0 }
0x2c00   : > { %v5426_v12 = vpop.eup %5425 }
0x2c01   : > { %v3440_v13 = vmul.f32 %v5426_v12, %v5424_v5 }
0x2c03   : > { %v3441_v16 = vpack.c.bf16 %v3440_v13, %v3440_v13 }
0x2c05   : > { %5157 = vmatmul.mubr.msk.bf16.vlgmr.msra.gmra.mrb[72].mxu0 %vm809_vm3, %v3441_v16 }
0x2c06   : > { %5161 = vmatpush3.bf16.xpose.msra.mxu0 %v3498_v17  ;;  %5162 = vmatprep.mubr.msk.bf16.mxu0 %vm5459_vm0, %v5460_v14 }
0x2c07   : > { %5172 = vmatprep.subr.bf16.mxu0 %v5460_v14 }
0x2c0d   : > { %5163 = vmatmul.mubr.msk.bf16.vlgmr.msra.gmra.mrb[76].mxu0 %vm809_vm3, %v3491_v50 }
0x2c0e   : > { %5173 = vmatpush3.bf16.xpose.msra.mxu0 %v3610_v19  ;;  %5174 = vmatprep.mubr.msk.bf16.mxu0 %vm5459_vm0, %v5460_v14 }
0x2c0f   : > { %5184 = vmatprep.subr.bf16.mxu0 %v5460_v14 }
0x2c15   : > { %5175 = vmatmul.mubr.msk.bf16.vlgmr.msra.gmra.mrb[80].mxu0 %vm809_vm3, %v3603_v21 }
0x2c16   : > { %5185 = vmatpush3.bf16.xpose.msra.mxu0 %v3722_v22  ;;  %5186 = vmatprep.mubr.msk.bf16.mxu0 %vm5459_vm0, %v5460_v14 }
0x2c17   : > { %5196 = vmatprep.subr.bf16.mxu0 %v5460_v14 }
0x2c1d   : > { %5187 = vmatmul.mubr.msk.bf16.vlgmr.msra.gmra.mrb[84].mxu0 %vm809_vm3, %v3715_v24 }
0x2c1e   : > { %5200 = vmatprep.mubr.msk.bf16.mxu0 %vm5459_vm0, %v5460_v14 }
0x2cd8   : > { %v6328_v25 = vpop.f32.mrb[72].mxu0 }
0x2cd9   : > { %v5158_v52 = vpop.f32.mrb[73].mxu0 }
0x2cda   : > { %v3487_v27 = vpop.f32.mrb[74].mxu0  ;;  %v5341_v52 = vld [vmem:[%s6495_s7 + $0x30] sm:$0xff]  }
0x2cdb   : > { %v5159_v28 = vpop.f32.mrb[75].mxu0  ;;  %5197 = vmatpush3.bf16.msra.mxu0 %v5341_v52 }
0x2cdc   : > { %5198 = vmatprep.subr.bf16.mxu0 %v5460_v14 }
0x2ce0   : > { %v3534_v32 = vpop.f32.mrb[76].mxu0 }
0x2ce1   : > { %v3540_v33 = vmul.f32 0.35355338, %v3534_v32  ;;  %v5164_v35 = vpop.f32.mrb[77].mxu0 }
0x2ce2   : > { %v3537_v36 = vpop.f32.mrb[78].mxu0  ;;  %v5342_v35 = vld [vmem:[%s6495_s7 + $0x38] sm:$0xff]  }
0x2ce3   : > { %v5165_v37 = vpop.f32.mrb[79].mxu0  ;;  %v3541_v6 = vsel %vm5701_vm4, %v3540_v33, -3.4028235e+38  ;;  %5199 = vmatpush3.bf16.msra.mxu0 %v5342_v35 }
0x2ce4   : > { %v3542_v38 = vsel %vm809_vm3, %v3541_v6, -inf  ;;  %5212 = vmatprep.subr.bf16.mxu0 %v5460_v14 }
0x2ce5   : > { %3543 = vmax.xlane.f32.xlu0 %v3542_v38 }
0x2ce8   : > { %v3646_v39 = vpop.f32.mrb[80].mxu0 }
0x2ce9   : > { %v3652_v40 = vmul.f32 0.35355338, %v3646_v39  ;;  %v5176_v41 = vpop.f32.mrb[81].mxu0 }
0x2cea   : > { %v3649_v42 = vpop.f32.mrb[82].mxu0 }
0x2ceb   : > { %v5177_v43 = vpop.f32.mrb[83].mxu0  ;;  %v3653_v44 = vsel %vm5701_vm4, %v3652_v40, -3.4028235e+38 }
0x2cec   : > { %v3654_v45 = vsel %vm809_vm3, %v3653_v44, -inf }
0x2ced   : > { %3655 = vmax.xlane.f32.xlu1 %v3654_v45 }
0x2cf0   : > { %v3758_v7 = vpop.f32.mrb[84].mxu0 }
0x2cf1   : > { %v3764_v15 = vmul.f32 0.35355338, %v3758_v7  ;;  %v5188_v46 = vpop.f32.mrb[85].mxu0 }
0x2cf2   : > { %v3761_v47 = vpop.f32.mrb[86].mxu0 }
0x2cf3   : > { %v5189_v48 = vpop.f32.mrb[87].mxu0  ;;  %v3765_v49 = vsel %vm5701_vm4, %v3764_v15, -3.4028235e+38 }
0x2cf4   : > { %v3766_v51 = vsel %vm809_vm3, %v3765_v49, -inf }
0x2cf5   : > { %3767 = vmax.xlane.f32.xlu0 %v3766_v51 }
0x2cfe   : > { %3554 = vrot.lane.b32.xlu1 %v6280_v54, %s6572_s2 }
0x2d72   : > { %v3544_v53 = vpop.xlane.xlu0 %3543 }
0x2d73   : > { %v3545_v55 = vsub.f32 %v3541_v6, %v3544_v53 }
0x2d75   : > { %v3546_v56 = vmul.f32 1.442695, %v3545_v55 }
0x2d77   : > { %5427 = vpow2.f32 %v3546_v56 }
0x2d7a   : > { %v3656_v57 = vpop.xlane.xlu1 %3655 }
0x2d7b   : > { %v3657_v58 = vsub.f32 %v3653_v44, %v3656_v57 }
0x2d7d   : > { %v3658_v60 = vmul.f32 1.442695, %v3657_v58 }
0x2d7e   : > { %v3555_v23 = vpop.permute.xlu1 %3554 }
0x2d7f   : > { %5429 = vpow2.f32 %v3658_v60  ;;  %v3560_v61 = vsel %vm875_vm5, %v3555_v23, 0 }
0x2d80   : > { %5167 = vmatpush3.bf16.msra.mxu1 %v3560_v61 }
0x2d81   : > { %v5428_v0 = vpop.eup %5427  ;;  %5178 = vmatprep.subr.bf16.mxu1 %v5460_v14 }
0x2d82   : > { %v3768_v62 = vpop.xlane.xlu0 %3767  ;;  %v3548_v1 = vsel %vm809_vm3, %v5428_v0, 0.0 }
0x2d83   : > { %v3769_v59 = vsub.f32 %v3765_v49, %v3768_v62  ;;  %3549 = vadd.xlane.f32.xlu0 %v3548_v1  ;;  %v4620_v49 = vld [vmem:[%s6581_s27 + $0x3] ss:$0 sm:$0xff]  ;;  %v5344_v62 = vld [vmem:[%s6499_s11 + $0x38] sm:$0xff]  }
0x2d84   : > { %v5345_v1 = vld [vmem:[%s6501_s13 + $0xc0] sm:$0xff]  }
0x2d85   : > { %v3770_v2 = vmul.f32 1.442695, %v3769_v59 }
0x2d87   : > { %5431 = vpow2.f32 %v3770_v2 }
0x2d89   : > { %v5430_v3 = vpop.eup %5429 }
0x2d8a   : > { %v3660_v4 = vsel %vm809_vm3, %v5430_v3, 0.0 }
0x2d8b   : > { %3661 = vadd.xlane.f32.xlu1 %v3660_v4 }
0x2d91   : > { %v5432_v5 = vpop.eup %5431 }
0x2d92   : > { %v3772_v34 = vsel %vm809_vm3, %v5432_v5, 0.0 }
0x2d93   : > { %3773 = vadd.xlane.f32.xlu0 %v3772_v34 }
0x2d9c   : > { %3778 = vrot.lane.b32.xlu1 %v6280_v54, %s6573_s24  ;;  %s6589_s24 = sld [smem:[#allocation14_spill]] }
0x2da9   : > { %3666 = vrot.lane.b32.xlu0 %v6280_v54, %s6574_s29 }
0x2e10   : > { %v3550_v8 = vpop.xlane.xlu0 %3549 }
0x2e11   : > { %5433 = vrcp.f32 %v3550_v8  ;;  %v4624_v8 = vld [vmem:[%s6583_s8 + $0x3] ss:$0 sm:$0xff] }
0x2e18   : > { %v3662_v9 = vpop.xlane.xlu1 %3661 }
0x2e19   : > { %5435 = vrcp.f32 %v3662_v9 }
0x2e1b   : > { %v5434_v10 = vpop.eup %5433 }
0x2e1c   : > { %v3552_v11 = vmul.f32 %v5434_v10, %v5428_v0  ;;  %v3779_v54 = vpop.permute.xlu1 %3778 }
0x2e1d   : > { %v3784_v20 = vsel %vm875_vm5, %v3779_v54, 0  ;;  %v5352_v54 = vld [vmem:[%s6501_s13 + $0xf8] sm:$0xff]  }
0x2e1e   : > { %v3553_v12 = vpack.c.bf16 %v3552_v11, %v3552_v11 }
0x2e20   : > { %5169 = vmatmul.mubr.msk.bf16.vlgmr.msra.gmra.mrb[84].mxu1 %vm809_vm3, %v3553_v12  ;;  %v3774_v13 = vpop.xlane.xlu0 %3773  ;;  %v5346_v12 = vld [vmem:[%s6501_s13 + $0xc8] sm:$0xff]  }
0x2e21   : > { %5437 = vrcp.f32 %v3774_v13  ;;  %5180 = vmatprep.mubr.msk.bf16.mxu1 %vm5459_vm0, %v5460_v14  ;;  %v5347_v13 = vld [vmem:[%s6501_s13 + $0xd0] sm:$0xff]  }
0x2e23   : > { %v5436_v16 = vpop.eup %5435 }
0x2e24   : > { %v3664_v50 = vmul.f32 %v5436_v16, %v5430_v3  ;;  %v3667_v17 = vpop.permute.xlu0 %3666  ;;  %v5348_v16 = vld [vmem:[%s6501_s13 + $0xd8] sm:$0xff]  }
0x2e25   : > { %v3672_v18 = vsel %vm875_vm5, %v3667_v17, 0  ;;  %v5350_v17 = vld [vmem:[%s6501_s13 + $0xe8] sm:$0xff]  }
0x2e26   : > { %5179 = vmatpush3.bf16.msra.mxu1 %v3672_v18  ;;  %v3665_v19 = vpack.c.bf16 %v3664_v50, %v3664_v50  ;;  %v5349_v50 = vld [vmem:[%s6501_s13 + $0xe0] sm:$0xff]   ;;  %v5351_v18 = vld [vmem:[%s6501_s13 + $0xf0] sm:$0xff]  }
0x2e27   : > { %5190 = vmatprep.subr.bf16.mxu1 %v5460_v14 }
0x2e29   : > { %5181 = vmatmul.mubr.msk.bf16.vlgmr.msra.gmra.mrb[88].mxu1 %vm809_vm3, %v3665_v19  ;;  %v4630_v19 = vld [vmem:[%s6500_s12 + $0x3] ss:$0 sm:$0xff] }
0x2e2a   : > { %5191 = vmatpush3.bf16.msra.mxu1 %v3784_v20  ;;  %5192 = vmatprep.mubr.msk.bf16.mxu1 %vm5459_vm0, %v5460_v14 }
0x2e2b   : > { %v5438_v21 = vpop.eup %5437  ;;  %5204 = vmatprep.subr.bf16.mxu1 %v5460_v14 }
0x2e2c   : > { %v3776_v22 = vmul.f32 %v5438_v21, %v5432_v5  ;;  %v4623_v5 = vld [vmem:[%s6582_s9 + $0x3] ss:$0 sm:$0xff] }
0x2e2e   : > { %v3777_v24 = vpack.c.bf16 %v3776_v22, %v3776_v22 }
0x2e31   : > { %5193 = vmatmul.mubr.msk.bf16.vlgmr.msra.gmra.mrb[92].mxu1 %vm809_vm3, %v3777_v24 }
0x2e32   : > { %5208 = vmatprep.mubr.msk.bf16.mxu1 %vm5459_vm0, %v5460_v14 }
0x2ef3   : > { %v3596_v27 = vpop.f32.mrb[84].mxu1 }
0x2ef4   : > { %3827 = vrot.lane.b32.xlu1 %v3596_v27, %s6575_s25  ;;  %v5170_v28 = vpop.f32.mrb[85].mxu1  ;;  %s6588_s25 = sshll.u32 %s6585_s15, 3 }
0x2ef5   : > { %v3599_v32 = vpop.f32.mrb[86].mxu1  ;;  %s603_s29 = scalar_lea.vmem %s6589_s24, %s6588_s25 }
0x2ef6   : > { %v5171_v33 = vpop.f32.mrb[87].mxu1 }
0x2efc   : > { %v3708_v36 = vpop.f32.mrb[88].mxu1 }
0x2efd   : > { %3831 = vrot.lane.b32.xlu0 %v3708_v36, %s6576_s19  ;;  %v5182_v37 = vpop.f32.mrb[89].mxu1  ;;  %s6587_s19 = sld [smem:[#allocation12_spill]] }
0x2efe   : > { %v3711_v6 = vpop.f32.mrb[90].mxu1 }
0x2eff   : > { %v5183_v38 = vpop.f32.mrb[91].mxu1 }
0x2f04   : > { %v3820_v39 = vpop.f32.mrb[92].mxu1 }
0x2f05   : > { %3835 = vrot.lane.b32.xlu1 %v3820_v39, %s6577_s3  ;;  %v5194_v40 = vpop.f32.mrb[93].mxu1 }
0x2f06   : > { %v3823_v41 = vpop.f32.mrb[94].mxu1 }
0x2f07   : > { %v5195_v42 = vpop.f32.mrb[95].mxu1  ;;  %v4659_v41 = vld [vmem:[%s6502_s14 + $0x3] ss:$0 sm:$0xff] }
0x2f66   : > { %v3828_v43 = vpop.permute.xlu1 %3827 }
0x2f67   : > { %v3838_v45 = vsel %vm809_vm3, %v6328_v25, %v3828_v43 }
0x2f6f   : > { %v3832_v44 = vpop.permute.xlu0 %3831 }
0x2f70   : > { %v3839_v7 = vsel %vm1268_vm6, %v3838_v45, %v3832_v44 }
0x2f77   : > { %v3836_v15 = vpop.permute.xlu1 %3835 }
0x2f78   : > { %v3840_v46 = vsel %vm1270_vm7, %v3839_v7, %v3836_v15 }
0x2f79   : > { %v3841_v47 = vpack.c.bf16 %v3840_v46, %v3840_v46 }
0x2f7b   : > { %5201 = vmatmul.mubr.msk.bf16.vlgmr.msra.gmra.mrb[88].mxu0 %vm709_vm2, %v3841_v47 }
0x2f7c   : > { %5228 = vmatprep.mubr.msk.bf16.mxu0 %vm5459_vm0, %v5460_v14  ;;  %5213 = vmatpush3.bf16.msra.mxu0 %v5345_v1  ;;  %v4239_v1 = vadd.s32 1, %v5697_v63 }
0x2f7d   : > { %5214 = vmatprep.subr.bf16.mxu0 %v5460_v14 }
0x2f7e   : > { %vm4240_vm8 = vcmp.eq.s32.totalorder %v5646_v29, %v4239_v1 }
0x2f80   : > { %5215 = vmatpush3.bf16.msra.mxu0 %v5346_v12 }
0x2f81   : > { %5216 = vmatprep.subr.bf16.mxu0 %v5460_v14 }
0x2f84   : > { %5217 = vmatpush3.bf16.msra.mxu0 %v5347_v13 }
0x2f85   : > { %5218 = vmatprep.subr.bf16.mxu0 %v5460_v14 }
0x2f88   : > { %5219 = vmatpush3.bf16.msra.mxu0 %v5348_v16 }
0x2f89   : > { %5220 = vmatprep.subr.bf16.mxu0 %v5460_v14 }
0x2f8c   : > { %5221 = vmatpush3.bf16.msra.mxu0 %v5349_v50 }
0x2f8d   : > { %5222 = vmatprep.subr.bf16.mxu0 %v5460_v14 }
0x2f90   : > { %5223 = vmatpush3.bf16.msra.mxu0 %v5350_v17 }
0x2f91   : > { %5224 = vmatprep.subr.bf16.mxu0 %v5460_v14 }
0x2f94   : > { %5225 = vmatpush3.bf16.msra.mxu0 %v5351_v18  ;;  %v4668_v18 = vsel %vm4319_vm10, 1.0, %v5460_v14 }
0x2f95   : > { %5226 = vmatprep.subr.bf16.mxu0 %v5460_v14 }
0x2f98   : > { %5227 = vmatpush3.bf16.msra.mxu0 %v5352_v54 }
0x304e   : > { %v3896_v48 = vpop.f32.mrb[88].mxu0 }
0x304f   : > { %v3902_v51 = vadd.f32 %v3896_v48, %v6254_v26  ;;  %v5202_v53 = vpop.f32.mrb[89].mxu0  ;;  %v5343_v26 = vld [vmem:[%s6499_s11 + $0x30] sm:$0xff]  }
0x3050   : > { %v3899_v25 = vpop.f32.mrb[90].mxu0  ;;  %5205 = vmatpush3.bf16.msra.mxu1 %v5343_v26  ;;  %v5353_v53 = vld [vmem:[%s6584_s18] sm:$0xff]  }
0x3051   : > { %v6385_v55 = vadd.f32 %v4620_v49, %v3902_v51  ;;  %v5203_v56 = vpop.f32.mrb[91].mxu0  ;;  %5206 = vmatprep.subr.bf16.mxu1 %v5460_v14  ;;  %v5354_v25 = vld [vmem:[%s6584_s18 + $0x8] sm:$0xff]  }
0x3053   : > { %v3916_v57 = vsel %vm709_vm2, %v6385_v55, 0.0 }
0x3054   : > { %3917 = vadd.xlane.f32.xlu0 %v3916_v57  ;;  %5207 = vmatpush3.bf16.msra.mxu1 %v5344_v62 }
0x3055   : > { %5232 = vmatprep.subr.bf16.mxu1 %v5460_v14 }
0x30e1   : > { %v3918_v58 = vpop.xlane.xlu0 %3917 }
0x30e2   : > { %v3919_v60 = vmul.f32 0.03125, %v3918_v58 }
0x30e4   : > { %v3920_v23 = vsub.f32 %v6385_v55, %v3919_v60  ;;  %v4660_v60 = vld [vmem:[%s6586_s20] ss:$0 sm:$0xff] }
0x30e6   : > { %v3921_v61 = vmul.f32 %v3920_v23, %v3920_v23 }
0x30e8   : > { %v3922_v0 = vsel %vm709_vm2, %v3921_v61, 0.0  ;;  %v4661_v61 = vld [vmem:[%s6587_s19] ss:$0 sm:$0xff] }
0x30e9   : > { %3923 = vadd.xlane.f32.xlu1 %v3922_v0 }
0x3176   : > { %v3924_v59 = vpop.xlane.xlu1 %3923 }
0x3177   : > { %v3925_v2 = vmul.f32 0.03125, %v3924_v59  ;;  %v4665_v59 = vsel %vm4240_vm8, 1.0, %v5460_v14 }
0x3179   : > { %v3926_v3 = vadd.f32 1e-05, %v3925_v2 }
0x317b   : > { %5439 = vrsqrt.f32 %v3926_v3 }
0x3185   : > { %v5440_v4 = vpop.eup %5439 }
0x3186   : > { %v3928_v34 = vmul.f32 %v5440_v4, %v3920_v23 }
0x3188   : > { %v3935_v9 = vmul.f32 %v4623_v5, %v3928_v34 }
0x318a   : > { %v3942_v10 = vadd.f32 %v4624_v8, %v3935_v9 }
0x318c   : > { %v3943_v11 = vpack.c.bf16 %v3942_v10, %v3942_v10 }
0x318e   : > { %5209 = vmatmul.mubr.msk.bf16.vlgmr.msra.gmra.mrb[96].mxu1 %vm709_vm2, %v3943_v11 }
0x318f   : > { %5236 = vmatprep.mubr.msk.bf16.mxu1 %vm5459_vm0, %v5460_v14  ;;  %5233 = vmatpush3.bf16.msra.mxu1 %v5353_v53 }
0x3190   : > { %5234 = vmatprep.subr.bf16.mxu1 %v5460_v14 }
0x3193   : > { %5235 = vmatpush3.bf16.msra.mxu1 %v5354_v25 }
0x3194   : > { %5240 = vmatprep.subr.mxu1 %v5460_v14 }
0x3261   : > { %v4006_v20 = vpop.f32.mrb[96].mxu1 }
0x3262   : > { %v4007_v21 = vadd.f32 %v4630_v19, %v4006_v20  ;;  %v5210_v22 = vpop.f32.mrb[97].mxu1 }
0x3263   : > { %v4009_v24 = vpop.f32.mrb[98].mxu1 }
0x3264   : > { %v4013_v52 = vmul.f32 0.044715, %v4007_v21  ;;  %v5211_v27 = vpop.f32.mrb[99].mxu1  ;;  %v4012_v37 = vmul.f32 0.5, %v4007_v21 }
0x3266   : > { %v4014_v28 = vmul.f32 %v4013_v52, %v4007_v21 }
0x3268   : > { %v4015_v32 = vmul.f32 %v4014_v28, %v4007_v21 }
0x326a   : > { %v4016_v33 = vadd.f32 %v4015_v32, %v4007_v21 }
0x326c   : > { %v4017_v35 = vmul.f32 0.7978846, %v4016_v33 }
0x326e   : > { %5441 = vtanh.f32 %v4017_v35 }
0x3278   : > { %v5442_v36 = vpop.eup %5441 }
0x3279   : > { %v4019_v6 = vadd.f32 1.0, %v5442_v36 }
0x327b   : > { %v4020_v38 = vmul.f32 %v4019_v6, %v4012_v37 }
0x327d   : > { %v4021_v39 = vpack.c.bf16 %v4020_v38, %v4020_v38 }
0x327f   : > { %5229 = vmatmul.mubr.bf16.vlgmr.msra.gmra.mrb[92].mxu0 %v4021_v39 }
0x3352   : > { %v4121_v40 = vpop.f32.mrb[92].mxu0 }
0x3353   : > { %v4127_v42 = vadd.f32 %v4121_v40, %v6385_v55  ;;  %v5230_v43 = vpop.f32.mrb[93].mxu0 }
0x3354   : > { %v4124_v44 = vpop.f32.mrb[94].mxu0 }
0x3355   : > { %v4136_v45 = vadd.f32 %v4659_v41, %v4127_v42  ;;  %v5231_v7 = vpop.f32.mrb[95].mxu0 }
0x3357   : > { %v4139_v15 = vsel %vm709_vm2, %v4136_v45, 0.0 }
0x3358   : > { %4140 = vadd.xlane.f32.xlu0 %v4139_v15 }
0x33e5   : > { %v4141_v46 = vpop.xlane.xlu0 %4140 }
0x33e6   : > { %v4142_v47 = vmul.f32 0.03125, %v4141_v46 }
0x33e8   : > { %v4143_v48 = vsub.f32 %v4136_v45, %v4142_v47 }
0x33ea   : > { %v4144_v49 = vmul.f32 %v4143_v48, %v4143_v48 }
0x33ec   : > { %v4145_v51 = vsel %vm709_vm2, %v4144_v49, 0.0 }
0x33ed   : > { %4146 = vadd.xlane.f32.xlu0 %v4145_v51 }
0x347a   : > { %v4147_v55 = vpop.xlane.xlu0 %4146 }
0x347b   : > { %v4148_v56 = vmul.f32 0.03125, %v4147_v55 }
0x347d   : > { %v4149_v57 = vadd.f32 1e-05, %v4148_v56 }
0x347f   : > { %5443 = vrsqrt.f32 %v4149_v57 }
0x3489   : > { %v5444_v58 = vpop.eup %5443 }
0x348a   : > { %v4151_v23 = vmul.f32 %v5444_v58, %v4143_v48 }
0x348c   : > { %v4158_v0 = vmul.f32 %v4660_v60, %v4151_v23 }
0x348e   : > { %v4165_v26 = vadd.f32 %v4661_v61, %v4158_v0 }
0x3490   : > { %v4166_v62 = vpack.c.bf16 %v4165_v26, %v4165_v26 }
0x3492   : > { %5237 = vmatmul.mubr.msk.bf16.vlgmr.msra.gmra.mrb[100].mxu1 %vm709_vm2, %v4166_v62 }
0x3493   : > { %5241 = vmatpush3.msk.msra.mxu1 %vm614_vm1, %v5461_v31  ;;  %5242 = vmatprep.mubr.msk.f32.mxu1 %vm5459_vm0, %v5460_v14 }
0x349a   : > { %5243 = vmatmul.mubr.msk.f32.vlgmr.msra.gmra.mrb[104].mxu1 %vm809_vm3, %v4665_v59 }
0x3565   : > { %v4220_v2 = vpop.f32.mrb[100].mxu1 }
0x3566   : > { %4226 = vst [vmem:[%s603_s29] sm:$0xff] %v4220_v2  ;;  %v5238_v30 = vpop.f32.mrb[101].mxu1  ;;  %v4228_v31 = vsel %vm4227_vm9, %v4220_v2, -3.4028235e+38 }
0x3567   : > { %4229 = vmax.xlane.f32.xlu1 %v4228_v31  ;;  %v4223_v3 = vpop.f32.mrb[102].mxu1 }
0x3568   : > { %v5239_v4 = vpop.f32.mrb[103].mxu1 }
0x356d   : > { %v4312_v5 = vpop.f32.mrb[104].mxu1 }
0x356e   : > { %v4316_v34 = vmul.f32 %v4312_v5, %v4220_v2  ;;  %v5244_v8 = vpop.f32.mrb[105].mxu1 }
0x3570   : > { %4317 = vadd.xlane.f32.xlu1 %v4316_v34 }
0x35f4   : > { %v4230_v9 = vpop.xlane.xlu1 %4229 }
0x35f5   : > { %v4231_v10 = vsub.f32 %v4228_v31, %v4230_v9 }
0x35f7   : > { %v4232_v11 = vmul.f32 1.442695, %v4231_v10 }
0x35f9   : > { %5445 = vpow2.f32 %v4232_v11 }
0x35fd   : > { %v4318_v17 = vpop.xlane.xlu1 %4317 }
0x3603   : > { %v5446_v12 = vpop.eup %5445 }
0x3604   : > { %4234 = vadd.xlane.f32.xlu0 %v5446_v12 }
0x3691   : > { %v4235_v13 = vpop.xlane.xlu0 %4234 }
0x3692   : > { %5447 = vlog2.f32 %v4235_v13 }
0x369c   : > { %v5448_v29 = vpop.eup %5447 }
0x369d   : > { %v4237_v16 = vmul.f32 0.6931472, %v5448_v29 }
0x369f   : > { %v4238_v50 = vadd.f32 %v4237_v16, %v4230_v9 }
0x36a1   : > { %v4322_v54 = vsub.f32 %v4238_v50, %v4318_v17 }
0x36a3   : > { %v4323_v19 = vmul.f32 %v4668_v18, %v4322_v54 }
0x36a5   : > { %v4324_v20 = vrot.slane %v4323_v19, 4 }
0x36a7   : > { %v4325_v21 = vadd.f32 %v4324_v20, %v4323_v19 }
0x36a9   : > { %v4326_v22 = vrot.slane %v4325_v21, 2 }
0x36ab   : > { %v4327_v24 = vadd.f32 %v4326_v22, %v4325_v21 }
0x36ad   : > { %v4328_v52 = vrot.slane %v4327_v24, 1 }
0x36af   : > { %v4329_v27 = vadd.f32 %v4328_v52, %v4327_v24 }
0x36b1   : > { %v4330_v28 = vmul.f32 0.071428575, %v4329_v27 }
0x36b3   : > { %4332 = vst.msk [vmem:[%s606_s30] sm:$0x1] %vm4331_vm11, %v4330_v28 }
0x36b4 PF: > { %s6591_s28 = sld [smem:[#allocation2_spill]] }
0x36ba   : > { %s30_s0 = sadd.s32 1, %s6591_s28  }
0x36bb   : > { %p27_p4 = scmp.ge.s32.totalorder %s30_s0, 4  }
0x36bd   :  { %29 = sbr.rel (!%p27_p4) target bundleno = 13 (0xd), region = 170 }

</bundles_post_ra>
